<compile_context>
chip_gen: v5e
topology: v5e:2x2
jax: 0.10.0
libtpu: 0.0.40
codegen_flags: <defaults>
</compile_context>

<pallas_src>
import jax
import jax.numpy as jnp
from jax.experimental import pallas as pl
from jax.experimental.pallas import tpu as pltpu

LEAK = 0.2


def _leaky_relu(x):
    return jnp.where(x > 0, x, LEAK * x)


def _round_up(n, m):
    return ((n + m - 1) // m) * m


def _choose_tb(batch, tb_max=512):
    """Batch tile: multiple of 16, <= tb_max, low padding waste, and >= 2 grid
    steps for medium/large batches (keeps both v7x TensorCores busy)."""
    b16 = _round_up(max(batch, 1), 16)
    if b16 <= tb_max:
        if b16 >= 256:
            return _round_up(b16 // 2, 16)   # split into two tiles
        return b16                           # tiny batch: one tile
    best_tb, best_cost = 16, None
    for tb in range(tb_max, 15, -16):
        bp = _round_up(batch, tb)
        waste = (bp - batch) / bp
        # padded rows are pure wasted MXU time; mild preference for big tiles
        cost = waste + 0.02 * (tb_max - tb) / tb_max
        if best_cost is None or cost < best_cost:
            best_tb, best_cost = tb, cost
    return best_tb


def discriminator_kernel(x_ref,
                         w1_ref, b1_ref,
                         w2_ref, b2_ref,
                         w3_ref, b3_ref,
                         w4_ref, b4_ref,
                         o_ref):
    # x tile: (tb, input_dim) bf16 (cast in the wrapper); f32 accumulation.
    x = x_ref[...]

    h1 = jnp.dot(x, w1_ref[...], preferred_element_type=jnp.float32) + b1_ref[...]
    h1 = _leaky_relu(h1)

    h2 = jnp.dot(h1.astype(jnp.bfloat16), w2_ref[...],
                 preferred_element_type=jnp.float32) + b2_ref[...]
    h2 = _leaky_relu(h2)

    h3 = jnp.dot(h2.astype(jnp.bfloat16), w3_ref[...],
                 preferred_element_type=jnp.float32) + b3_ref[...]
    h3 = _leaky_relu(h3)

    # fc4 (output width 1): VPU multiply + cross-lane reduce; stays off the MXU.
    h4 = jnp.sum(h3 * w4_ref[...], axis=-1, keepdims=True) + b4_ref[...]   # (tb, 1)

    # Lane-dense store: present the tile result as a (1, 1, tb) row so the
    # output block is written with dense stores instead of masked vst.msk.
    o_ref[...] = h4.reshape(o_ref.shape).astype(o_ref.dtype)


def _build_call(input_dim, d1, d2, d3, tb, grid_len, *, single_buffer_weights):
    res_kwargs = dict(pipeline_mode=pl.Buffered(1)) if single_buffer_weights else {}

    def resident(shape):
        # Constant index_map: weights/biases are DMA'd once and stay resident.
        return pl.BlockSpec(shape, lambda i: (0,) * len(shape), **res_kwargs)

    in_specs = [
        pl.BlockSpec((tb, input_dim), lambda i: (i, 0)),   # x tile (bf16)
        resident((input_dim, d1)),                         # w1 (bf16)
        resident((1, d1)),                                 # b1 (f32)
        resident((d1, d2)),                                # w2 (bf16)
        resident((1, d2)),                                 # b2 (f32)
        resident((d2, d3)),                                # w3 (bf16)
        resident((1, d3)),                                 # b3 (f32)
        resident((1, d3)),                                 # w4 row (f32)
        resident((1, 1)),                                  # b4 (f32)
    ]

    return pl.pallas_call(
        discriminator_kernel,
        out_shape=jax.ShapeDtypeStruct((grid_len, 1, tb), jnp.float32),
        grid=(grid_len,),
        in_specs=in_specs,
        out_specs=pl.BlockSpec((1, 1, tb), lambda i: (i, 0, 0)),
        compiler_params=pltpu.CompilerParams(
            dimension_semantics=("parallel",),
            vmem_limit_bytes=32 << 20,
        ),
    )


def discriminator_forward(x, params, *, tb_max=512):
    """x: (B, input_dim) float32 -> (B, 1) float32 (bf16 matmuls, f32 accum)."""
    (w1, b1), (w2, b2), (w3, b3), (w4, b4) = params
    B, input_dim = x.shape
    d1, d2, d3 = w1.shape[1], w2.shape[1], w3.shape[1]

    # bf16 weights for the MXU layers; fc4 stays f32 as a (1, 256) row.
    w1b = w1.astype(jnp.bfloat16)
    w2b = w2.astype(jnp.bfloat16)
    w3b = w3.astype(jnp.bfloat16)
    w4_row = w4.reshape(1, -1).astype(jnp.float32)

    tb = _choose_tb(B, tb_max)
    bp = _round_up(B, tb)
    grid_len = bp // tb

    xb = x.astype(jnp.bfloat16)           # halve the x DMA; matches in-kernel dtype
    if bp != B:
        xb = jnp.pad(xb, ((0, bp - B), (0, 0)))

    args = (xb, w1b, b1, w2b, b2, w3b, b3, w4_row, b4)
    try:
        out = _build_call(input_dim, d1, d2, d3, tb, grid_len,
                          single_buffer_weights=True)(*args)
    except Exception:
        # Fallback if this JAX build rejects pipeline_mode=pl.Buffered(1) on the
        # resident blocks (perf-only optimization; semantics identical).
        out = _build_call(input_dim, d1, d2, d3, tb, grid_len,
                          single_buffer_weights=False)(*args)

    return out.reshape(bp, 1)[:B]


def init_params(key, input_dim):
    """Deterministic synthetic init (PyTorch-Linear shapes, stored transposed)."""
    dims = [(input_dim, 1024), (1024, 512), (512, 256), (256, 1)]
    params = []
    for din, dout in dims:
        kw, kb, key = jax.random.split(key, 3)
        bound = 1.0 / jnp.sqrt(jnp.float32(din))
        w = jax.random.uniform(kw, (din, dout), jnp.float32, -bound, bound)
        b = jax.random.uniform(kb, (1, dout), jnp.float32, -bound, bound)
        params.append((w, b))
    return params


def reference_forward(x, params):
    """Plain-JAX reference using the same bf16-input / f32-accumulate matmuls."""
    (w1, b1), (w2, b2), (w3, b3), (w4, b4) = params

    def lin_bf16(h, w, b):
        return jnp.dot(h.astype(jnp.bfloat16), w.astype(jnp.bfloat16),
                       preferred_element_type=jnp.float32) + b

    h = jax.nn.leaky_relu(lin_bf16(x, w1, b1), LEAK)
    h = jax.nn.leaky_relu(lin_bf16(h, w2, b2), LEAK)
    h = jax.nn.leaky_relu(lin_bf16(h, w3, b3), LEAK)
    return h @ w4 + b4   # final layer in f32, matching the kernel


if __name__ == "__main__":
    key = jax.random.PRNGKey(0)
    kx, kp = jax.random.split(key)

    batch, input_dim = 8, 64
    x = jax.random.normal(kx, (batch, input_dim), jnp.float32)
    params = init_params(kp, input_dim)

    out = discriminator_forward(x, params)
    out = jax.block_until_ready(out)

    ref = reference_forward(x, params)
    assert out.shape == (batch, 1), out.shape
    max_err = jnp.max(jnp.abs(out - ref))
    assert jnp.allclose(out, ref, atol=2e-2, rtol=2e-2), f"max abs err = {max_err}"

    print("KERNEL_OK")
</pallas_src>

<mosaic_0001>
module attributes {stable_mosaic.version = 11 : i64} {
  func.func @discriminator_kernel(%arg0: i32, %arg1: memref<16x64xbf16, #tpu.memory_space<vmem>>, %arg2: memref<64x1024xbf16, #tpu.memory_space<vmem>>, %arg3: memref<1x1024xf32, #tpu.memory_space<vmem>>, %arg4: memref<1024x512xbf16, #tpu.memory_space<vmem>>, %arg5: memref<1x512xf32, #tpu.memory_space<vmem>>, %arg6: memref<512x256xbf16, #tpu.memory_space<vmem>>, %arg7: memref<1x256xf32, #tpu.memory_space<vmem>>, %arg8: memref<1x256xf32, #tpu.memory_space<vmem>>, %arg9: memref<1x1xf32, #tpu.memory_space<vmem>>, %arg10: memref<1x1x16xf32, #tpu.memory_space<vmem>>) attributes {dimension_semantics = [#tpu.dimension_semantics<parallel>], iteration_bounds = array<i64: 1>, scalar_prefetch = 0 : i64, scratch_operands = 0 : i64, tpu.core_type = #tpu.core_type<tc>, window_params = [{transform_indices = @transform_0, window_bounds = array<i64: 16, 64>}, {pipeline_mode = #tpu.pipeline_mode<synchronous>, transform_indices = @transform_1, window_bounds = array<i64: 64, 1024>}, {pipeline_mode = #tpu.pipeline_mode<synchronous>, transform_indices = @transform_2, window_bounds = array<i64: 1, 1024>}, {pipeline_mode = #tpu.pipeline_mode<synchronous>, transform_indices = @transform_3, window_bounds = array<i64: 1024, 512>}, {pipeline_mode = #tpu.pipeline_mode<synchronous>, transform_indices = @transform_4, window_bounds = array<i64: 1, 512>}, {pipeline_mode = #tpu.pipeline_mode<synchronous>, transform_indices = @transform_5, window_bounds = array<i64: 512, 256>}, {pipeline_mode = #tpu.pipeline_mode<synchronous>, transform_indices = @transform_6, window_bounds = array<i64: 1, 256>}, {pipeline_mode = #tpu.pipeline_mode<synchronous>, transform_indices = @transform_7, window_bounds = array<i64: 1, 256>}, {pipeline_mode = #tpu.pipeline_mode<synchronous>, transform_indices = @transform_8, window_bounds = array<i64: 1, 1>}, {transform_indices = @transform_9, window_bounds = array<i64: 1, 1, 16>}]} {
    %c0 = arith.constant 0 : index
    %c0_0 = arith.constant 0 : index
    %0 = vector.load %arg1[%c0, %c0_0] : memref<16x64xbf16, #tpu.memory_space<vmem>>, vector<16x64xbf16>
    %c0_1 = arith.constant 0 : index
    %c0_2 = arith.constant 0 : index
    %1 = vector.load %arg2[%c0_1, %c0_2] : memref<64x1024xbf16, #tpu.memory_space<vmem>>, vector<64x1024xbf16>
    %cst = arith.constant dense<0.000000e+00> : vector<16x1024xf32>
    %2 = tpu.matmul %0, %1, %cst {dimension_numbers = #tpu.dot_dimension_numbers<[1], [0], [0], [1], [0, 0, 1, 1], [], []>} : vector<16x64xbf16>, vector<64x1024xbf16>, vector<16x1024xf32> -> vector<16x1024xf32>
    %c0_3 = arith.constant 0 : index
    %c0_4 = arith.constant 0 : index
    %3 = vector.load %arg3[%c0_3, %c0_4] : memref<1x1024xf32, #tpu.memory_space<vmem>>, vector<1x1024xf32>
    %4 = vector.broadcast %3 : vector<1x1024xf32> to vector<16x1024xf32>
    %5 = arith.addf %2, %4 : vector<16x1024xf32>
    %cst_5 = arith.constant 0.000000e+00 : f32
    %6 = vector.broadcast %cst_5 : f32 to vector<16x1024xf32>
    %7 = arith.cmpf ogt, %5, %6 : vector<16x1024xf32>
    %cst_6 = arith.constant 2.000000e-01 : f32
    %8 = vector.broadcast %cst_6 : f32 to vector<16x1024xf32>
    %9 = arith.mulf %8, %5 : vector<16x1024xf32>
    %10 = arith.select %7, %5, %9 : vector<16x1024xi1>, vector<16x1024xf32>
    %11 = arith.truncf %10 : vector<16x1024xf32> to vector<16x1024xbf16>
    %c0_7 = arith.constant 0 : index
    %c0_8 = arith.constant 0 : index
    %12 = vector.load %arg4[%c0_7, %c0_8] : memref<1024x512xbf16, #tpu.memory_space<vmem>>, vector<1024x512xbf16>
    %cst_9 = arith.constant dense<0.000000e+00> : vector<16x512xf32>
    %13 = tpu.matmul %11, %12, %cst_9 {dimension_numbers = #tpu.dot_dimension_numbers<[1], [0], [0], [1], [0, 0, 1, 1], [], []>} : vector<16x1024xbf16>, vector<1024x512xbf16>, vector<16x512xf32> -> vector<16x512xf32>
    %c0_10 = arith.constant 0 : index
    %c0_11 = arith.constant 0 : index
    %14 = vector.load %arg5[%c0_10, %c0_11] : memref<1x512xf32, #tpu.memory_space<vmem>>, vector<1x512xf32>
    %15 = vector.broadcast %14 : vector<1x512xf32> to vector<16x512xf32>
    %16 = arith.addf %13, %15 : vector<16x512xf32>
    %cst_12 = arith.constant 0.000000e+00 : f32
    %17 = vector.broadcast %cst_12 : f32 to vector<16x512xf32>
    %18 = arith.cmpf ogt, %16, %17 : vector<16x512xf32>
    %cst_13 = arith.constant 2.000000e-01 : f32
    %19 = vector.broadcast %cst_13 : f32 to vector<16x512xf32>
    %20 = arith.mulf %19, %16 : vector<16x512xf32>
    %21 = arith.select %18, %16, %20 : vector<16x512xi1>, vector<16x512xf32>
    %22 = arith.truncf %21 : vector<16x512xf32> to vector<16x512xbf16>
    %c0_14 = arith.constant 0 : index
    %c0_15 = arith.constant 0 : index
    %23 = vector.load %arg6[%c0_14, %c0_15] : memref<512x256xbf16, #tpu.memory_space<vmem>>, vector<512x256xbf16>
    %cst_16 = arith.constant dense<0.000000e+00> : vector<16x256xf32>
    %24 = tpu.matmul %22, %23, %cst_16 {dimension_numbers = #tpu.dot_dimension_numbers<[1], [0], [0], [1], [0, 0, 1, 1], [], []>} : vector<16x512xbf16>, vector<512x256xbf16>, vector<16x256xf32> -> vector<16x256xf32>
    %c0_17 = arith.constant 0 : index
    %c0_18 = arith.constant 0 : index
    %25 = vector.load %arg7[%c0_17, %c0_18] : memref<1x256xf32, #tpu.memory_space<vmem>>, vector<1x256xf32>
    %26 = vector.broadcast %25 : vector<1x256xf32> to vector<16x256xf32>
    %27 = arith.addf %24, %26 : vector<16x256xf32>
    %cst_19 = arith.constant 0.000000e+00 : f32
    %28 = vector.broadcast %cst_19 : f32 to vector<16x256xf32>
    %29 = arith.cmpf ogt, %27, %28 : vector<16x256xf32>
    %cst_20 = arith.constant 2.000000e-01 : f32
    %30 = vector.broadcast %cst_20 : f32 to vector<16x256xf32>
    %31 = arith.mulf %30, %27 : vector<16x256xf32>
    %32 = arith.select %29, %27, %31 : vector<16x256xi1>, vector<16x256xf32>
    %c0_21 = arith.constant 0 : index
    %c0_22 = arith.constant 0 : index
    %33 = vector.load %arg8[%c0_21, %c0_22] : memref<1x256xf32, #tpu.memory_space<vmem>>, vector<1x256xf32>
    %34 = vector.broadcast %33 : vector<1x256xf32> to vector<16x256xf32>
    %35 = arith.mulf %32, %34 : vector<16x256xf32>
    %cst_23 = arith.constant dense<0.000000e+00> : vector<16xf32>
    %36 = vector.multi_reduction <add>, %35, %cst_23 [1] : vector<16x256xf32> to vector<16xf32>
    %37 = vector.shape_cast %36 : vector<16xf32> to vector<16x1xf32>
    %c0_24 = arith.constant 0 : index
    %c0_25 = arith.constant 0 : index
    %38 = vector.load %arg9[%c0_24, %c0_25] : memref<1x1xf32, #tpu.memory_space<vmem>>, vector<1x1xf32>
    %39 = vector.broadcast %38 : vector<1x1xf32> to vector<16x1xf32>
    %40 = arith.addf %37, %39 : vector<16x1xf32>
    %41 = vector.shape_cast %40 : vector<16x1xf32> to vector<1x1x16xf32>
    %c0_26 = arith.constant 0 : index
    %c0_27 = arith.constant 0 : index
    %c0_28 = arith.constant 0 : index
    %42 = vector.load %arg10[%c0_26, %c0_27, %c0_28] : memref<1x1x16xf32, #tpu.memory_space<vmem>>, vector<1x1x16xf32>
    tpu.vector_store %arg10[%c0_26, %c0_27, %c0_28], %41 {strides = array<i32>} : memref<1x1x16xf32, #tpu.memory_space<vmem>>, vector<1x1x16xf32>,
    return
  }
  func.func @transform_0(%arg0: i32) -> (i32, i32) {
    %c0_i32 = arith.constant 0 : i32
    %c0_i32_0 = arith.constant 0 : i32
    return %arg0, %c0_i32 : i32, i32
  }
  func.func @transform_1(%arg0: i32) -> (i32, i32) {
    %c0_i32 = arith.constant 0 : i32
    %c0_i32_0 = arith.constant 0 : i32
    %c0_i32_1 = arith.constant 0 : i32
    return %c0_i32, %c0_i32_0 : i32, i32
  }
  func.func @transform_2(%arg0: i32) -> (i32, i32) {
    %c0_i32 = arith.constant 0 : i32
    %c0_i32_0 = arith.constant 0 : i32
    %c0_i32_1 = arith.constant 0 : i32
    return %c0_i32, %c0_i32_0 : i32, i32
  }
  func.func @transform_3(%arg0: i32) -> (i32, i32) {
    %c0_i32 = arith.constant 0 : i32
    %c0_i32_0 = arith.constant 0 : i32
    %c0_i32_1 = arith.constant 0 : i32
    return %c0_i32, %c0_i32_0 : i32, i32
  }
  func.func @transform_4(%arg0: i32) -> (i32, i32) {
    %c0_i32 = arith.constant 0 : i32
    %c0_i32_0 = arith.constant 0 : i32
    %c0_i32_1 = arith.constant 0 : i32
    return %c0_i32, %c0_i32_0 : i32, i32
  }
  func.func @transform_5(%arg0: i32) -> (i32, i32) {
    %c0_i32 = arith.constant 0 : i32
    %c0_i32_0 = arith.constant 0 : i32
    %c0_i32_1 = arith.constant 0 : i32
    return %c0_i32, %c0_i32_0 : i32, i32
  }
  func.func @transform_6(%arg0: i32) -> (i32, i32) {
    %c0_i32 = arith.constant 0 : i32
    %c0_i32_0 = arith.constant 0 : i32
    %c0_i32_1 = arith.constant 0 : i32
    return %c0_i32, %c0_i32_0 : i32, i32
  }
  func.func @transform_7(%arg0: i32) -> (i32, i32) {
    %c0_i32 = arith.constant 0 : i32
    %c0_i32_0 = arith.constant 0 : i32
    %c0_i32_1 = arith.constant 0 : i32
    return %c0_i32, %c0_i32_0 : i32, i32
  }
  func.func @transform_8(%arg0: i32) -> (i32, i32) {
    %c0_i32 = arith.constant 0 : i32
    %c0_i32_0 = arith.constant 0 : i32
    %c0_i32_1 = arith.constant 0 : i32
    return %c0_i32, %c0_i32_0 : i32, i32
  }
  func.func @transform_9(%arg0: i32) -> (i32, i32, i32) {
    %c0_i32 = arith.constant 0 : i32
    %c0_i32_0 = arith.constant 0 : i32
    %c0_i32_1 = arith.constant 0 : i32
    return %arg0, %c0_i32, %c0_i32_0 : i32, i32, i32
  }
}

module attributes {stable_mosaic.version = 11 : i64} {
  func.func @discriminator_kernel(%arg0: i32, %arg1: memref<16x64xbf16, #tpu.memory_space<vmem>>, %arg2: memref<64x1024xbf16, #tpu.memory_space<vmem>>, %arg3: memref<1x1024xf32, #tpu.memory_space<vmem>>, %arg4: memref<1024x512xbf16, #tpu.memory_space<vmem>>, %arg5: memref<1x512xf32, #tpu.memory_space<vmem>>, %arg6: memref<512x256xbf16, #tpu.memory_space<vmem>>, %arg7: memref<1x256xf32, #tpu.memory_space<vmem>>, %arg8: memref<1x256xf32, #tpu.memory_space<vmem>>, %arg9: memref<1x1xf32, #tpu.memory_space<vmem>>, %arg10: memref<1x1x16xf32, #tpu.memory_space<vmem>>) attributes {dimension_semantics = [#tpu.dimension_semantics<parallel>], iteration_bounds = array<i64: 1>, scalar_prefetch = 0 : i64, scratch_operands = 0 : i64, tpu.core_type = #tpu.core_type<tc>, window_params = [{transform_indices = @transform_0, window_bounds = array<i64: 16, 64>}, {pipeline_mode = #tpu.pipeline_mode<synchronous>, transform_indices = @transform_1, window_bounds = array<i64: 64, 1024>}, {pipeline_mode = #tpu.pipeline_mode<synchronous>, transform_indices = @transform_2, window_bounds = array<i64: 1, 1024>}, {pipeline_mode = #tpu.pipeline_mode<synchronous>, transform_indices = @transform_3, window_bounds = array<i64: 1024, 512>}, {pipeline_mode = #tpu.pipeline_mode<synchronous>, transform_indices = @transform_4, window_bounds = array<i64: 1, 512>}, {pipeline_mode = #tpu.pipeline_mode<synchronous>, transform_indices = @transform_5, window_bounds = array<i64: 512, 256>}, {pipeline_mode = #tpu.pipeline_mode<synchronous>, transform_indices = @transform_6, window_bounds = array<i64: 1, 256>}, {pipeline_mode = #tpu.pipeline_mode<synchronous>, transform_indices = @transform_7, window_bounds = array<i64: 1, 256>}, {pipeline_mode = #tpu.pipeline_mode<synchronous>, transform_indices = @transform_8, window_bounds = array<i64: 1, 1>}, {transform_indices = @transform_9, window_bounds = array<i64: 1, 1, 16>}]} {
    %c0 = arith.constant 0 : index
    %c0_0 = arith.constant 0 : index
    %0 = vector.load %arg1[%c0, %c0_0] : memref<16x64xbf16, #tpu.memory_space<vmem>>, vector<16x64xbf16>
    %c0_1 = arith.constant 0 : index
    %c0_2 = arith.constant 0 : index
    %1 = vector.load %arg2[%c0_1, %c0_2] : memref<64x1024xbf16, #tpu.memory_space<vmem>>, vector<64x1024xbf16>
    %cst = arith.constant dense<0.000000e+00> : vector<16x1024xf32>
    %2 = tpu.matmul %0, %1, %cst {dimension_numbers = #tpu.dot_dimension_numbers<[1], [0], [0], [1], [0, 0, 1, 1], [], []>} : vector<16x64xbf16>, vector<64x1024xbf16>, vector<16x1024xf32> -> vector<16x1024xf32>
    %c0_3 = arith.constant 0 : index
    %c0_4 = arith.constant 0 : index
    %3 = vector.load %arg3[%c0_3, %c0_4] : memref<1x1024xf32, #tpu.memory_space<vmem>>, vector<1x1024xf32>
    %4 = vector.broadcast %3 : vector<1x1024xf32> to vector<16x1024xf32>
    %5 = arith.addf %2, %4 : vector<16x1024xf32>
    %cst_5 = arith.constant 0.000000e+00 : f32
    %6 = vector.broadcast %cst_5 : f32 to vector<16x1024xf32>
    %7 = arith.cmpf ogt, %5, %6 : vector<16x1024xf32>
    %cst_6 = arith.constant 2.000000e-01 : f32
    %8 = vector.broadcast %cst_6 : f32 to vector<16x1024xf32>
    %9 = arith.mulf %8, %5 : vector<16x1024xf32>
    %10 = arith.select %7, %5, %9 : vector<16x1024xi1>, vector<16x1024xf32>
    %11 = arith.truncf %10 : vector<16x1024xf32> to vector<16x1024xbf16>
    %c0_7 = arith.constant 0 : index
    %c0_8 = arith.constant 0 : index
    %12 = vector.load %arg4[%c0_7, %c0_8] : memref<1024x512xbf16, #tpu.memory_space<vmem>>, vector<1024x512xbf16>
    %cst_9 = arith.constant dense<0.000000e+00> : vector<16x512xf32>
    %13 = tpu.matmul %11, %12, %cst_9 {dimension_numbers = #tpu.dot_dimension_numbers<[1], [0], [0], [1], [0, 0, 1, 1], [], []>} : vector<16x1024xbf16>, vector<1024x512xbf16>, vector<16x512xf32> -> vector<16x512xf32>
    %c0_10 = arith.constant 0 : index
    %c0_11 = arith.constant 0 : index
    %14 = vector.load %arg5[%c0_10, %c0_11] : memref<1x512xf32, #tpu.memory_space<vmem>>, vector<1x512xf32>
    %15 = vector.broadcast %14 : vector<1x512xf32> to vector<16x512xf32>
    %16 = arith.addf %13, %15 : vector<16x512xf32>
    %cst_12 = arith.constant 0.000000e+00 : f32
    %17 = vector.broadcast %cst_12 : f32 to vector<16x512xf32>
    %18 = arith.cmpf ogt, %16, %17 : vector<16x512xf32>
    %cst_13 = arith.constant 2.000000e-01 : f32
    %19 = vector.broadcast %cst_13 : f32 to vector<16x512xf32>
    %20 = arith.mulf %19, %16 : vector<16x512xf32>
    %21 = arith.select %18, %16, %20 : vector<16x512xi1>, vector<16x512xf32>
    %22 = arith.truncf %21 : vector<16x512xf32> to vector<16x512xbf16>
    %c0_14 = arith.constant 0 : index
    %c0_15 = arith.constant 0 : index
    %23 = vector.load %arg6[%c0_14, %c0_15] : memref<512x256xbf16, #tpu.memory_space<vmem>>, vector<512x256xbf16>
    %cst_16 = arith.constant dense<0.000000e+00> : vector<16x256xf32>
    %24 = tpu.matmul %22, %23, %cst_16 {dimension_numbers = #tpu.dot_dimension_numbers<[1], [0], [0], [1], [0, 0, 1, 1], [], []>} : vector<16x512xbf16>, vector<512x256xbf16>, vector<16x256xf32> -> vector<16x256xf32>
    %c0_17 = arith.constant 0 : index
    %c0_18 = arith.constant 0 : index
    %25 = vector.load %arg7[%c0_17, %c0_18] : memref<1x256xf32, #tpu.memory_space<vmem>>, vector<1x256xf32>
    %26 = vector.broadcast %25 : vector<1x256xf32> to vector<16x256xf32>
    %27 = arith.addf %24, %26 : vector<16x256xf32>
    %cst_19 = arith.constant 0.000000e+00 : f32
    %28 = vector.broadcast %cst_19 : f32 to vector<16x256xf32>
    %29 = arith.cmpf ogt, %27, %28 : vector<16x256xf32>
    %cst_20 = arith.constant 2.000000e-01 : f32
    %30 = vector.broadcast %cst_20 : f32 to vector<16x256xf32>
    %31 = arith.mulf %30, %27 : vector<16x256xf32>
    %32 = arith.select %29, %27, %31 : vector<16x256xi1>, vector<16x256xf32>
    %c0_21 = arith.constant 0 : index
    %c0_22 = arith.constant 0 : index
    %33 = vector.load %arg8[%c0_21, %c0_22] : memref<1x256xf32, #tpu.memory_space<vmem>>, vector<1x256xf32>
    %34 = vector.broadcast %33 : vector<1x256xf32> to vector<16x256xf32>
    %35 = arith.mulf %32, %34 : vector<16x256xf32>
    %cst_23 = arith.constant dense<0.000000e+00> : vector<16xf32>
    %36 = vector.multi_reduction <add>, %35, %cst_23 [1] : vector<16x256xf32> to vector<16xf32>
    %37 = vector.shape_cast %36 : vector<16xf32> to vector<16x1xf32>
    %c0_24 = arith.constant 0 : index
    %c0_25 = arith.constant 0 : index
    %38 = vector.load %arg9[%c0_24, %c0_25] : memref<1x1xf32, #tpu.memory_space<vmem>>, vector<1x1xf32>
    %39 = vector.broadcast %38 : vector<1x1xf32> to vector<16x1xf32>
    %40 = arith.addf %37, %39 : vector<16x1xf32>
    %41 = vector.shape_cast %40 : vector<16x1xf32> to vector<1x1x16xf32>
    %c0_26 = arith.constant 0 : index
    %c0_27 = arith.constant 0 : index
    %c0_28 = arith.constant 0 : index
    %42 = vector.load %arg10[%c0_26, %c0_27, %c0_28] : memref<1x1x16xf32, #tpu.memory_space<vmem>>, vector<1x1x16xf32>
    tpu.vector_store %arg10[%c0_26, %c0_27, %c0_28], %41 {strides = array<i32>} : memref<1x1x16xf32, #tpu.memory_space<vmem>>, vector<1x1x16xf32>,
    return
  }
  func.func @transform_0(%arg0: i32) -> (i32, i32) {
    %c0_i32 = arith.constant 0 : i32
    %c0_i32_0 = arith.constant 0 : i32
    return %arg0, %c0_i32 : i32, i32
  }
  func.func @transform_1(%arg0: i32) -> (i32, i32) {
    %c0_i32 = arith.constant 0 : i32
    %c0_i32_0 = arith.constant 0 : i32
    %c0_i32_1 = arith.constant 0 : i32
    return %c0_i32, %c0_i32_0 : i32, i32
  }
  func.func @transform_2(%arg0: i32) -> (i32, i32) {
    %c0_i32 = arith.constant 0 : i32
    %c0_i32_0 = arith.constant 0 : i32
    %c0_i32_1 = arith.constant 0 : i32
    return %c0_i32, %c0_i32_0 : i32, i32
  }
  func.func @transform_3(%arg0: i32) -> (i32, i32) {
    %c0_i32 = arith.constant 0 : i32
    %c0_i32_0 = arith.constant 0 : i32
    %c0_i32_1 = arith.constant 0 : i32
    return %c0_i32, %c0_i32_0 : i32, i32
  }
  func.func @transform_4(%arg0: i32) -> (i32, i32) {
    %c0_i32 = arith.constant 0 : i32
    %c0_i32_0 = arith.constant 0 : i32
    %c0_i32_1 = arith.constant 0 : i32
    return %c0_i32, %c0_i32_0 : i32, i32
  }
  func.func @transform_5(%arg0: i32) -> (i32, i32) {
    %c0_i32 = arith.constant 0 : i32
    %c0_i32_0 = arith.constant 0 : i32
    %c0_i32_1 = arith.constant 0 : i32
    return %c0_i32, %c0_i32_0 : i32, i32
  }
  func.func @transform_6(%arg0: i32) -> (i32, i32) {
    %c0_i32 = arith.constant 0 : i32
    %c0_i32_0 = arith.constant 0 : i32
    %c0_i32_1 = arith.constant 0 : i32
    return %c0_i32, %c0_i32_0 : i32, i32
  }
  func.func @transform_7(%arg0: i32) -> (i32, i32) {
    %c0_i32 = arith.constant 0 : i32
    %c0_i32_0 = arith.constant 0 : i32
    %c0_i32_1 = arith.constant 0 : i32
    return %c0_i32, %c0_i32_0 : i32, i32
  }
  func.func @transform_8(%arg0: i32) -> (i32, i32) {
    %c0_i32 = arith.constant 0 : i32
    %c0_i32_0 = arith.constant 0 : i32
    %c0_i32_1 = arith.constant 0 : i32
    return %c0_i32, %c0_i32_0 : i32, i32
  }
  func.func @transform_9(%arg0: i32) -> (i32, i32, i32) {
    %c0_i32 = arith.constant 0 : i32
    %c0_i32_0 = arith.constant 0 : i32
    %c0_i32_1 = arith.constant 0 : i32
    return %arg0, %c0_i32, %c0_i32_0 : i32, i32, i32
  }
}

</mosaic_0001>

<bundles_post_ra>
// kernel: tpu_custom_call.1
= control target key start
LH: loop header
LB: loop body
LE: loop exit
PB: predicated region body
PF: predicated region fallthrough
CT: control target
= control target key end

     0   :  { %s5297_s0 = inlined_call_operand.hbm [shape: bf16[16,64], index: 0, kind: input, shape index: {}]   ;;  %s5298_s1 = inlined_call_operand.hbm [shape: bf16[64,1024], index: 1, kind: input, shape index: {}]   ;;  %s5299_s2 = inlined_call_operand.hbm [shape: f32[1,1024], index: 2, kind: input, shape index: {}]   ;;  %s5300_s3 = inlined_call_operand.hbm [shape: bf16[1024,512], index: 3, kind: input, shape index: {}]   ;;  %s5301_s4 = inlined_call_operand.vmem [shape: f32[1,512], index: 4, kind: input, shape index: {}]   ;;  %s5302_s5 = inlined_call_operand.hbm [shape: bf16[512,256], index: 5, kind: input, shape index: {}]   ;;  %s5303_s6 = inlined_call_operand.vmem [shape: f32[1,256], index: 6, kind: input, shape index: {}]   ;;  %s5304_s7 = inlined_call_operand.vmem [shape: f32[1,256], index: 7, kind: input, shape index: {}]   ;;  %s5305_s8 = inlined_call_operand.<no memory space> [shape: f32[1,1], index: 8, kind: input, shape index: {}]   ;;  %s5306_s9 = inlined_call_operand.hbm [shape: f32[1,1,16], index: 9, kind: output, shape index: {}]  }
   0x1   :  { %v14_v0 = vstv %s5305_s8 }
   0x2   :  { %15 = vst [vmem:[#allocation2] sm:$0x1] %v14_v0 }
   0x3   :  { %16 = vsyncpa [#allocation4], 0 }
   0x4   :  { %17 = vsyncpa [#allocation7], 0 }
   0x5   :  { %18 = vsyncpa [#allocation10], 0  ;;  %s37_s13 = sshll.u32 %s5298_s1, 4  ;;  %s38_s13 = int_to_ptr.hbm [resolvable:$true] %s37_s13 }
   0x6   :  { %19 = vsyncpa [#allocation5], 0  ;;  %s5039_s14 = smov [#allocation6]   ;;  %s61_s18 = sshll.u32 %s5300_s3, 4  ;;  %s62_s18 = int_to_ptr.hbm [resolvable:$true] %s61_s18 }
   0x7   :  { %s39_s15 = sshll.u32 %s5039_s14, 4  ;;  %s5040_s19 = smov 512   ;;  %s40_s15 = int_to_ptr.vmem [resolvable:$true] %s39_s15 }
   0x8   :  { %s5041_s20 = smov 32   ;;  %s5042_s8 = smov [#allocation9]  }
   0x9   :  { %45 = dma.hbm_to_vmem [thread:$0]  %s38_s13, 4096, %s40_s15, [#allocation7], %s5040_s19, %s5040_s19, %s5041_s20  }
   0xa   :  { %s63_s21 = sshll.u32 %s5042_s8, 4  ;;  %s5043_s22 = smov 256   ;;  %s64_s21 = int_to_ptr.vmem [resolvable:$true] %s63_s21 }
   0xb   :  { %s5044_s23 = smov 16   ;;  %s24_s25 = sshll.u32 %s5297_s0, 4  ;;  %s25_s25 = int_to_ptr.hbm [resolvable:$true] %s24_s25 }
   0xc   :  { %69 = dma.hbm_to_vmem [thread:$0]  %s62_s18, 32768, %s64_s21, [#allocation10], %s5043_s22, %s5043_s22, %s5044_s23  }
   0xd   :  { %s5045_s26 = smov [#allocation3]   ;;  %s51_s29 = sshll.u32 %s5299_s2, 4  ;;  %s52_s29 = int_to_ptr.hbm [resolvable:$true] %s51_s29 }
   0xe   :  { %s26_s27 = sshll.u32 %s5045_s26, 4  ;;  %s5046_s30 = smov 64   ;;  %s27_s27 = int_to_ptr.vmem [resolvable:$true] %s26_s27 }
   0xf   :  { %s5047_s10 = smov 4   ;;  %s5048_s11 = smov [#allocation8]  }
  0x10   :  { %32 = dma.hbm_to_vmem [thread:$0]  %s25_s25, 128, %s27_s27, [#allocation4], %s5046_s30, %s5046_s30, %s5047_s10  }
  0x11   :  { %s53_s12 = sshll.u32 %s5048_s11, 4  ;;  %s76_s15 = sshll.u32 %s5302_s5, 4  ;;  %s54_s12 = int_to_ptr.vmem [resolvable:$true] %s53_s12  ;;  %s77_s15 = int_to_ptr.hbm [resolvable:$true] %s76_s15 }
  0x12   :  { %56 = dma.hbm_to_vmem [thread:$0]  %s52_s29, 128, %s54_s12, [#allocation7]  }
  0x13   :  { %s5049_s0 = smov [#allocation11]   ;;  %s5050_s17 = smov 128  }
  0x14   :  { %s78_s16 = sshll.u32 %s5049_s0, 4  ;;  %s5051_s18 = smov 8   ;;  %s79_s16 = int_to_ptr.vmem [resolvable:$true] %s78_s16 }
  0x15   :  { %84 = dma.hbm_to_vmem [thread:$0]  %s77_s15, 8192, %s79_s16, [#allocation10], %s5050_s17, %s5050_s17, %s5051_s18  }
  0x16   :  { %5031 = dma.done.wait [#allocation4], 128  }
  0x17   :  { %5032 = vsyncadd [#allocation4], 4294967168 }
  0x18   :  { %5033 = dma.done.wait [#allocation7], 4224  }
  0x19   :  { %5034 = vsyncadd [#allocation7], 4294963072 }
  0x1a   :  { %5035 = dma.done.wait [#allocation10], 40960  }
  0x1b   :  { %5036 = vsyncadd [#allocation10], 4294926336  ;;  %v3198_v1 = vld [vmem:[#allocation6 + $0xc0] sm:$0xf]  ;;  %v4541_v3 = vld [vmem:[#allocation6 + $0xc4] sm:$0xf] }
  0x1c   :  { %v4545_v2 = vld [vmem:[#allocation6 + $0xdc] sm:$0xf0]  ;;  %v3200_v5 = vld [vmem:[#allocation6 + $0xe0] sm:$0xf0]  ;;  %v3206_v6 = vld [vmem:[#allocation6 + $0xc8] sm:$0xf] }
  0x1d   :  { %v3199_v4 = vor.u32 %v4545_v2, %v3198_v1  ;;  %v4546_v7 = vld [vmem:[#allocation6 + $0xe4] sm:$0xf0]  ;;  %v3203_v8 = vor.u32 %v4541_v3, %v3200_v5  ;;  %v4542_v10 = vld [vmem:[#allocation6 + $0xcc] sm:$0xf]  ;;  %v3166_v12 = vld [vmem:[#allocation6 + $0x80] sm:$0xf] }
  0x1e   :  { %v3207_v9 = vor.u32 %v4546_v7, %v3206_v6  ;;  %v3208_v11 = vld [vmem:[#allocation6 + $0xe8] sm:$0xf0]  ;;  %v4537_v14 = vld [vmem:[#allocation6 + $0x9c] sm:$0xf0]  ;;  %v4533_v15 = vld [vmem:[#allocation6 + $0x84] sm:$0xf] }
  0x1f   :  { %337 = vmatpush.bf16.msra.mxu0 %v3199_v4  ;;  %v3211_v13 = vor.u32 %v4542_v10, %v3208_v11  ;;  %v3168_v16 = vld [vmem:[#allocation6 + $0xa0] sm:$0xf0]  ;;  %351 = vmatpush.bf16.msra.mxu1 %v3203_v8  ;;  %v3167_v17 = vor.u32 %v4537_v14, %v3166_v12  ;;  %v3174_v19 = vld [vmem:[#allocation6 + $0x88] sm:$0xf]  ;;  %v4534_v21 = vld [vmem:[#allocation6 + $0x8c] sm:$0xf] }
  0x20   :  { %365 = vmatpush.bf16.msra.mxu2 %v3207_v9  ;;  %v3171_v18 = vor.u32 %v4533_v15, %v3168_v16  ;;  %v4538_v20 = vld [vmem:[#allocation6 + $0xa4] sm:$0xf0]  ;;  %v3176_v23 = vld [vmem:[#allocation6 + $0xa8] sm:$0xf0]  ;;  %v3134_v24 = vld [vmem:[#allocation6 + $0x40] sm:$0xf] }
  0x21   :  { %379 = vmatpush.bf16.msra.mxu3 %v3211_v13  ;;  %v3175_v22 = vor.u32 %v4538_v20, %v3174_v19  ;;  %v4529_v25 = vld [vmem:[#allocation6 + $0x5c] sm:$0xf0]  ;;  %v3179_v26 = vor.u32 %v4534_v21, %v3176_v23  ;;  %v4525_v27 = vld [vmem:[#allocation6 + $0x44] sm:$0xf]  ;;  %v3142_v29 = vld [vmem:[#allocation6 + $0x48] sm:$0xf] }
  0x22   :  { %v3136_v28 = vld [vmem:[#allocation6 + $0x60] sm:$0xf0]  ;;  %v3135_v30 = vor.u32 %v4529_v25, %v3134_v24  ;;  %v4530_v31 = vld [vmem:[#allocation6 + $0x64] sm:$0xf0]  ;;  %v4526_v32 = vld [vmem:[#allocation6 + $0x4c] sm:$0xf] }
  0x23   :  { %338 = vmatpush.bf16.msra.mxu0 %v3167_v17  ;;  %v3144_v33 = vld [vmem:[#allocation6 + $0x68] sm:$0xf0]  ;;  %352 = vmatpush.bf16.msra.mxu1 %v3171_v18  ;;  %v3139_v34 = vor.u32 %v4525_v27, %v3136_v28  ;;  %v3143_v35 = vor.u32 %v4530_v31, %v3142_v29  ;;  %v3102_v36 = vld [vmem:[#allocation6] sm:$0xf]  ;;  %v4517_v38 = vld [vmem:[#allocation6 + $0x4] sm:$0xf] }
  0x24   :  { %366 = vmatpush.bf16.msra.mxu2 %v3175_v22  ;;  %v4521_v37 = vld [vmem:[#allocation6 + $0x1c] sm:$0xf0]  ;;  %v3147_v39 = vor.u32 %v4526_v32, %v3144_v33  ;;  %v3104_v40 = vld [vmem:[#allocation6 + $0x20] sm:$0xf0]  ;;  %v3110_v41 = vld [vmem:[#allocation6 + $0x8] sm:$0xf] }
  0x25   :  { %380 = vmatpush.bf16.msra.mxu3 %v3179_v26  ;;  %v4522_v42 = vld [vmem:[#allocation6 + $0x24] sm:$0xf0]  ;;  %v4518_v43 = vld [vmem:[#allocation6 + $0xc] sm:$0xf]  ;;  %v3103_v45 = vor.u32 %v4521_v37, %v3102_v36  ;;  %v3214_v46 = vld [vmem:[#allocation6 + $0xd0] sm:$0xf]  ;;  %v3107_v49 = vor.u32 %v4517_v38, %v3104_v40 }
  0x26   :  { %v3112_v44 = vld [vmem:[#allocation6 + $0x28] sm:$0xf0]  ;;  %v4547_v47 = vld [vmem:[#allocation6 + $0xec] sm:$0xf0]  ;;  %v4543_v48 = vld [vmem:[#allocation6 + $0xd4] sm:$0xf]  ;;  %v3111_v50 = vor.u32 %v4522_v42, %v3110_v41 }
  0x27   :  { %339 = vmatpush.bf16.msra.mxu0 %v3135_v30  ;;  %353 = vmatpush.bf16.msra.mxu1 %v3139_v34  ;;  %v5122_v51 = vld [vmem:[#allocation3] sm:$0xff]  ;;  %v3216_v52 = vld [vmem:[#allocation6 + $0xf0] sm:$0xf0]  ;;  %v3115_v53 = vor.u32 %v4518_v43, %v3112_v44  ;;  %v3215_v54 = vor.u32 %v4547_v47, %v3214_v46  ;;  %v3182_v60 = vld [vmem:[#allocation6 + $0x90] sm:$0xf]  ;;  %vm329_vm0 = vcmask 523264  }
  0x28   :  { %367 = vmatpush.bf16.msra.mxu2 %v3143_v35  ;;  %v3222_v55 = vld [vmem:[#allocation6 + $0xd8] sm:$0xf]  ;;  %v4544_v57 = vld [vmem:[#allocation6 + $0xdc] sm:$0xf]  ;;  %v3219_v58 = vor.u32 %v4543_v48, %v3216_v52  ;;  %v4539_v61 = vld [vmem:[#allocation6 + $0xac] sm:$0xf0] }
  0x29   :  { %381 = vmatpush.bf16.msra.mxu3 %v3147_v39  ;;  %v4548_v56 = vld [vmem:[#allocation6 + $0xf4] sm:$0xf0]  ;;  %v3224_v59 = vld [vmem:[#allocation6 + $0xf8] sm:$0xf0]  ;;  %v4535_v62 = vld [vmem:[#allocation6 + $0x94] sm:$0xf]  ;;  %v3183_v2 = vor.u32 %v4539_v61, %v3182_v60 }
  0x2a   :  { %v3184_v63 = vld [vmem:[#allocation6 + $0xb0] sm:$0xf0]  ;;  %v3223_v0 = vor.u32 %v4548_v56, %v3222_v55  ;;  %v3227_v1 = vor.u32 %v4544_v57, %v3224_v59  ;;  %v3190_v3 = vld [vmem:[#allocation6 + $0x98] sm:$0xf]  ;;  %v4536_v5 = vld [vmem:[#allocation6 + $0x9c] sm:$0xf] }
  0x2b   :  { %340 = vmatpush.bf16.msra.mxu0 %v3103_v45  ;;  %354 = vmatpush.bf16.msra.mxu1 %v3107_v49  ;;  %v4540_v4 = vld [vmem:[#allocation6 + $0xb4] sm:$0xf0]  ;;  %v3187_v6 = vor.u32 %v4535_v62, %v3184_v63  ;;  %v3192_v7 = vld [vmem:[#allocation6 + $0xb8] sm:$0xf0]  ;;  %v3150_v8 = vld [vmem:[#allocation6 + $0x50] sm:$0xf] }
  0x2c   :  { %368 = vmatpush.bf16.msra.mxu2 %v3111_v50  ;;  %v4531_v9 = vld [vmem:[#allocation6 + $0x6c] sm:$0xf0]  ;;  %v4527_v10 = vld [vmem:[#allocation6 + $0x54] sm:$0xf]  ;;  %v3191_v12 = vor.u32 %v4540_v4, %v3190_v3  ;;  %v3158_v13 = vld [vmem:[#allocation6 + $0x58] sm:$0xf]  ;;  %v3195_v14 = vor.u32 %v4536_v5, %v3192_v7 }
  0x2d   :  { %382 = vmatpush.bf16.msra.mxu3 %v3115_v53  ;;  %v3152_v11 = vld [vmem:[#allocation6 + $0x70] sm:$0xf0]  ;;  %v3151_v15 = vor.u32 %v4531_v9, %v3150_v8  ;;  %v4532_v16 = vld [vmem:[#allocation6 + $0x74] sm:$0xf0]  ;;  %v4528_v17 = vld [vmem:[#allocation6 + $0x5c] sm:$0xf] }
  0x2e   :  { %3228 = vmatmul.msk.bf16.vlgmr.msra.gmra.mxu0 %vm329_vm0, %v5122_v51  ;;  %3229 = vmatmul.msk.bf16.vlgmr.msra.gmra.mxu1 %vm329_vm0, %v5122_v51  ;;  %v3160_v18 = vld [vmem:[#allocation6 + $0x78] sm:$0xf0]  ;;  %v3155_v19 = vor.u32 %v4527_v10, %v3152_v11  ;;  %v3118_v20 = vld [vmem:[#allocation6 + $0x10] sm:$0xf]  ;;  %v4519_v22 = vld [vmem:[#allocation6 + $0x14] sm:$0xf]  ;;  %v3159_v26 = vor.u32 %v4532_v16, %v3158_v13 }
  0x2f   :  { %393 = vmatpush.bf16.msrb.mxu0 %v3215_v54  ;;  %407 = vmatpush.bf16.msrb.mxu1 %v3219_v58  ;;  %v4523_v21 = vld [vmem:[#allocation6 + $0x2c] sm:$0xf0]  ;;  %v3120_v23 = vld [vmem:[#allocation6 + $0x30] sm:$0xf0]  ;;  %v3350_v24 = vld [vmem:[#allocation9 + $0xe0] sm:$0xf]  ;;  %v3163_v29 = vor.u32 %v4528_v17, %v3160_v18 }
  0x30   :  { %3230 = vmatmul.msk.bf16.vlgmr.msra.gmra.mxu2 %vm329_vm0, %v5122_v51  ;;  %3231 = vmatmul.msk.bf16.vlgmr.msra.gmra.mxu3 %vm329_vm0, %v5122_v51  ;;  %v4579_v25 = vld [vmem:[#allocation9 + $0xec] sm:$0xf0]  ;;  %v3478_v27 = vld [vmem:[#allocation9 + $0x1e0] sm:$0xf]  ;;  %v3119_v30 = vor.u32 %v4523_v21, %v3118_v20  ;;  %v4520_v33 = vld [vmem:[#allocation6 + $0x1c] sm:$0xf]  ;;  %v3123_v34 = vor.u32 %v4519_v22, %v3120_v23 }
  0x31   :  { %421 = vmatpush.bf16.msrb.mxu2 %v3223_v0  ;;  %435 = vmatpush.bf16.msrb.mxu3 %v3227_v1  ;;  %v4611_v28 = vld [vmem:[#allocation9 + $0x1ec] sm:$0xf0]  ;;  %v3128_v35 = vld [vmem:[#allocation6 + $0x38] sm:$0xf0]  ;;  %v3351_v36 = vor.u32 %v4579_v25, %v3350_v24  ;;  %v3606_v37 = vld [vmem:[#allocation9 + $0x2e0] sm:$0xf] }
  0x32   :  { %v3126_v31 = vld [vmem:[#allocation6 + $0x18] sm:$0xf]  ;;  %v3479_v39 = vor.u32 %v4611_v28, %v3478_v27  ;;  %v3734_v40 = vld [vmem:[#allocation9 + $0x3e0] sm:$0xf]  ;;  %v3131_v43 = vor.u32 %v4520_v33, %v3128_v35  ;;  %s3084_s23 = sshll.u32 %s5306_s9, 4  ;;  %s3085_s23 = int_to_ptr.hbm [resolvable:$true] %s3084_s23 }
  0x33   :  { %394 = vmatpush.bf16.msrb.mxu0 %v3183_v2  ;;  %408 = vmatpush.bf16.msrb.mxu1 %v3187_v6  ;;  %v4524_v32 = vld [vmem:[#allocation6 + $0x34] sm:$0xf0]  ;;  %v3334_v44 = vld [vmem:[#allocation9 + $0xc0] sm:$0xf] }
  0x34   :  { %v4643_v38 = vld [vmem:[#allocation9 + $0x2ec] sm:$0xf0]  ;;  %v3127_v42 = vor.u32 %v4524_v32, %v3126_v31  ;;  %v3462_v46 = vld [vmem:[#allocation9 + $0x1c0] sm:$0xf] }
  0x35   :  { %422 = vmatpush.bf16.msrb.mxu2 %v3191_v12  ;;  %436 = vmatpush.bf16.msrb.mxu3 %v3195_v14  ;;  %v4675_v41 = vld [vmem:[#allocation9 + $0x3ec] sm:$0xf0]  ;;  %v3607_v47 = vor.u32 %v4643_v38, %v3606_v37  ;;  %v3590_v50 = vld [vmem:[#allocation9 + $0x2c0] sm:$0xf] }
  0x36   :  { %v4575_v45 = vld [vmem:[#allocation9 + $0xcc] sm:$0xf0]  ;;  %v3735_v49 = vor.u32 %v4675_v41, %v3734_v40  ;;  %v3718_v53 = vld [vmem:[#allocation9 + $0x3c0] sm:$0xf] }
  0x37   :  { %395 = vmatpush.bf16.msrb.mxu0 %v3151_v15  ;;  %409 = vmatpush.bf16.msrb.mxu1 %v3155_v19  ;;  %v4607_v48 = vld [vmem:[#allocation9 + $0x1cc] sm:$0xf0]  ;;  %v3335_v55 = vor.u32 %v4575_v45, %v3334_v44  ;;  %v3318_v57 = vld [vmem:[#allocation9 + $0xa0] sm:$0xf] }
  0x38   :  { %v4639_v52 = vld [vmem:[#allocation9 + $0x2cc] sm:$0xf0]  ;;  %v3463_v56 = vor.u32 %v4607_v48, %v3462_v46  ;;  %v3446_v59 = vld [vmem:[#allocation9 + $0x1a0] sm:$0xf] }
  0x39   :  { %423 = vmatpush.bf16.msrb.mxu2 %v3159_v26  ;;  %437 = vmatpush.bf16.msrb.mxu3 %v3163_v29  ;;  %v4671_v54 = vld [vmem:[#allocation9 + $0x3cc] sm:$0xf0]  ;;  %v3591_v60 = vor.u32 %v4639_v52, %v3590_v50  ;;  %v3574_v63 = vld [vmem:[#allocation9 + $0x2a0] sm:$0xf] }
  0x3a   :  { %v4571_v58 = vld [vmem:[#allocation9 + $0xac] sm:$0xf0]  ;;  %v3719_v62 = vor.u32 %v4671_v54, %v3718_v53  ;;  %v3702_v1 = vld [vmem:[#allocation9 + $0x3a0] sm:$0xf] }
  0x3b   :  { %396 = vmatpush.bf16.msrb.mxu0 %v3119_v30  ;;  %410 = vmatpush.bf16.msrb.mxu1 %v3123_v34  ;;  %v4603_v61 = vld [vmem:[#allocation9 + $0x1ac] sm:$0xf0]  ;;  %v3319_v3 = vor.u32 %v4571_v58, %v3318_v57  ;;  %v3302_v5 = vld [vmem:[#allocation9 + $0x80] sm:$0xf] }
  0x3c   :  { %v4635_v0 = vld [vmem:[#allocation9 + $0x2ac] sm:$0xf0]  ;;  %v3447_v4 = vor.u32 %v4603_v61, %v3446_v59  ;;  %v3430_v7 = vld [vmem:[#allocation9 + $0x180] sm:$0xf] }
  0x3d   :  { %424 = vmatpush.bf16.msrb.mxu2 %v3127_v42  ;;  %438 = vmatpush.bf16.msrb.mxu3 %v3131_v43  ;;  %v4667_v2 = vld [vmem:[#allocation9 + $0x3ac] sm:$0xf0]  ;;  %v3575_v8 = vor.u32 %v4635_v0, %v3574_v63  ;;  %v3558_v11 = vld [vmem:[#allocation9 + $0x280] sm:$0xf] }
  0x3e   :  { %3232 = vmatmul.msk.bf16.vlgmr.msrb.gmra.mxu0 %vm329_vm0, %v5122_v51  ;;  %3233 = vmatmul.msk.bf16.vlgmr.msrb.gmra.mxu1 %vm329_vm0, %v5122_v51  ;;  %v4567_v6 = vld [vmem:[#allocation9 + $0x8c] sm:$0xf0]  ;;  %v3703_v10 = vor.u32 %v4667_v2, %v3702_v1  ;;  %v3686_v13 = vld [vmem:[#allocation9 + $0x380] sm:$0xf] }
  0x3f   :  { %2047 = vmatpush.bf16.msra.mxu0 %v3351_v36  ;;  %2061 = vmatpush.bf16.msra.mxu1 %v3479_v39  ;;  %v4599_v9 = vld [vmem:[#allocation9 + $0x18c] sm:$0xf0]  ;;  %v3303_v15 = vor.u32 %v4567_v6, %v3302_v5  ;;  %v3286_v16 = vld [vmem:[#allocation9 + $0x60] sm:$0xf] }
  0x40   :  { %3234 = vmatmul.msk.bf16.vlgmr.msrb.gmra.mxu2 %vm329_vm0, %v5122_v51  ;;  %3235 = vmatmul.msk.bf16.vlgmr.msrb.gmra.mxu3 %vm329_vm0, %v5122_v51  ;;  %v4631_v12 = vld [vmem:[#allocation9 + $0x28c] sm:$0xf0]  ;;  %v3431_v51 = vor.u32 %v4599_v9, %v3430_v7  ;;  %v3414_v18 = vld [vmem:[#allocation9 + $0x160] sm:$0xf] }
  0x41   :  { %2075 = vmatpush.bf16.msra.mxu2 %v3607_v47  ;;  %2089 = vmatpush.bf16.msra.mxu3 %v3735_v49  ;;  %v4663_v14 = vld [vmem:[#allocation9 + $0x38c] sm:$0xf0]  ;;  %v3559_v19 = vor.u32 %v4631_v12, %v3558_v11  ;;  %v3542_v22 = vld [vmem:[#allocation9 + $0x260] sm:$0xf] }
  0x42   :  { %v4563_v17 = vld [vmem:[#allocation9 + $0x6c] sm:$0xf0]  ;;  %v3687_v21 = vor.u32 %v4663_v14, %v3686_v13  ;;  %v3670_v24 = vld [vmem:[#allocation9 + $0x360] sm:$0xf] }
  0x43   :  { %2048 = vmatpush.bf16.msra.mxu0 %v3335_v55  ;;  %2062 = vmatpush.bf16.msra.mxu1 %v3463_v56  ;;  %v4595_v20 = vld [vmem:[#allocation9 + $0x16c] sm:$0xf0]  ;;  %v3287_v26 = vor.u32 %v4563_v17, %v3286_v16  ;;  %v3270_v28 = vld [vmem:[#allocation9 + $0x40] sm:$0xf] }
  0x44   :  { %v4627_v23 = vld [vmem:[#allocation9 + $0x26c] sm:$0xf0]  ;;  %v3415_v27 = vor.u32 %v4595_v20, %v3414_v18  ;;  %v3398_v30 = vld [vmem:[#allocation9 + $0x140] sm:$0xf] }
  0x45   :  { %2076 = vmatpush.bf16.msra.mxu2 %v3591_v60  ;;  %2090 = vmatpush.bf16.msra.mxu3 %v3719_v62  ;;  %v4659_v25 = vld [vmem:[#allocation9 + $0x36c] sm:$0xf0]  ;;  %v3543_v31 = vor.u32 %v4627_v23, %v3542_v22  ;;  %v3526_v34 = vld [vmem:[#allocation9 + $0x240] sm:$0xf] }
  0x46   :  { %v4559_v29 = vld [vmem:[#allocation9 + $0x4c] sm:$0xf0]  ;;  %v3671_v33 = vor.u32 %v4659_v25, %v3670_v24  ;;  %v3654_v36 = vld [vmem:[#allocation9 + $0x340] sm:$0xf] }
  0x47   :  { %2049 = vmatpush.bf16.msra.mxu0 %v3319_v3  ;;  %2063 = vmatpush.bf16.msra.mxu1 %v3447_v4  ;;  %v4591_v32 = vld [vmem:[#allocation9 + $0x14c] sm:$0xf0]  ;;  %v3271_v38 = vor.u32 %v4559_v29, %v3270_v28  ;;  %v3254_v40 = vld [vmem:[#allocation9 + $0x20] sm:$0xf] }
  0x48   :  { %v4623_v35 = vld [vmem:[#allocation9 + $0x24c] sm:$0xf0]  ;;  %v3399_v39 = vor.u32 %v4591_v32, %v3398_v30  ;;  %v3382_v42 = vld [vmem:[#allocation9 + $0x120] sm:$0xf] }
  0x49   :  { %2077 = vmatpush.bf16.msra.mxu2 %v3575_v8  ;;  %2091 = vmatpush.bf16.msra.mxu3 %v3703_v10  ;;  %v4655_v37 = vld [vmem:[#allocation9 + $0x34c] sm:$0xf0]  ;;  %v3527_v43 = vor.u32 %v4623_v35, %v3526_v34  ;;  %v3510_v46 = vld [vmem:[#allocation9 + $0x220] sm:$0xf] }
  0x4a   :  { %v4555_v41 = vld [vmem:[#allocation9 + $0x2c] sm:$0xf0]  ;;  %v3655_v45 = vor.u32 %v4655_v37, %v3654_v36  ;;  %v3638_v48 = vld [vmem:[#allocation9 + $0x320] sm:$0xf] }
  0x4b   :  { %2050 = vmatpush.bf16.msra.mxu0 %v3303_v15  ;;  %2064 = vmatpush.bf16.msra.mxu1 %v3431_v51  ;;  %v4587_v44 = vld [vmem:[#allocation9 + $0x12c] sm:$0xf0]  ;;  %v3255_v50 = vor.u32 %v4555_v41, %v3254_v40  ;;  %v3238_v52 = vld [vmem:[#allocation9] sm:$0xf] }
  0x4c   :  { %v4619_v47 = vld [vmem:[#allocation9 + $0x22c] sm:$0xf0]  ;;  %v3383_v54 = vor.u32 %v4587_v44, %v3382_v42  ;;  %v3366_v55 = vld [vmem:[#allocation9 + $0x100] sm:$0xf] }
  0x4d   :  { %2078 = vmatpush.bf16.msra.mxu2 %v3559_v19  ;;  %2092 = vmatpush.bf16.msra.mxu3 %v3687_v21  ;;  %v4651_v49 = vld [vmem:[#allocation9 + $0x32c] sm:$0xf0]  ;;  %v3862_v57 = vld [vmem:[#allocation9 + $0x4e0] sm:$0xf]  ;;  %v3511_v58 = vor.u32 %v4619_v47, %v3510_v46 }
  0x4e   :  { %v4551_v53 = vld [vmem:[#allocation9 + $0xc] sm:$0xf0]  ;;  %v3990_v60 = vld [vmem:[#allocation9 + $0x5e0] sm:$0xf]  ;;  %v3639_v62 = vor.u32 %v4651_v49, %v3638_v48 }
  0x4f   :  { %2051 = vmatpush.bf16.msra.mxu0 %v3287_v26  ;;  %2065 = vmatpush.bf16.msra.mxu1 %v3415_v27  ;;  %v4583_v56 = vld [vmem:[#allocation9 + $0x10c] sm:$0xf0]  ;;  %v3494_v63 = vld [vmem:[#allocation9 + $0x200] sm:$0xf]  ;;  %v3239_v2 = vor.u32 %v4551_v53, %v3238_v52 }
  0x50   :  { %v4707_v59 = vld [vmem:[#allocation9 + $0x4ec] sm:$0xf0]  ;;  %v3622_v1 = vld [vmem:[#allocation9 + $0x300] sm:$0xf]  ;;  %v3367_v6 = vor.u32 %v4583_v56, %v3366_v55 }
  0x51   :  { %2079 = vmatpush.bf16.msra.mxu2 %v3543_v31  ;;  %2093 = vmatpush.bf16.msra.mxu3 %v3671_v33  ;;  %v4739_v61 = vld [vmem:[#allocation9 + $0x5ec] sm:$0xf0]  ;;  %v4118_v4 = vld [vmem:[#allocation9 + $0x6e0] sm:$0xf]  ;;  %v3863_v7 = vor.u32 %v4707_v59, %v3862_v57 }
  0x52   :  { %v4615_v0 = vld [vmem:[#allocation9 + $0x20c] sm:$0xf0]  ;;  %v4246_v8 = vld [vmem:[#allocation9 + $0x7e0] sm:$0xf]  ;;  %v3991_v10 = vor.u32 %v4739_v61, %v3990_v60 }
  0x53   :  { %2052 = vmatpush.bf16.msra.mxu0 %v3271_v38  ;;  %2066 = vmatpush.bf16.msra.mxu1 %v3399_v39  ;;  %v4647_v3 = vld [vmem:[#allocation9 + $0x30c] sm:$0xf0]  ;;  %v3846_v11 = vld [vmem:[#allocation9 + $0x4c0] sm:$0xf]  ;;  %v3495_v13 = vor.u32 %v4615_v0, %v3494_v63 }
  0x54   :  { %v4771_v5 = vld [vmem:[#allocation9 + $0x6ec] sm:$0xf0]  ;;  %v3974_v14 = vld [vmem:[#allocation9 + $0x5c0] sm:$0xf]  ;;  %v3623_v51 = vor.u32 %v4647_v3, %v3622_v1 }
  0x55   :  { %2080 = vmatpush.bf16.msra.mxu2 %v3527_v43  ;;  %2094 = vmatpush.bf16.msra.mxu3 %v3655_v45  ;;  %v4803_v9 = vld [vmem:[#allocation9 + $0x7ec] sm:$0xf0]  ;;  %v4119_v16 = vor.u32 %v4771_v5, %v4118_v4  ;;  %v4102_v18 = vld [vmem:[#allocation9 + $0x6c0] sm:$0xf] }
  0x56   :  { %v4703_v12 = vld [vmem:[#allocation9 + $0x4cc] sm:$0xf0]  ;;  %v4247_v17 = vor.u32 %v4803_v9, %v4246_v8  ;;  %v4230_v21 = vld [vmem:[#allocation9 + $0x7c0] sm:$0xf] }
  0x57   :  { %2053 = vmatpush.bf16.msra.mxu0 %v3255_v50  ;;  %2067 = vmatpush.bf16.msra.mxu1 %v3383_v54  ;;  %v4735_v15 = vld [vmem:[#allocation9 + $0x5cc] sm:$0xf0]  ;;  %v3847_v20 = vor.u32 %v4703_v12, %v3846_v11  ;;  %v3830_v24 = vld [vmem:[#allocation9 + $0x4a0] sm:$0xf] }
  0x58   :  { %v4767_v19 = vld [vmem:[#allocation9 + $0x6cc] sm:$0xf0]  ;;  %v3975_v23 = vor.u32 %v4735_v15, %v3974_v14  ;;  %v3958_v26 = vld [vmem:[#allocation9 + $0x5a0] sm:$0xf] }
  0x59   :  { %2081 = vmatpush.bf16.msra.mxu2 %v3511_v58  ;;  %2095 = vmatpush.bf16.msra.mxu3 %v3639_v62  ;;  %v4799_v22 = vld [vmem:[#allocation9 + $0x7cc] sm:$0xf0]  ;;  %v4103_v28 = vor.u32 %v4767_v19, %v4102_v18  ;;  %v3814_v32 = vld [vmem:[#allocation9 + $0x480] sm:$0xf] }
  0x5a   :  { %v4699_v25 = vld [vmem:[#allocation9 + $0x4ac] sm:$0xf0]  ;;  %v4231_v29 = vor.u32 %v4799_v22, %v4230_v21  ;;  %v3942_v34 = vld [vmem:[#allocation9 + $0x580] sm:$0xf] }
  0x5b   :  { %2054 = vmatpush.bf16.msra.mxu0 %v3239_v2  ;;  %2068 = vmatpush.bf16.msra.mxu1 %v3367_v6  ;;  %v4731_v27 = vld [vmem:[#allocation9 + $0x5ac] sm:$0xf0]  ;;  %v3831_v30 = vor.u32 %v4699_v25, %v3830_v24  ;;  %v4086_v38 = vld [vmem:[#allocation9 + $0x6a0] sm:$0xf] }
  0x5c   :  { %v3959_v31 = vor.u32 %v4731_v27, %v3958_v26  ;;  %v4695_v33 = vld [vmem:[#allocation9 + $0x48c] sm:$0xf0]  ;;  %v4214_v40 = vld [vmem:[#allocation9 + $0x7a0] sm:$0xf] }
  0x5d   :  { %2082 = vmatpush.bf16.msra.mxu2 %v3495_v13  ;;  %2096 = vmatpush.bf16.msra.mxu3 %v3623_v51  ;;  %v4727_v35 = vld [vmem:[#allocation9 + $0x58c] sm:$0xf0]  ;;  %v3815_v36 = vor.u32 %v4695_v33, %v3814_v32  ;;  %v3798_v44 = vld [vmem:[#allocation9 + $0x460] sm:$0xf] }
  0x5e   :  { %v3943_v37 = vor.u32 %v4727_v35, %v3942_v34  ;;  %v4763_v39 = vld [vmem:[#allocation9 + $0x6ac] sm:$0xf0]  ;;  %v3926_v46 = vld [vmem:[#allocation9 + $0x560] sm:$0xf]  ;;  %v5140_v34 = vld [vmem:[#allocation8] sm:$0xff] }
  0x5f   :  { %2103 = vmatpush.bf16.msrb.mxu0 %v3863_v7  ;;  %2117 = vmatpush.bf16.msrb.mxu1 %v3991_v10  ;;  %v4087_v41 = vor.u32 %v4763_v39, %v4086_v38  ;;  %v4795_v42 = vld [vmem:[#allocation9 + $0x7ac] sm:$0xf0]  ;;  %v4070_v50 = vld [vmem:[#allocation9 + $0x680] sm:$0xf] }
  0x60   :  { %v4215_v43 = vor.u32 %v4795_v42, %v4214_v40  ;;  %v4691_v45 = vld [vmem:[#allocation9 + $0x46c] sm:$0xf0]  ;;  %v4198_v53 = vld [vmem:[#allocation9 + $0x780] sm:$0xf] }
  0x61   :  { %2131 = vmatpush.bf16.msrb.mxu2 %v4119_v16  ;;  %2145 = vmatpush.bf16.msrb.mxu3 %v4247_v17  ;;  %v3799_v47 = vor.u32 %v4691_v45, %v3798_v44  ;;  %v4723_v48 = vld [vmem:[#allocation9 + $0x56c] sm:$0xf0]  ;;  %v3782_v57 = vld [vmem:[#allocation9 + $0x440] sm:$0xf] }
  0x62   :  { %v3927_v49 = vor.u32 %v4723_v48, %v3926_v46  ;;  %v4759_v52 = vld [vmem:[#allocation9 + $0x68c] sm:$0xf0]  ;;  %v3910_v60 = vld [vmem:[#allocation9 + $0x540] sm:$0xf] }
  0x63   :  { %2104 = vmatpush.bf16.msrb.mxu0 %v3847_v20  ;;  %2118 = vmatpush.bf16.msrb.mxu1 %v3975_v23  ;;  %v4071_v54 = vor.u32 %v4759_v52, %v4070_v50  ;;  %v4791_v55 = vld [vmem:[#allocation9 + $0x78c] sm:$0xf0]  ;;  %v4054_v63 = vld [vmem:[#allocation9 + $0x660] sm:$0xf]  ;;  %v4577_v50 = vld [vmem:[#allocation9 + $0xe4] sm:$0xf] }
  0x64   :  { %v4199_v56 = vor.u32 %v4791_v55, %v4198_v53  ;;  %v4687_v58 = vld [vmem:[#allocation9 + $0x44c] sm:$0xf0]  ;;  %v4182_v1 = vld [vmem:[#allocation9 + $0x760] sm:$0xf]  ;;  %v3352_v53 = vld [vmem:[#allocation9 + $0xf0] sm:$0xf0] }
  0x65   :  { %2132 = vmatpush.bf16.msrb.mxu2 %v4103_v28  ;;  %2146 = vmatpush.bf16.msrb.mxu3 %v4231_v29  ;;  %v3783_v59 = vor.u32 %v4687_v58, %v3782_v57  ;;  %v4719_v61 = vld [vmem:[#allocation9 + $0x54c] sm:$0xf0]  ;;  %v3766_v5 = vld [vmem:[#allocation9 + $0x420] sm:$0xf] }
  0x66   :  { %v3911_v62 = vor.u32 %v4719_v61, %v3910_v60  ;;  %v4755_v0 = vld [vmem:[#allocation9 + $0x66c] sm:$0xf0]  ;;  %v3894_v7 = vld [vmem:[#allocation9 + $0x520] sm:$0xf]  ;;  %v4573_v60 = vld [vmem:[#allocation9 + $0xc4] sm:$0xf] }
  0x67   :  { %2105 = vmatpush.bf16.msrb.mxu0 %v3831_v30  ;;  %2119 = vmatpush.bf16.msrb.mxu1 %v3959_v31  ;;  %v4055_v2 = vor.u32 %v4755_v0, %v4054_v63  ;;  %v4787_v3 = vld [vmem:[#allocation9 + $0x76c] sm:$0xf0]  ;;  %v4038_v11 = vld [vmem:[#allocation9 + $0x640] sm:$0xf]  ;;  %v3355_v0 = vor.u32 %v4577_v50, %v3352_v53  ;;  %v4597_v50 = vld [vmem:[#allocation9 + $0x184] sm:$0xf] }
  0x68   :  { %v4183_v4 = vor.u32 %v4787_v3, %v4182_v1  ;;  %v4683_v6 = vld [vmem:[#allocation9 + $0x42c] sm:$0xf0]  ;;  %v4166_v13 = vld [vmem:[#allocation9 + $0x740] sm:$0xf]  ;;  %v3336_v1 = vld [vmem:[#allocation9 + $0xd0] sm:$0xf0] }
  0x69   :  { %2133 = vmatpush.bf16.msrb.mxu2 %v4087_v41  ;;  %2147 = vmatpush.bf16.msrb.mxu3 %v4215_v43  ;;  %v3767_v8 = vor.u32 %v4683_v6, %v3766_v5  ;;  %v4715_v9 = vld [vmem:[#allocation9 + $0x52c] sm:$0xf0]  ;;  %v3750_v16 = vld [vmem:[#allocation9 + $0x400] sm:$0xf]  ;;  %v150_v43 = vperm.slane %v5140_v34, 2 }
  0x6a   :  { %v3895_v10 = vor.u32 %v4715_v9, %v3894_v7  ;;  %v4751_v12 = vld [vmem:[#allocation9 + $0x64c] sm:$0xf0]  ;;  %v3878_v18 = vld [vmem:[#allocation9 + $0x500] sm:$0xf]  ;;  %v3464_v3 = vld [vmem:[#allocation9 + $0x1d0] sm:$0xf0] }
  0x6b   :  { %2106 = vmatpush.bf16.msrb.mxu0 %v3815_v36  ;;  %2120 = vmatpush.bf16.msrb.mxu1 %v3943_v37  ;;  %v4039_v14 = vor.u32 %v4751_v12, %v4038_v11  ;;  %v4783_v15 = vld [vmem:[#allocation9 + $0x74c] sm:$0xf0]  ;;  %v4022_v22 = vld [vmem:[#allocation9 + $0x620] sm:$0xf]  ;;  %v149_v36 = vperm.slane %v5140_v34, 1  ;;  %v148_v37 = vperm.slane %v5140_v34, 0 }
  0x6c   :  { %v4167_v51 = vor.u32 %v4783_v15, %v4166_v13  ;;  %v4679_v17 = vld [vmem:[#allocation9 + $0x40c] sm:$0xf0]  ;;  %v4150_v24 = vld [vmem:[#allocation9 + $0x720] sm:$0xf]  ;;  %v5148_v7 = vld [vmem:[#allocation9 + $0x2e4] sm:$0xf] }
  0x6d   :  { %2134 = vmatpush.bf16.msrb.mxu2 %v4071_v54  ;;  %2148 = vmatpush.bf16.msrb.mxu3 %v4199_v56  ;;  %v3751_v19 = vor.u32 %v4679_v17, %v3750_v16  ;;  %v4711_v20 = vld [vmem:[#allocation9 + $0x50c] sm:$0xf0]  ;;  %v4006_v28 = vld [vmem:[#allocation9 + $0x600] sm:$0xf]  ;;  %v4609_v54 = vld [vmem:[#allocation9 + $0x1e4] sm:$0xf]  ;;  %v3339_v17 = vor.u32 %v4573_v60, %v3336_v1 }
  0x6e   :  { %v3879_v21 = vor.u32 %v4711_v20, %v3878_v18  ;;  %v4747_v23 = vld [vmem:[#allocation9 + $0x62c] sm:$0xf0]  ;;  %v4134_v31 = vld [vmem:[#allocation9 + $0x700] sm:$0xf]  ;;  %v3480_v56 = vld [vmem:[#allocation9 + $0x1f0] sm:$0xf0] }
  0x6f   :  { %2107 = vmatpush.bf16.msrb.mxu0 %v3799_v47  ;;  %2121 = vmatpush.bf16.msrb.mxu1 %v3927_v49  ;;  %v4779_v25 = vld [vmem:[#allocation9 + $0x72c] sm:$0xf0]  ;;  %v4023_v26 = vor.u32 %v4747_v23, %v4022_v22  ;;  %v151_v47 = vperm.slane %v5140_v34, 3  ;;  %v3483_v6 = vor.u32 %v4609_v54, %v3480_v56  ;;  %v153_v11 = vperm.slane %v5140_v34, 5  ;;  %v3608_v12 = vld [vmem:[#allocation9 + $0x2f0] sm:$0xf0] }
  0x70   :  { %v4151_v27 = vor.u32 %v4779_v25, %v4150_v24  ;;  %v4743_v29 = vld [vmem:[#allocation9 + $0x60c] sm:$0xf0]  ;;  %v5154_v13 = vld [vmem:[#allocation9 + $0x3e4] sm:$0xf]  ;;  %v154_v24 = vperm.slane %v5140_v34, 6 }
  0x71   :  { %2135 = vmatpush.bf16.msrb.mxu2 %v4055_v2  ;;  %2149 = vmatpush.bf16.msrb.mxu3 %v4183_v4  ;;  %v4007_v30 = vor.u32 %v4743_v29, %v4006_v28  ;;  %v4775_v32 = vld [vmem:[#allocation9 + $0x70c] sm:$0xf0]  ;;  %v4605_v2 = vld [vmem:[#allocation9 + $0x1c4] sm:$0xf]  ;;  %v3320_v25 = vld [vmem:[#allocation9 + $0xb0] sm:$0xf0] }
  0x72   :  { %v4135_v33 = vor.u32 %v4775_v32, %v4134_v31  ;;  %v3467_v18 = vor.u32 %v4605_v2, %v3464_v3  ;;  %v4569_v20 = vld [vmem:[#allocation9 + $0xa4] sm:$0xf]  ;;  %v3448_v32 = vld [vmem:[#allocation9 + $0x1b0] sm:$0xf0] }
  0x73   :  { %2108 = vmatpush.bf16.msrb.mxu0 %v3783_v59  ;;  %2122 = vmatpush.bf16.msrb.mxu1 %v3911_v62  ;;  %v4601_v28 = vld [vmem:[#allocation9 + $0x1a4] sm:$0xf]  ;;  %v3576_v56 = vld [vmem:[#allocation9 + $0x2b0] sm:$0xf0] }
  0x74   :  { %v3704_v2 = vld [vmem:[#allocation9 + $0x3b0] sm:$0xf0]  ;;  %v4561_v3 = vld [vmem:[#allocation9 + $0x64] sm:$0xf] }
  0x75   :  { %2136 = vmatpush.bf16.msrb.mxu2 %v4039_v14  ;;  %2150 = vmatpush.bf16.msrb.mxu3 %v4167_v51 }
  0x77   :  { %2109 = vmatpush.bf16.msrb.mxu0 %v3767_v8  ;;  %2123 = vmatpush.bf16.msrb.mxu1 %v3895_v10  ;;  %v152_v10 = vperm.slane %v5140_v34, 4 }
  0x79   :  { %2137 = vmatpush.bf16.msrb.mxu2 %v4023_v26  ;;  %2151 = vmatpush.bf16.msrb.mxu3 %v4151_v27  ;;  %v3611_v27 = vor.u32 %v5148_v7, %v3608_v12  ;;  %v4593_v12 = vld [vmem:[#allocation9 + $0x164] sm:$0xf] }
  0x7b   :  { %2110 = vmatpush.bf16.msrb.mxu0 %v3751_v19  ;;  %2124 = vmatpush.bf16.msrb.mxu1 %v3879_v21  ;;  %v3736_v19 = vld [vmem:[#allocation9 + $0x3f0] sm:$0xf0] }
  0x7c   :  { %v3739_v31 = vor.u32 %v5154_v13, %v3736_v19  ;;  %v3416_v13 = vld [vmem:[#allocation9 + $0x170] sm:$0xf0]  ;;  %v4661_v19 = vld [vmem:[#allocation9 + $0x384] sm:$0xf] }
  0x7d   :  { %2138 = vmatpush.bf16.msrb.mxu2 %v4007_v30  ;;  %2152 = vmatpush.bf16.msrb.mxu3 %v4135_v33 }
  0xab   :  { %v342_v35 = vpop.f32.mrf.mxu0  ;;  %v356_v38 = vpop.f32.mrf.mxu1 }
  0xac   :  { %v357_v39 = vadd.f32 %v356_v38, %v149_v36  ;;  %v343_v40 = vadd.f32 %v342_v35, %v148_v37  ;;  %v4637_v38 = vld [vmem:[#allocation9 + $0x2c4] sm:$0xf] }
  0xae   :  { %v462_v42 = vmul.f32 0.2, %v357_v39  ;;  %v461_v46 = vmul.f32 0.2, %v343_v40  ;;  %vm446_vm1 = vcmp.gt.f32.partialorder %v357_v39, 0.0  ;;  %vm445_vm2 = vcmp.gt.f32.partialorder %v343_v40, 0.0 }
  0xb0   :  { %v478_v57 = vsel %vm446_vm1, %v357_v39, %v462_v42  ;;  %v477_v61 = vsel %vm445_vm2, %v343_v40, %v461_v46  ;;  %v3592_v39 = vld [vmem:[#allocation9 + $0x2d0] sm:$0xf0]  ;;  %v4669_v40 = vld [vmem:[#allocation9 + $0x3c4] sm:$0xf] }
  0xb1   :  { %v4565_v46 = vld [vmem:[#allocation9 + $0x84] sm:$0xf]  ;;  %v3595_v60 = vor.u32 %v4637_v38, %v3592_v39 }
  0xb3   :  { %v370_v41 = vpop.f32.mrf.mxu2  ;;  %v384_v44 = vpop.f32.mrf.mxu3 }
  0xb4   :  { %v344_v45 = vpop.f32.mrf.mxu0  ;;  %v358_v49 = vpop.f32.mrf.mxu1  ;;  %v371_v58 = vadd.f32 %v370_v41, %v150_v43  ;;  %v385_v62 = vadd.f32 %v384_v44, %v151_v47  ;;  %v155_v44 = vperm.slane %v5140_v34, 7 }
  0xb5   :  { %v345_v48 = vadd.f32 %v344_v45, %v148_v37  ;;  %v359_v52 = vadd.f32 %v358_v49, %v149_v36  ;;  %v3323_v37 = vor.u32 %v4569_v20, %v3320_v25  ;;  %v3720_v45 = vld [vmem:[#allocation9 + $0x3d0] sm:$0xf0]  ;;  %v4557_v25 = vld [vmem:[#allocation9 + $0x44] sm:$0xf] }
  0xb6   :  { %v463_v14 = vmul.f32 0.2, %v371_v58  ;;  %vm447_vm5 = vcmp.gt.f32.partialorder %v371_v58, 0.0  ;;  %v464_v21 = vmul.f32 0.2, %v385_v62  ;;  %vm448_vm6 = vcmp.gt.f32.partialorder %v385_v62, 0.0 }
  0xb7   :  { %vm453_vm3 = vcmp.gt.f32.partialorder %v345_v48, 0.0  ;;  %v469_v55 = vmul.f32 0.2, %v345_v48  ;;  %vm454_vm4 = vcmp.gt.f32.partialorder %v359_v52, 0.0  ;;  %v470_v59 = vmul.f32 0.2, %v359_v52 }
  0xb8   :  { %v479_v33 = vsel %vm447_vm5, %v371_v58, %v463_v14  ;;  %v480_v41 = vsel %vm448_vm6, %v385_v62, %v464_v21  ;;  %v3304_v49 = vld [vmem:[#allocation9 + $0x90] sm:$0xf0] }
  0xb9   :  { %v485_v63 = vsel %vm453_vm3, %v345_v48, %v469_v55  ;;  %v486_v5 = vsel %vm454_vm4, %v359_v52, %v470_v59  ;;  %v3451_v48 = vor.u32 %v4601_v28, %v3448_v32  ;;  %v3432_v52 = vld [vmem:[#allocation9 + $0x190] sm:$0xf0]  ;;  %v4633_v55 = vld [vmem:[#allocation9 + $0x2a4] sm:$0xf]  ;;  %v3307_v1 = vor.u32 %v4565_v46, %v3304_v49 }
  0xba   :  { %v5146_v4 = vpack.c.bf16 %v485_v63, %v477_v61  ;;  %v5150_v8 = vpack.c.bf16 %v486_v5, %v478_v57  ;;  %v4665_v61 = vld [vmem:[#allocation9 + $0x3a4] sm:$0xf]  ;;  %v3435_v7 = vor.u32 %v4597_v50, %v3432_v52  ;;  %v3400_v32 = vld [vmem:[#allocation9 + $0x150] sm:$0xf0] }
  0xbb   :  { %v372_v9 = vpop.f32.mrf.mxu2  ;;  %v386_v51 = vpop.f32.mrf.mxu3  ;;  %v3707_v21 = vor.u32 %v4665_v61, %v3704_v2  ;;  %v3672_v49 = vld [vmem:[#allocation9 + $0x370] sm:$0xf0]  ;;  %v4553_v50 = vld [vmem:[#allocation9 + $0x24] sm:$0xf] }
  0xbc   :  { %v373_v15 = vadd.f32 %v372_v9, %v150_v43  ;;  %v398_v16 = vpop.f32.mrf.mxu0  ;;  %2055 = vmatmul.bf16.vlgmr.msra.gmra.mxu0 %v5146_v4  ;;  %v387_v22 = vadd.f32 %v386_v51, %v151_v47  ;;  %v412_v23 = vpop.f32.mrf.mxu1  ;;  %2069 = vmatmul.bf16.vlgmr.msra.gmra.mxu1 %v5150_v8  ;;  %v3288_v9 = vld [vmem:[#allocation9 + $0x70] sm:$0xf0]  ;;  %v4629_v51 = vld [vmem:[#allocation9 + $0x284] sm:$0xf] }
  0xbd   :  { %2159 = vmatpush.bf16.msra.mxu0 %v3355_v0  ;;  %2173 = vmatpush.bf16.msra.mxu1 %v3483_v6  ;;  %v399_v30 = vadd.f32 %v398_v16, %v152_v10  ;;  %v413_v36 = vadd.f32 %v412_v23, %v153_v11  ;;  %v3723_v0 = vor.u32 %v4669_v40, %v3720_v45  ;;  %v3560_v16 = vld [vmem:[#allocation9 + $0x290] sm:$0xf0] }
  0xbe   :  { %vm455_vm7 = vcmp.gt.f32.partialorder %v373_v15, 0.0  ;;  %v471_v26 = vmul.f32 0.2, %v373_v15  ;;  %vm456_vm8 = vcmp.gt.f32.partialorder %v387_v22, 0.0  ;;  %v472_v29 = vmul.f32 0.2, %v387_v22 }
  0xbf   :  { %v465_v53 = vmul.f32 0.2, %v399_v30  ;;  %vm449_vm9 = vcmp.gt.f32.partialorder %v399_v30, 0.0  ;;  %v466_v57 = vmul.f32 0.2, %v413_v36  ;;  %vm450_vm10 = vcmp.gt.f32.partialorder %v413_v36, 0.0 }
  0xc0   :  { %v487_v35 = vsel %vm455_vm7, %v373_v15, %v471_v26  ;;  %v488_v43 = vsel %vm456_vm8, %v387_v22, %v472_v29  ;;  %v3291_v22 = vor.u32 %v4561_v3, %v3288_v9  ;;  %v3688_v23 = vld [vmem:[#allocation9 + $0x390] sm:$0xf0]  ;;  %v3563_v40 = vor.u32 %v4629_v51, %v3560_v16  ;;  %v4581_v9 = vld [vmem:[#allocation9 + $0x104] sm:$0xf] }
  0xc1   :  { %v5167_v42 = vpack.c.bf16 %v487_v35, %v479_v33  ;;  %2160 = vmatpush.bf16.msra.mxu0 %v3339_v17  ;;  %v5170_v47 = vpack.c.bf16 %v488_v43, %v480_v41  ;;  %2174 = vmatpush.bf16.msra.mxu1 %v3467_v18  ;;  %v481_v14 = vsel %vm449_vm9, %v399_v30, %v465_v53  ;;  %v3272_v26 = vld [vmem:[#allocation9 + $0x50] sm:$0xf0]  ;;  %v4657_v43 = vld [vmem:[#allocation9 + $0x364] sm:$0xf] }
  0xc2   :  { %v482_v17 = vsel %vm450_vm10, %v413_v36, %v466_v57  ;;  %v3419_v30 = vor.u32 %v4593_v12, %v3416_v13  ;;  %v3544_v41 = vld [vmem:[#allocation9 + $0x270] sm:$0xf0]  ;;  %v3691_v46 = vor.u32 %v4661_v19, %v3688_v23  ;;  %v3675_v61 = vor.u32 %v4657_v43, %v3672_v49  ;;  %v4705_v13 = vld [vmem:[#allocation9 + $0x4e4] sm:$0xf] }
  0xc3   :  { %v426_v54 = vpop.f32.mrf.mxu2  ;;  %2083 = vmatmul.bf16.vlgmr.msra.gmra.mxu2 %v5167_v42  ;;  %v440_v58 = vpop.f32.mrf.mxu3  ;;  %2097 = vmatmul.bf16.vlgmr.msra.gmra.mxu3 %v5170_v47  ;;  %v3256_v52 = vld [vmem:[#allocation9 + $0x30] sm:$0xf0]  ;;  %v4801_v43 = vld [vmem:[#allocation9 + $0x7e4] sm:$0xf] }
  0xc4   :  { %2187 = vmatpush.bf16.msra.mxu2 %v3611_v27  ;;  %v400_v59 = vpop.f32.mrf.mxu0  ;;  %2201 = vmatpush.bf16.msra.mxu3 %v3739_v31  ;;  %v414_v63 = vpop.f32.mrf.mxu1  ;;  %v427_v5 = vadd.f32 %v426_v54, %v154_v24  ;;  %v4589_v31 = vld [vmem:[#allocation9 + $0x144] sm:$0xf]  ;;  %v3259_v2 = vor.u32 %v4553_v50, %v3256_v52  ;;  %v3368_v12 = vld [vmem:[#allocation9 + $0x110] sm:$0xf0] }
  0xc5   :  { %v401_v62 = vadd.f32 %v400_v59, %v152_v10  ;;  %2161 = vmatpush.bf16.msra.mxu0 %v3323_v37  ;;  %v415_v6 = vadd.f32 %v414_v63, %v153_v11  ;;  %2175 = vmatpush.bf16.msra.mxu1 %v3451_v48  ;;  %v441_v10 = vadd.f32 %v440_v58, %v155_v44  ;;  %v4625_v37 = vld [vmem:[#allocation9 + $0x264] sm:$0xf]  ;;  %v3528_v63 = vld [vmem:[#allocation9 + $0x250] sm:$0xf0] }
  0xc6   :  { %v3579_v11 = vor.u32 %v4633_v55, %v3576_v56  ;;  %v467_v27 = vmul.f32 0.2, %v427_v5  ;;  %vm451_vm13 = vcmp.gt.f32.partialorder %v427_v5, 0.0  ;;  %v3275_v48 = vor.u32 %v4557_v25, %v3272_v26  ;;  %v4585_v55 = vld [vmem:[#allocation9 + $0x124] sm:$0xf] }
  0xc7   :  { %vm457_vm11 = vcmp.gt.f32.partialorder %v401_v62, 0.0  ;;  %v473_v15 = vmul.f32 0.2, %v401_v62  ;;  %vm458_vm12 = vcmp.gt.f32.partialorder %v415_v6, 0.0  ;;  %v474_v18 = vmul.f32 0.2, %v415_v6 }
  0xc8   :  { %2188 = vmatpush.bf16.msra.mxu2 %v3595_v60  ;;  %2202 = vmatpush.bf16.msra.mxu3 %v3723_v0  ;;  %v468_v33 = vmul.f32 0.2, %v441_v10  ;;  %vm452_vm14 = vcmp.gt.f32.partialorder %v441_v10, 0.0  ;;  %v3403_v54 = vor.u32 %v4589_v31, %v3400_v32  ;;  %v3547_v58 = vor.u32 %v4625_v37, %v3544_v41  ;;  %v4653_v0 = vld [vmem:[#allocation9 + $0x344] sm:$0xf] }
  0xc9   :  { %v489_v20 = vsel %vm457_vm11, %v401_v62, %v473_v15  ;;  %2162 = vmatpush.bf16.msra.mxu0 %v3307_v1  ;;  %v490_v29 = vsel %vm458_vm12, %v415_v6, %v474_v18  ;;  %2176 = vmatpush.bf16.msra.mxu1 %v3435_v7  ;;  %v4621_v62 = vld [vmem:[#allocation9 + $0x244] sm:$0xf]  ;;  %v3240_v7 = vld [vmem:[#allocation9 + $0x10] sm:$0xf0]  ;;  %v3371_v19 = vor.u32 %v4581_v9, %v3368_v12 }
  0xca   :  { %v5184_v28 = vpack.c.bf16 %v489_v20, %v481_v14  ;;  %v5186_v35 = vpack.c.bf16 %v490_v29, %v482_v17  ;;  %v484_v56 = vsel %vm452_vm14, %v441_v10, %v468_v33  ;;  %v4549_v6 = vld [vmem:[#allocation9 + $0x4] sm:$0xf]  ;;  %v3531_v14 = vor.u32 %v4621_v62, %v3528_v63  ;;  %v3864_v10 = vld [vmem:[#allocation9 + $0x4f0] sm:$0xf0] }
  0xcb   :  { %v428_v36 = vpop.f32.mrf.mxu2  ;;  %v442_v39 = vpop.f32.mrf.mxu3  ;;  %v4737_v15 = vld [vmem:[#allocation9 + $0x5e4] sm:$0xf]  ;;  %v3992_v51 = vld [vmem:[#allocation9 + $0x5f0] sm:$0xf0]  ;;  %vm3075_vm14 = vcmask 122880  }
  0xcc   :  { %v429_v38 = vadd.f32 %v428_v36, %v154_v24  ;;  %2189 = vmatpush.bf16.msra.mxu2 %v3579_v11  ;;  %2111 = vmatmul.bf16.vlgmr.msrb.gmra.mxu0 %v5184_v28  ;;  %v443_v45 = vadd.f32 %v442_v39, %v155_v44  ;;  %v483_v24 = vsel %vm451_vm13, %v427_v5, %v467_v27  ;;  %v3384_v44 = vld [vmem:[#allocation9 + $0x130] sm:$0xf0]  ;;  %v4617_v17 = vld [vmem:[#allocation9 + $0x224] sm:$0xf]  ;;  %vm3072_vm13 = vcmask 130112  }
  0xcd   :  { %2203 = vmatpush.bf16.msra.mxu3 %v3707_v21  ;;  %2125 = vmatmul.bf16.vlgmr.msrb.gmra.mxu1 %v5186_v35  ;;  %v3387_v3 = vor.u32 %v4585_v55, %v3384_v44  ;;  %v3656_v5 = vld [vmem:[#allocation9 + $0x350] sm:$0xf0]  ;;  %v3243_v11 = vor.u32 %v4549_v6, %v3240_v7  ;;  %v4649_v20 = vld [vmem:[#allocation9 + $0x324] sm:$0xf]  ;;  %v3995_v23 = vor.u32 %v4737_v15, %v3992_v51 }
  0xce   :  { %vm459_vm15 = vcmp.gt.f32.partialorder %v429_v38, 0.0  ;;  %v475_v53 = vmul.f32 0.2, %v429_v38  ;;  %2163 = vmatpush.bf16.msra.mxu0 %v3291_v22  ;;  %2177 = vmatpush.bf16.msra.mxu1 %v3419_v30  ;;  %vm460_vm0 = vcmp.gt.f32.partialorder %v443_v45, 0.0  ;;  %v476_v34 = vmul.f32 0.2, %v443_v45 }
  0xcf   :  { %v3659_v16 = vor.u32 %v4653_v0, %v3656_v5  ;;  %v3512_v18 = vld [vmem:[#allocation9 + $0x230] sm:$0xf0]  ;;  %v3867_v22 = vor.u32 %v4705_v13, %v3864_v10  ;;  %v4701_v25 = vld [vmem:[#allocation9 + $0x4c4] sm:$0xf] }
  0xd0   :  { %v491_v57 = vsel %vm459_vm15, %v429_v38, %v475_v53  ;;  %2190 = vmatpush.bf16.msra.mxu2 %v3563_v40  ;;  %v492_v60 = vsel %vm460_vm0, %v443_v45, %v476_v34  ;;  %v3640_v21 = vld [vmem:[#allocation9 + $0x330] sm:$0xf0]  ;;  %v3515_v26 = vor.u32 %v4617_v17, %v3512_v18  ;;  %v4733_v29 = vld [vmem:[#allocation9 + $0x5c4] sm:$0xf] }
  0xd1   :  { %v5196_v59 = vpack.c.bf16 %v491_v57, %v483_v24  ;;  %2204 = vmatpush.bf16.msra.mxu3 %v3691_v46  ;;  %v5198_v1 = vpack.c.bf16 %v492_v60, %v484_v56  ;;  %v3848_v27 = vld [vmem:[#allocation9 + $0x4d0] sm:$0xf0]  ;;  %v3643_v31 = vor.u32 %v4649_v20, %v3640_v21  ;;  %v4613_v32 = vld [vmem:[#allocation9 + $0x204] sm:$0xf] }
  0xd2   :  { %2164 = vmatpush.bf16.msra.mxu0 %v3275_v48  ;;  %2178 = vmatpush.bf16.msra.mxu1 %v3403_v54  ;;  %v3976_v30 = vld [vmem:[#allocation9 + $0x5d0] sm:$0xf0]  ;;  %v4645_v36 = vld [vmem:[#allocation9 + $0x304] sm:$0xf]  ;;  %v3851_v40 = vor.u32 %v4701_v25, %v3848_v27 }
  0xd3   :  { %2139 = vmatmul.bf16.vlgmr.msrb.gmra.mxu2 %v5196_v59  ;;  %2153 = vmatmul.bf16.vlgmr.msrb.gmra.mxu3 %v5198_v1  ;;  %v3496_v33 = vld [vmem:[#allocation9 + $0x210] sm:$0xf0]  ;;  %v4769_v38 = vld [vmem:[#allocation9 + $0x6e4] sm:$0xf]  ;;  %v3979_v41 = vor.u32 %v4733_v29, %v3976_v30 }
  0xd4   :  { %2191 = vmatpush.bf16.msra.mxu2 %v3547_v58  ;;  %v3624_v37 = vld [vmem:[#allocation9 + $0x310] sm:$0xf0]  ;;  %v4697_v46 = vld [vmem:[#allocation9 + $0x4a4] sm:$0xf]  ;;  %v3499_v48 = vor.u32 %v4613_v32, %v3496_v33 }
  0xd5   :  { %2205 = vmatpush.bf16.msra.mxu3 %v3675_v61  ;;  %v4120_v39 = vld [vmem:[#allocation9 + $0x6f0] sm:$0xf0]  ;;  %v4729_v50 = vld [vmem:[#allocation9 + $0x5a4] sm:$0xf]  ;;  %v3627_v24 = vor.u32 %v4645_v36, %v3624_v37 }
  0xd6   :  { %2165 = vmatpush.bf16.msra.mxu0 %v3259_v2  ;;  %2179 = vmatpush.bf16.msra.mxu1 %v3387_v3  ;;  %v4248_v45 = vld [vmem:[#allocation9 + $0x7f0] sm:$0xf0]  ;;  %v4123_v53 = vor.u32 %v4769_v38, %v4120_v39  ;;  %v4765_v55 = vld [vmem:[#allocation9 + $0x6c4] sm:$0xf] }
  0xd7   :  { %v3832_v49 = vld [vmem:[#allocation9 + $0x4b0] sm:$0xf0]  ;;  %v4251_v54 = vor.u32 %v4801_v43, %v4248_v45  ;;  %v4797_v57 = vld [vmem:[#allocation9 + $0x7c4] sm:$0xf] }
  0xd8   :  { %2192 = vmatpush.bf16.msra.mxu2 %v3531_v14  ;;  %v3960_v52 = vld [vmem:[#allocation9 + $0x5b0] sm:$0xf0]  ;;  %v3835_v34 = vor.u32 %v4697_v46, %v3832_v49  ;;  %v4693_v60 = vld [vmem:[#allocation9 + $0x484] sm:$0xf] }
  0xd9   :  { %2206 = vmatpush.bf16.msra.mxu3 %v3659_v16  ;;  %v4104_v56 = vld [vmem:[#allocation9 + $0x6d0] sm:$0xf0]  ;;  %v3963_v44 = vor.u32 %v4729_v50, %v3960_v52  ;;  %v4725_v62 = vld [vmem:[#allocation9 + $0x584] sm:$0xf] }
  0xda   :  { %2166 = vmatpush.bf16.msra.mxu0 %v3243_v11  ;;  %2180 = vmatpush.bf16.msra.mxu1 %v3371_v19  ;;  %v4232_v58 = vld [vmem:[#allocation9 + $0x7d0] sm:$0xf0]  ;;  %v4107_v0 = vor.u32 %v4765_v55, %v4104_v56  ;;  %v4761_v3 = vld [vmem:[#allocation9 + $0x6a4] sm:$0xf] }
  0xdb   :  { %v3816_v61 = vld [vmem:[#allocation9 + $0x490] sm:$0xf0]  ;;  %v4235_v2 = vor.u32 %v4797_v57, %v4232_v58  ;;  %v4793_v9 = vld [vmem:[#allocation9 + $0x7a4] sm:$0xf]  ;;  %v4580_v57 = vld [vmem:[#allocation9 + $0xf4] sm:$0xf0] }
  0xdc   :  { %2193 = vmatpush.bf16.msra.mxu2 %v3515_v26  ;;  %v3944_v63 = vld [vmem:[#allocation9 + $0x590] sm:$0xf0]  ;;  %v3819_v6 = vor.u32 %v4693_v60, %v3816_v61  ;;  %v4689_v13 = vld [vmem:[#allocation9 + $0x464] sm:$0xf]  ;;  %v3486_v58 = vld [vmem:[#allocation9 + $0x1e8] sm:$0xf] }
  0xdd   :  { %2207 = vmatpush.bf16.msra.mxu3 %v3643_v31  ;;  %2167 = vmatmul.bf16.vlgmr.msra.gmra.mxu0 %v5146_v4  ;;  %v4088_v5 = vld [vmem:[#allocation9 + $0x6b0] sm:$0xf0]  ;;  %v3947_v7 = vor.u32 %v4725_v62, %v3944_v63  ;;  %v4721_v10 = vld [vmem:[#allocation9 + $0x564] sm:$0xf]  ;;  %v4612_v60 = vld [vmem:[#allocation9 + $0x1f4] sm:$0xf0] }
  0xde   :  { %2215 = vmatpush.bf16.msrb.mxu0 %v3867_v22  ;;  %2229 = vmatpush.bf16.msrb.mxu1 %v3995_v23  ;;  %v4216_v12 = vld [vmem:[#allocation9 + $0x7b0] sm:$0xf0]  ;;  %v4091_v51 = vor.u32 %v4761_v3, %v4088_v5  ;;  %v4757_v17 = vld [vmem:[#allocation9 + $0x684] sm:$0xf] }
  0xdf   :  { %2181 = vmatmul.bf16.vlgmr.msra.gmra.mxu1 %v5150_v8  ;;  %v3800_v14 = vld [vmem:[#allocation9 + $0x470] sm:$0xf0]  ;;  %v4219_v16 = vor.u32 %v4793_v9, %v4216_v12  ;;  %v4789_v20 = vld [vmem:[#allocation9 + $0x784] sm:$0xf]  ;;  %v3342_v9 = vld [vmem:[#allocation9 + $0xc8] sm:$0xf] }
  0xe0   :  { %2194 = vmatpush.bf16.msra.mxu2 %v3499_v48  ;;  %v3928_v15 = vld [vmem:[#allocation9 + $0x570] sm:$0xf0]  ;;  %v3803_v11 = vor.u32 %v4689_v13, %v3800_v14  ;;  %v4685_v22 = vld [vmem:[#allocation9 + $0x444] sm:$0xf]  ;;  %v4576_v13 = vld [vmem:[#allocation9 + $0xd4] sm:$0xf0] }
  0xe1   :  { %2208 = vmatpush.bf16.msra.mxu3 %v3627_v24  ;;  %v4072_v18 = vld [vmem:[#allocation9 + $0x690] sm:$0xf0]  ;;  %v3931_v19 = vor.u32 %v4721_v10, %v3928_v15  ;;  %v4717_v25 = vld [vmem:[#allocation9 + $0x544] sm:$0xf]  ;;  %v3470_v14 = vld [vmem:[#allocation9 + $0x1c8] sm:$0xf] }
  0xe2   :  { %2216 = vmatpush.bf16.msrb.mxu0 %v3851_v40  ;;  %2230 = vmatpush.bf16.msrb.mxu1 %v3979_v41  ;;  %v4200_v21 = vld [vmem:[#allocation9 + $0x790] sm:$0xf0]  ;;  %v4075_v27 = vor.u32 %v4757_v17, %v4072_v18  ;;  %v4753_v30 = vld [vmem:[#allocation9 + $0x664] sm:$0xf]  ;;  %v4608_v10 = vld [vmem:[#allocation9 + $0x1d4] sm:$0xf0] }
  0xe3   :  { %2195 = vmatmul.bf16.vlgmr.msra.gmra.mxu2 %v5167_v42  ;;  %v3784_v23 = vld [vmem:[#allocation9 + $0x450] sm:$0xf0]  ;;  %v4203_v29 = vor.u32 %v4789_v20, %v4200_v21  ;;  %v4785_v36 = vld [vmem:[#allocation9 + $0x764] sm:$0xf]  ;;  %v3343_v20 = vor.u32 %v4576_v13, %v3342_v9  ;;  %v3471_v21 = vor.u32 %v4608_v10, %v3470_v14  ;;  %v4592_v13 = vld [vmem:[#allocation9 + $0x154] sm:$0xf0] }
  0xe4   :  { %2243 = vmatpush.bf16.msrb.mxu2 %v4123_v53  ;;  %2209 = vmatmul.bf16.vlgmr.msra.gmra.mxu3 %v5170_v47  ;;  %v3912_v26 = vld [vmem:[#allocation9 + $0x550] sm:$0xf0]  ;;  %v3787_v32 = vor.u32 %v4685_v22, %v3784_v23  ;;  %v4681_v38 = vld [vmem:[#allocation9 + $0x424] sm:$0xf]  ;;  %v3742_v22 = vld [vmem:[#allocation9 + $0x3e8] sm:$0xf] }
  0xe5   :  { %2257 = vmatpush.bf16.msrb.mxu3 %v4251_v54  ;;  %v4056_v31 = vld [vmem:[#allocation9 + $0x670] sm:$0xf0]  ;;  %v3915_v33 = vor.u32 %v4717_v25, %v3912_v26  ;;  %v4713_v40 = vld [vmem:[#allocation9 + $0x524] sm:$0xf]  ;;  %v4676_v23 = vld [vmem:[#allocation9 + $0x3f4] sm:$0xf0] }
  0xe6   :  { %2217 = vmatpush.bf16.msrb.mxu0 %v3835_v34  ;;  %2231 = vmatpush.bf16.msrb.mxu1 %v3963_v44  ;;  %v4184_v37 = vld [vmem:[#allocation9 + $0x770] sm:$0xf0]  ;;  %v4059_v43 = vor.u32 %v4753_v30, %v4056_v31  ;;  %v4749_v46 = vld [vmem:[#allocation9 + $0x644] sm:$0xf]  ;;  %v3358_v34 = vld [vmem:[#allocation9 + $0xe8] sm:$0xf] }
  0xe7   :  { %v3768_v39 = vld [vmem:[#allocation9 + $0x430] sm:$0xf0]  ;;  %v4187_v45 = vor.u32 %v4785_v36, %v4184_v37  ;;  %v4781_v49 = vld [vmem:[#allocation9 + $0x744] sm:$0xf]  ;;  %v3326_v26 = vld [vmem:[#allocation9 + $0xa8] sm:$0xf] }
  0xe8   :  { %2244 = vmatpush.bf16.msrb.mxu2 %v4107_v0  ;;  %v3896_v41 = vld [vmem:[#allocation9 + $0x530] sm:$0xf0]  ;;  %v3771_v50 = vor.u32 %v4681_v38, %v3768_v39  ;;  %v4677_v53 = vld [vmem:[#allocation9 + $0x404] sm:$0xf]  ;;  %v3454_v31 = vld [vmem:[#allocation9 + $0x1a8] sm:$0xf] }
  0xe9   :  { %2258 = vmatpush.bf16.msrb.mxu3 %v4235_v2  ;;  %v4040_v48 = vld [vmem:[#allocation9 + $0x650] sm:$0xf0]  ;;  %v3899_v52 = vor.u32 %v4713_v40, %v3896_v41  ;;  %v4709_v55 = vld [vmem:[#allocation9 + $0x504] sm:$0xf]  ;;  %v3598_v36 = vld [vmem:[#allocation9 + $0x2c8] sm:$0xf] }
  0xea   :  { %2218 = vmatpush.bf16.msrb.mxu0 %v3819_v6  ;;  %2232 = vmatpush.bf16.msrb.mxu1 %v3947_v7  ;;  %v4168_v24 = vld [vmem:[#allocation9 + $0x750] sm:$0xf0]  ;;  %v4043_v44 = vor.u32 %v4749_v46, %v4040_v48  ;;  %v4745_v62 = vld [vmem:[#allocation9 + $0x624] sm:$0xf]  ;;  %v3359_v6 = vor.u32 %v4580_v57, %v3358_v34  ;;  %v3487_v7 = vor.u32 %v4612_v60, %v3486_v58  ;;  %v4640_v37 = vld [vmem:[#allocation9 + $0x2d4] sm:$0xf0] }
  0xeb   :  { %v3752_v54 = vld [vmem:[#allocation9 + $0x410] sm:$0xf0]  ;;  %v4171_v61 = vor.u32 %v4781_v49, %v4168_v24  ;;  %v4777_v3 = vld [vmem:[#allocation9 + $0x724] sm:$0xf]  ;;  %v3726_v39 = vld [vmem:[#allocation9 + $0x3c8] sm:$0xf]  ;;  %v3599_v46 = vor.u32 %v4640_v37, %v3598_v36 }
  0xec   :  { %2245 = vmatpush.bf16.msrb.mxu2 %v4091_v51  ;;  %v3880_v56 = vld [vmem:[#allocation9 + $0x510] sm:$0xf0]  ;;  %v3755_v0 = vor.u32 %v4677_v53, %v3752_v54  ;;  %v4741_v51 = vld [vmem:[#allocation9 + $0x604] sm:$0xf]  ;;  %v4672_v40 = vld [vmem:[#allocation9 + $0x3d4] sm:$0xf0] }
  0xed   :  { %2259 = vmatpush.bf16.msrb.mxu3 %v4219_v16  ;;  %v4024_v63 = vld [vmem:[#allocation9 + $0x630] sm:$0xf0]  ;;  %v3883_v2 = vor.u32 %v4709_v55, %v3880_v56  ;;  %v4773_v17 = vld [vmem:[#allocation9 + $0x704] sm:$0xf]  ;;  %v3438_v48 = vld [vmem:[#allocation9 + $0x188] sm:$0xf] }
  0xee   :  { %2219 = vmatpush.bf16.msrb.mxu0 %v3803_v11  ;;  %2233 = vmatpush.bf16.msrb.mxu1 %v3931_v19  ;;  %v4152_v5 = vld [vmem:[#allocation9 + $0x730] sm:$0xf0]  ;;  %v4027_v12 = vor.u32 %v4745_v62, %v4024_v63  ;;  %v3614_v11 = vld [vmem:[#allocation9 + $0x2e8] sm:$0xf]  ;;  %v4644_v19 = vld [vmem:[#allocation9 + $0x2f4] sm:$0xf0] }
  0xef   :  { %v4155_v15 = vor.u32 %v4777_v3, %v4152_v5  ;;  %v4008_v16 = vld [vmem:[#allocation9 + $0x610] sm:$0xf0]  ;;  %v3615_v30 = vor.u32 %v4644_v19, %v3614_v11  ;;  %v4600_v49 = vld [vmem:[#allocation9 + $0x194] sm:$0xf0]  ;;  %v3710_v54 = vld [vmem:[#allocation9 + $0x3a8] sm:$0xf] }
  0xf0   :  { %2246 = vmatpush.bf16.msrb.mxu2 %v4075_v27  ;;  %v4136_v18 = vld [vmem:[#allocation9 + $0x710] sm:$0xf0]  ;;  %v4011_v25 = vor.u32 %v4741_v51, %v4008_v16  ;;  %v4572_v27 = vld [vmem:[#allocation9 + $0xb4] sm:$0xf0]  ;;  %v3439_v56 = vor.u32 %v4600_v49, %v3438_v48  ;;  %v3294_v34 = vld [vmem:[#allocation9 + $0x68] sm:$0xf] }
  0xf1   :  { %2260 = vmatpush.bf16.msrb.mxu3 %v4203_v29  ;;  %v4139_v29 = vor.u32 %v4773_v17, %v4136_v18  ;;  %v3327_v38 = vor.u32 %v4572_v27, %v3326_v26  ;;  %v4636_v24 = vld [vmem:[#allocation9 + $0x2b4] sm:$0xf0]  ;;  %v3422_v58 = vld [vmem:[#allocation9 + $0x168] sm:$0xf] }
  0xf2   :  { %2220 = vmatpush.bf16.msrb.mxu0 %v3787_v32  ;;  %2234 = vmatpush.bf16.msrb.mxu1 %v3915_v33  ;;  %v4604_v32 = vld [vmem:[#allocation9 + $0x1b4] sm:$0xf0]  ;;  %v3743_v33 = vor.u32 %v4676_v23, %v3742_v22  ;;  %v3566_v62 = vld [vmem:[#allocation9 + $0x288] sm:$0xf] }
  0xf3   :  { %v3455_v41 = vor.u32 %v4604_v32, %v3454_v31  ;;  %v4668_v55 = vld [vmem:[#allocation9 + $0x3b4] sm:$0xf0]  ;;  %v3550_v10 = vld [vmem:[#allocation9 + $0x268] sm:$0xf] }
  0xf4   :  { %2247 = vmatpush.bf16.msrb.mxu2 %v4059_v43  ;;  %v3310_v43 = vld [vmem:[#allocation9 + $0x88] sm:$0xf]  ;;  %v4596_v60 = vld [vmem:[#allocation9 + $0x174] sm:$0xf0] }
  0xf5   :  { %2261 = vmatpush.bf16.msrb.mxu3 %v4187_v45  ;;  %v4568_v45 = vld [vmem:[#allocation9 + $0x94] sm:$0xf0]  ;;  %v3423_v5 = vor.u32 %v4596_v60, %v3422_v58  ;;  %v3678_v16 = vld [vmem:[#allocation9 + $0x368] sm:$0xf] }
  0xf6   :  { %2221 = vmatpush.bf16.msrb.mxu0 %v3771_v50  ;;  %2235 = vmatpush.bf16.msrb.mxu1 %v3899_v52  ;;  %v3727_v50 = vor.u32 %v4672_v40, %v3726_v39  ;;  %v3582_v52 = vld [vmem:[#allocation9 + $0x2a8] sm:$0xf]  ;;  %v3311_v53 = vor.u32 %v4568_v45, %v3310_v43  ;;  %v4632_v63 = vld [vmem:[#allocation9 + $0x294] sm:$0xf0] }
  0xf7   :  { %v3583_v57 = vor.u32 %v4636_v24, %v3582_v52  ;;  %v4664_v3 = vld [vmem:[#allocation9 + $0x394] sm:$0xf0]  ;;  %v3567_v9 = vor.u32 %v4632_v63, %v3566_v62  ;;  %v3262_v11 = vld [vmem:[#allocation9 + $0x28] sm:$0xf] }
  0xf8   :  { %2248 = vmatpush.bf16.msrb.mxu2 %v4043_v44  ;;  %v4564_v44 = vld [vmem:[#allocation9 + $0x74] sm:$0xf0]  ;;  %v3246_v31 = vld [vmem:[#allocation9 + $0x8] sm:$0xf] }
  0xf9   :  { %2262 = vmatpush.bf16.msrb.mxu3 %v4171_v61  ;;  %v3711_v61 = vor.u32 %v4668_v55, %v3710_v54  ;;  %v4660_v17 = vld [vmem:[#allocation9 + $0x374] sm:$0xf0]  ;;  %v3374_v36 = vld [vmem:[#allocation9 + $0x108] sm:$0xf] }
  0xfa   :  { %2222 = vmatpush.bf16.msrb.mxu0 %v3755_v0  ;;  %2236 = vmatpush.bf16.msrb.mxu1 %v3883_v2  ;;  %v3295_v0 = vor.u32 %v4564_v44, %v3294_v34  ;;  %v3694_v2 = vld [vmem:[#allocation9 + $0x388] sm:$0xf]  ;;  %v4556_v19 = vld [vmem:[#allocation9 + $0x34] sm:$0xf0]  ;;  %v3679_v23 = vor.u32 %v4660_v17, %v3678_v16 }
  0xfb   :  { %v3695_v14 = vor.u32 %v4664_v3, %v3694_v2  ;;  %v4588_v22 = vld [vmem:[#allocation9 + $0x134] sm:$0xf0]  ;;  %v3263_v27 = vor.u32 %v4556_v19, %v3262_v11  ;;  %v3870_v39 = vld [vmem:[#allocation9 + $0x4e8] sm:$0xf] }
  0xfc   :  { %2249 = vmatpush.bf16.msrb.mxu2 %v4027_v12  ;;  %v3406_v12 = vld [vmem:[#allocation9 + $0x148] sm:$0xf]  ;;  %v4624_v26 = vld [vmem:[#allocation9 + $0x254] sm:$0xf0] }
  0xfd   :  { %2263 = vmatpush.bf16.msrb.mxu3 %v4155_v15  ;;  %2223 = vmatmul.bf16.vlgmr.msrb.gmra.mxu0 %v5184_v28  ;;  %v4628_v15 = vld [vmem:[#allocation9 + $0x274] sm:$0xf0]  ;;  %v3407_v18 = vor.u32 %v4592_v13, %v3406_v12  ;;  %v3854_v54 = vld [vmem:[#allocation9 + $0x4c8] sm:$0xf] }
  0xfe   :  { %2271 = vmatpush.bf16.msra.mxu0 %v3359_v6  ;;  %2285 = vmatpush.bf16.msra.mxu1 %v3487_v7  ;;  %v3278_v6 = vld [vmem:[#allocation9 + $0x48] sm:$0xf]  ;;  %v4560_v7 = vld [vmem:[#allocation9 + $0x54] sm:$0xf0] }
  0xff   :  { %2237 = vmatmul.bf16.vlgmr.msrb.gmra.mxu1 %v5186_v35  ;;  %v3279_v51 = vor.u32 %v4560_v7, %v3278_v6  ;;  %v4584_v37 = vld [vmem:[#allocation9 + $0x114] sm:$0xf0]  ;;  %v3982_v44 = vld [vmem:[#allocation9 + $0x5c8] sm:$0xf] }
 0x100   :  { %2250 = vmatpush.bf16.msrb.mxu2 %v4011_v25  ;;  %v3534_v25 = vld [vmem:[#allocation9 + $0x248] sm:$0xf]  ;;  %v4708_v40 = vld [vmem:[#allocation9 + $0x4f4] sm:$0xf0]  ;;  %v3375_v24 = vor.u32 %v4584_v37, %v3374_v36 }
 0x101   :  { %2264 = vmatpush.bf16.msrb.mxu3 %v4139_v29  ;;  %v3662_v29 = vld [vmem:[#allocation9 + $0x348] sm:$0xf]  ;;  %v4740_v45 = vld [vmem:[#allocation9 + $0x5f4] sm:$0xf0] }
 0x102   :  { %2272 = vmatpush.bf16.msra.mxu0 %v3343_v20  ;;  %2286 = vmatpush.bf16.msra.mxu1 %v3471_v21  ;;  %v3551_v20 = vor.u32 %v4628_v15, %v3550_v10  ;;  %v3390_v21 = vld [vmem:[#allocation9 + $0x128] sm:$0xf]  ;;  %v4620_v48 = vld [vmem:[#allocation9 + $0x234] sm:$0xf0] }
 0x103   :  { %2251 = vmatmul.bf16.vlgmr.msrb.gmra.mxu2 %v5196_v59  ;;  %v3391_v32 = vor.u32 %v4588_v22, %v3390_v21  ;;  %v4652_v52 = vld [vmem:[#allocation9 + $0x334] sm:$0xf0]  ;;  %v3502_v60 = vld [vmem:[#allocation9 + $0x208] sm:$0xf] }
 0x104   :  { %2299 = vmatpush.bf16.msra.mxu2 %v3615_v30  ;;  %2265 = vmatmul.bf16.vlgmr.msrb.gmra.mxu3 %v5198_v1  ;;  %v4656_v30 = vld [vmem:[#allocation9 + $0x354] sm:$0xf0]  ;;  %v3630_v62 = vld [vmem:[#allocation9 + $0x308] sm:$0xf] }
 0x105   :  { %2313 = vmatpush.bf16.msra.mxu3 %v3743_v33  ;;  %v4552_v33 = vld [vmem:[#allocation9 + $0x14] sm:$0xf0]  ;;  %v3663_v43 = vor.u32 %v4656_v30, %v3662_v29  ;;  %v3838_v12 = vld [vmem:[#allocation9 + $0x4a8] sm:$0xf] }
 0x106   :  { %2273 = vmatpush.bf16.msra.mxu0 %v3327_v38  ;;  %2287 = vmatpush.bf16.msra.mxu1 %v3455_v41  ;;  %v3535_v38 = vor.u32 %v4624_v26, %v3534_v25  ;;  %v3998_v41 = vld [vmem:[#allocation9 + $0x5e8] sm:$0xf]  ;;  %v3247_v49 = vor.u32 %v4552_v33, %v3246_v31  ;;  %v4704_v34 = vld [vmem:[#allocation9 + $0x4d4] sm:$0xf0] }
 0x107   :  { %v3999_v55 = vor.u32 %v4740_v45, %v3998_v41  ;;  %v4648_v63 = vld [vmem:[#allocation9 + $0x314] sm:$0xf0]  ;;  %v3855_v3 = vor.u32 %v4704_v34, %v3854_v54  ;;  %v3966_v15 = vld [vmem:[#allocation9 + $0x5a8] sm:$0xf] }
 0x108   :  { %2300 = vmatpush.bf16.msra.mxu2 %v3599_v46  ;;  %v3518_v46 = vld [vmem:[#allocation9 + $0x228] sm:$0xf]  ;;  %v4772_v2 = vld [vmem:[#allocation9 + $0x6f4] sm:$0xf0] }
 0x109   :  { %2314 = vmatpush.bf16.msra.mxu3 %v3727_v50  ;;  %v3646_v50 = vld [vmem:[#allocation9 + $0x328] sm:$0xf]  ;;  %v4804_v6 = vld [vmem:[#allocation9 + $0x7f4] sm:$0xf0] }
 0x10a   :  { %2274 = vmatpush.bf16.msra.mxu0 %v3311_v53  ;;  %2288 = vmatpush.bf16.msra.mxu1 %v3439_v56  ;;  %v3871_v53 = vor.u32 %v4708_v40, %v3870_v39  ;;  %v3519_v56 = vor.u32 %v4620_v48, %v3518_v46  ;;  %v3647_v58 = vor.u32 %v4652_v52, %v3646_v50  ;;  %v4700_v13 = vld [vmem:[#allocation9 + $0x4b4] sm:$0xf0]  ;;  %v4110_v17 = vld [vmem:[#allocation9 + $0x6c8] sm:$0xf] }
 0x10b   :  { %v3839_v11 = vor.u32 %v4700_v13, %v3838_v12  ;;  %v4238_v19 = vld [vmem:[#allocation9 + $0x7c8] sm:$0xf]  ;;  %v4764_v31 = vld [vmem:[#allocation9 + $0x6b4] sm:$0xf0] }
 0x10c   :  { %2301 = vmatpush.bf16.msra.mxu2 %v3583_v57  ;;  %v4736_v57 = vld [vmem:[#allocation9 + $0x5d4] sm:$0xf0]  ;;  %v3822_v22 = vld [vmem:[#allocation9 + $0x488] sm:$0xf] }
 0x10d   :  { %2315 = vmatpush.bf16.msra.mxu3 %v3711_v61  ;;  %v4616_v61 = vld [vmem:[#allocation9 + $0x214] sm:$0xf0]  ;;  %v3983_v7 = vor.u32 %v4736_v57, %v3982_v44  ;;  %v3950_v26 = vld [vmem:[#allocation9 + $0x588] sm:$0xf] }
 0x10e   :  { %2275 = vmatpush.bf16.msra.mxu0 %v3295_v0  ;;  %2289 = vmatpush.bf16.msra.mxu1 %v3423_v5  ;;  %v4126_v0 = vld [vmem:[#allocation9 + $0x6e8] sm:$0xf]  ;;  %v4796_v36 = vld [vmem:[#allocation9 + $0x7b4] sm:$0xf0] }
 0x10f   :  { %v4254_v5 = vld [vmem:[#allocation9 + $0x7e8] sm:$0xf]  ;;  %v4127_v10 = vor.u32 %v4772_v2, %v4126_v0  ;;  %v4692_v39 = vld [vmem:[#allocation9 + $0x474] sm:$0xf0] }
 0x110   :  { %2302 = vmatpush.bf16.msra.mxu2 %v3567_v9  ;;  %v3503_v9 = vor.u32 %v4616_v61, %v3502_v60  ;;  %v4255_v16 = vor.u32 %v4804_v6, %v4254_v5  ;;  %v4094_v30 = vld [vmem:[#allocation9 + $0x6a8] sm:$0xf]  ;;  %v4760_v48 = vld [vmem:[#allocation9 + $0x694] sm:$0xf0] }
 0x111   :  { %2316 = vmatpush.bf16.msra.mxu3 %v3695_v14  ;;  %v3631_v14 = vor.u32 %v4648_v63, %v3630_v62  ;;  %v4222_v33 = vld [vmem:[#allocation9 + $0x7a8] sm:$0xf]  ;;  %v4095_v40 = vor.u32 %v4764_v31, %v4094_v30  ;;  %v4792_v52 = vld [vmem:[#allocation9 + $0x794] sm:$0xf0] }
 0x112   :  { %2276 = vmatpush.bf16.msra.mxu0 %v3279_v51  ;;  %2290 = vmatpush.bf16.msra.mxu1 %v3407_v18  ;;  %v4732_v51 = vld [vmem:[#allocation9 + $0x5b4] sm:$0xf0]  ;;  %v3934_v41 = vld [vmem:[#allocation9 + $0x568] sm:$0xf]  ;;  %v4223_v45 = vor.u32 %v4796_v36, %v4222_v33  ;;  %v4574_v33 = vld [vmem:[#allocation9 + $0xcc] sm:$0xf] }
 0x113   :  { %v4768_v18 = vld [vmem:[#allocation9 + $0x6d4] sm:$0xf0]  ;;  %v3967_v21 = vor.u32 %v4732_v51, %v3966_v15  ;;  %v4078_v46 = vld [vmem:[#allocation9 + $0x688] sm:$0xf] }
 0x114   :  { %2303 = vmatpush.bf16.msra.mxu2 %v3551_v20  ;;  %v4800_v20 = vld [vmem:[#allocation9 + $0x7d4] sm:$0xf0]  ;;  %v4111_v25 = vor.u32 %v4768_v18, %v4110_v17  ;;  %v4206_v50 = vld [vmem:[#allocation9 + $0x788] sm:$0xf] }
 0x115   :  { %2317 = vmatpush.bf16.msra.mxu3 %v3679_v23  ;;  %v4696_v23 = vld [vmem:[#allocation9 + $0x494] sm:$0xf0]  ;;  %v4239_v29 = vor.u32 %v4800_v20, %v4238_v19  ;;  %v4207_v44 = vor.u32 %v4792_v52, %v4206_v50  ;;  %v4062_v57 = vld [vmem:[#allocation9 + $0x668] sm:$0xf]  ;;  %v4578_v19 = vld [vmem:[#allocation9 + $0xec] sm:$0xf] }
 0x116   :  { %2277 = vmatpush.bf16.msra.mxu0 %v3263_v27  ;;  %2291 = vmatpush.bf16.msra.mxu1 %v3391_v32  ;;  %v4728_v27 = vld [vmem:[#allocation9 + $0x594] sm:$0xf0]  ;;  %v3823_v32 = vor.u32 %v4696_v23, %v3822_v22  ;;  %v4190_v61 = vld [vmem:[#allocation9 + $0x768] sm:$0xf]  ;;  %v3360_v20 = vld [vmem:[#allocation9 + $0xf8] sm:$0xf0] }
 0x117   :  { %v3951_v37 = vor.u32 %v4728_v27, %v3950_v26  ;;  %v4688_v54 = vld [vmem:[#allocation9 + $0x454] sm:$0xf0]  ;;  %v3774_v0 = vld [vmem:[#allocation9 + $0x428] sm:$0xf]  ;;  %v3488_v23 = vld [vmem:[#allocation9 + $0x1f8] sm:$0xf0] }
 0x118   :  { %2304 = vmatpush.bf16.msra.mxu2 %v3535_v38  ;;  %v3806_v38 = vld [vmem:[#allocation9 + $0x468] sm:$0xf]  ;;  %v4720_v34 = vld [vmem:[#allocation9 + $0x554] sm:$0xf0]  ;;  %v3616_v50 = vld [vmem:[#allocation9 + $0x2f8] sm:$0xf0] }
 0x119   :  { %2318 = vmatpush.bf16.msra.mxu3 %v3663_v43  ;;  %v4724_v43 = vld [vmem:[#allocation9 + $0x574] sm:$0xf0]  ;;  %v3902_v5 = vld [vmem:[#allocation9 + $0x528] sm:$0xf] }
 0x11a   :  { %2278 = vmatpush.bf16.msra.mxu0 %v3247_v49  ;;  %2292 = vmatpush.bf16.msra.mxu1 %v3375_v24  ;;  %v3807_v49 = vor.u32 %v4692_v39, %v3806_v38  ;;  %v3935_v24 = vor.u32 %v4724_v43, %v3934_v41  ;;  %v4788_v62 = vld [vmem:[#allocation9 + $0x774] sm:$0xf0]  ;;  %v3758_v15 = vld [vmem:[#allocation9 + $0x408] sm:$0xf]  ;;  %v3344_v38 = vld [vmem:[#allocation9 + $0xd8] sm:$0xf0] }
 0x11b   :  { %v4684_v2 = vld [vmem:[#allocation9 + $0x434] sm:$0xf0]  ;;  %v3886_v17 = vld [vmem:[#allocation9 + $0x508] sm:$0xf]  ;;  %v4606_v39 = vld [vmem:[#allocation9 + $0x1cc] sm:$0xf]  ;;  %v3347_v52 = vor.u32 %v4574_v33, %v3344_v38 }
 0x11c   :  { %2305 = vmatpush.bf16.msra.mxu2 %v3519_v56  ;;  %v3918_v56 = vld [vmem:[#allocation9 + $0x548] sm:$0xf]  ;;  %v4716_v6 = vld [vmem:[#allocation9 + $0x534] sm:$0xf0]  ;;  %v3775_v13 = vor.u32 %v4684_v2, %v3774_v0  ;;  %v4670_v2 = vld [vmem:[#allocation9 + $0x3cc] sm:$0xf] }
 0x11d   :  { %2319 = vmatpush.bf16.msra.mxu3 %v3647_v58  ;;  %2279 = vmatmul.bf16.vlgmr.msra.gmra.mxu0 %v5146_v4  ;;  %v4756_v58 = vld [vmem:[#allocation9 + $0x674] sm:$0xf0]  ;;  %v3919_v63 = vor.u32 %v4720_v34, %v3918_v56  ;;  %v3903_v51 = vor.u32 %v4716_v6, %v3902_v5  ;;  %v4014_v43 = vld [vmem:[#allocation9 + $0x608] sm:$0xf]  ;;  %v4570_v56 = vld [vmem:[#allocation9 + $0xac] sm:$0xf] }
 0x11e   :  { %2327 = vmatpush.bf16.msrb.mxu0 %v3871_v53  ;;  %2341 = vmatpush.bf16.msrb.mxu1 %v3999_v55  ;;  %v3790_v53 = vld [vmem:[#allocation9 + $0x448] sm:$0xf]  ;;  %v4079_v55 = vor.u32 %v4760_v48, %v4078_v46  ;;  %v4752_v12 = vld [vmem:[#allocation9 + $0x654] sm:$0xf0]  ;;  %v3328_v34 = vld [vmem:[#allocation9 + $0xb8] sm:$0xf0] }
 0x11f   :  { %2293 = vmatmul.bf16.vlgmr.msra.gmra.mxu1 %v5150_v8  ;;  %v3791_v60 = vor.u32 %v4688_v54, %v3790_v53  ;;  %v4712_v18 = vld [vmem:[#allocation9 + $0x514] sm:$0xf0]  ;;  %v4142_v46 = vld [vmem:[#allocation9 + $0x708] sm:$0xf]  ;;  %v3744_v53 = vld [vmem:[#allocation9 + $0x3f8] sm:$0xf0]  ;;  %v3331_v0 = vor.u32 %v4570_v56, %v3328_v34 }
 0x120   :  { %2306 = vmatpush.bf16.msra.mxu2 %v3503_v9  ;;  %v4046_v9 = vld [vmem:[#allocation9 + $0x648] sm:$0xf]  ;;  %v4748_v26 = vld [vmem:[#allocation9 + $0x634] sm:$0xf0]  ;;  %v3887_v31 = vor.u32 %v4712_v18, %v3886_v17  ;;  %v4566_v6 = vld [vmem:[#allocation9 + $0x8c] sm:$0xf] }
 0x121   :  { %2320 = vmatpush.bf16.msra.mxu3 %v3631_v14  ;;  %v4174_v14 = vld [vmem:[#allocation9 + $0x748] sm:$0xf]  ;;  %v4780_v30 = vld [vmem:[#allocation9 + $0x734] sm:$0xf0]  ;;  %v3712_v17 = vld [vmem:[#allocation9 + $0x3b8] sm:$0xf0] }
 0x122   :  { %2328 = vmatpush.bf16.msrb.mxu0 %v3855_v3  ;;  %2342 = vmatpush.bf16.msrb.mxu1 %v3983_v7  ;;  %v4063_v3 = vor.u32 %v4756_v58, %v4062_v57  ;;  %v4191_v7 = vor.u32 %v4788_v62, %v4190_v61  ;;  %v4776_v48 = vld [vmem:[#allocation9 + $0x714] sm:$0xf0]  ;;  %v4602_v58 = vld [vmem:[#allocation9 + $0x1ac] sm:$0xf] }
 0x123   :  { %2307 = vmatmul.bf16.vlgmr.msra.gmra.mxu2 %v5167_v42  ;;  %v4638_v62 = vld [vmem:[#allocation9 + $0x2cc] sm:$0xf] }
 0x124   :  { %2355 = vmatpush.bf16.msrb.mxu2 %v4127_v10  ;;  %2321 = vmatmul.bf16.vlgmr.msra.gmra.mxu3 %v5170_v47  ;;  %v4784_v10 = vld [vmem:[#allocation9 + $0x754] sm:$0xf0]  ;;  %v4558_v33 = vld [vmem:[#allocation9 + $0x4c] sm:$0xf] }
 0x125   :  { %2369 = vmatpush.bf16.msrb.mxu3 %v4255_v16  ;;  %v4680_v16 = vld [vmem:[#allocation9 + $0x414] sm:$0xf0]  ;;  %v4175_v22 = vor.u32 %v4784_v10, %v4174_v14  ;;  %v4634_v10 = vld [vmem:[#allocation9 + $0x2ac] sm:$0xf] }
 0x126   :  { %2329 = vmatpush.bf16.msrb.mxu0 %v3839_v11  ;;  %2343 = vmatpush.bf16.msrb.mxu1 %v3967_v21  ;;  %v4047_v11 = vor.u32 %v4752_v12, %v4046_v9  ;;  %v4610_v21 = vld [vmem:[#allocation9 + $0x1ec] sm:$0xf]  ;;  %v3759_v27 = vor.u32 %v4680_v16, %v3758_v15  ;;  %v3584_v15 = vld [vmem:[#allocation9 + $0x2b8] sm:$0xf0] }
 0x127   :  { %v3491_v36 = vor.u32 %v4610_v21, %v3488_v23  ;;  %v4598_v12 = vld [vmem:[#allocation9 + $0x18c] sm:$0xf] }
 0x128   :  { %2356 = vmatpush.bf16.msrb.mxu2 %v4111_v25  ;;  %v4030_v25 = vld [vmem:[#allocation9 + $0x628] sm:$0xf]  ;;  %v4666_v16 = vld [vmem:[#allocation9 + $0x3ac] sm:$0xf] }
 0x129   :  { %2370 = vmatpush.bf16.msrb.mxu3 %v4239_v29  ;;  %v4158_v29 = vld [vmem:[#allocation9 + $0x728] sm:$0xf]  ;;  %v4594_v21 = vld [vmem:[#allocation9 + $0x16c] sm:$0xf]  ;;  %v3715_v23 = vor.u32 %v4666_v16, %v3712_v17 }
 0x12a   :  { %2330 = vmatpush.bf16.msrb.mxu0 %v3823_v32  ;;  %2344 = vmatpush.bf16.msrb.mxu1 %v3951_v37  ;;  %v3363_v32 = vor.u32 %v4578_v19, %v3360_v20  ;;  %v4031_v37 = vor.u32 %v4748_v26, %v4030_v25  ;;  %v4159_v41 = vor.u32 %v4780_v30, %v4158_v29  ;;  %v3296_v19 = vld [vmem:[#allocation9 + $0x78] sm:$0xf0]  ;;  %v4630_v25 = vld [vmem:[#allocation9 + $0x28c] sm:$0xf] }
 0x12b   :  { %v3587_v20 = vor.u32 %v4634_v10, %v3584_v15  ;;  %v3568_v26 = vld [vmem:[#allocation9 + $0x298] sm:$0xf0]  ;;  %v4662_v29 = vld [vmem:[#allocation9 + $0x38c] sm:$0xf] }
 0x12c   :  { %2357 = vmatpush.bf16.msrb.mxu2 %v4095_v40  ;;  %v3472_v40 = vld [vmem:[#allocation9 + $0x1d8] sm:$0xf0]  ;;  %v4590_v38 = vld [vmem:[#allocation9 + $0x14c] sm:$0xf] }
 0x12d   :  { %2371 = vmatpush.bf16.msrb.mxu3 %v4223_v45  ;;  %v4744_v45 = vld [vmem:[#allocation9 + $0x614] sm:$0xf0]  ;;  %v3475_v54 = vor.u32 %v4606_v39, %v3472_v40  ;;  %v3696_v30 = vld [vmem:[#allocation9 + $0x398] sm:$0xf0]  ;;  %v4622_v34 = vld [vmem:[#allocation9 + $0x24c] sm:$0xf] }
 0x12e   :  { %2331 = vmatpush.bf16.msrb.mxu0 %v3807_v49  ;;  %2345 = vmatpush.bf16.msrb.mxu1 %v3935_v24  ;;  %v4642_v49 = vld [vmem:[#allocation9 + $0x2ec] sm:$0xf]  ;;  %v3408_v39 = vld [vmem:[#allocation9 + $0x158] sm:$0xf0]  ;;  %v3699_v40 = vor.u32 %v4662_v29, %v3696_v30 }
 0x12f   :  { %v4674_v24 = vld [vmem:[#allocation9 + $0x3ec] sm:$0xf]  ;;  %v3619_v57 = vor.u32 %v4642_v49, %v3616_v50  ;;  %v3411_v49 = vor.u32 %v4590_v38, %v3408_v39  ;;  %v3520_v15 = vld [vmem:[#allocation9 + $0x238] sm:$0xf0] }
 0x130   :  { %2358 = vmatpush.bf16.msrb.mxu2 %v4079_v55  ;;  %v4015_v55 = vor.u32 %v4744_v45, %v4014_v43  ;;  %v3747_v61 = vor.u32 %v4674_v24, %v3744_v53  ;;  %v3552_v43 = vld [vmem:[#allocation9 + $0x278] sm:$0xf0]  ;;  %v4554_v50 = vld [vmem:[#allocation9 + $0x2c] sm:$0xf] }
 0x131   :  { %2372 = vmatpush.bf16.msrb.mxu3 %v4207_v44  ;;  %v4143_v44 = vor.u32 %v4776_v48, %v4142_v46  ;;  %v4658_v46 = vld [vmem:[#allocation9 + $0x36c] sm:$0xf]  ;;  %v3680_v48 = vld [vmem:[#allocation9 + $0x378] sm:$0xf0] }
 0x132   :  { %2332 = vmatpush.bf16.msrb.mxu0 %v3791_v60  ;;  %2346 = vmatpush.bf16.msrb.mxu1 %v3919_v63  ;;  %v3456_v60 = vld [vmem:[#allocation9 + $0x1b8] sm:$0xf0]  ;;  %v4586_v53 = vld [vmem:[#allocation9 + $0x12c] sm:$0xf]  ;;  %v3683_v56 = vor.u32 %v4658_v46, %v3680_v48 }
 0x133   :  { %v3600_v63 = vld [vmem:[#allocation9 + $0x2d8] sm:$0xf0]  ;;  %v3459_v5 = vor.u32 %v4602_v58, %v3456_v60  ;;  %v4654_v58 = vld [vmem:[#allocation9 + $0x34c] sm:$0xf] }
 0x134   :  { %2359 = vmatpush.bf16.msrb.mxu2 %v4063_v3  ;;  %v3728_v3 = vld [vmem:[#allocation9 + $0x3d8] sm:$0xf0]  ;;  %v3603_v9 = vor.u32 %v4638_v62, %v3600_v63  ;;  %v4618_v10 = vld [vmem:[#allocation9 + $0x22c] sm:$0xf] }
 0x135   :  { %2373 = vmatpush.bf16.msrb.mxu3 %v4191_v7  ;;  %v3312_v7 = vld [vmem:[#allocation9 + $0x98] sm:$0xf0]  ;;  %v3731_v14 = vor.u32 %v4670_v2, %v3728_v3  ;;  %v4650_v17 = vld [vmem:[#allocation9 + $0x32c] sm:$0xf] }
 0x136   :  { %2333 = vmatpush.bf16.msrb.mxu0 %v3775_v13  ;;  %2347 = vmatpush.bf16.msrb.mxu1 %v3903_v51  ;;  %v3440_v13 = vld [vmem:[#allocation9 + $0x198] sm:$0xf0]  ;;  %v3315_v51 = vor.u32 %v4566_v6, %v3312_v7  ;;  %v4738_v7 = vld [vmem:[#allocation9 + $0x5ec] sm:$0xf] }
 0x137   :  { %v3443_v18 = vor.u32 %v4598_v12, %v3440_v13  ;;  %v3664_v60 = vld [vmem:[#allocation9 + $0x358] sm:$0xf0]  ;;  %v4614_v29 = vld [vmem:[#allocation9 + $0x20c] sm:$0xf] }
 0x138   :  { %2360 = vmatpush.bf16.msrb.mxu2 %v4047_v11  ;;  %v4562_v11 = vld [vmem:[#allocation9 + $0x6c] sm:$0xf]  ;;  %v3248_v63 = vld [vmem:[#allocation9 + $0x18] sm:$0xf0]  ;;  %v3667_v13 = vor.u32 %v4654_v58, %v3664_v60 }
 0x139   :  { %2374 = vmatpush.bf16.msrb.mxu3 %v4175_v22  ;;  %v3424_v22 = vld [vmem:[#allocation9 + $0x178] sm:$0xf0]  ;;  %v4698_v46 = vld [vmem:[#allocation9 + $0x4ac] sm:$0xf] }
 0x13a   :  { %2334 = vmatpush.bf16.msrb.mxu0 %v3759_v27  ;;  %2348 = vmatpush.bf16.msrb.mxu1 %v3887_v31  ;;  %v3299_v27 = vor.u32 %v4562_v11, %v3296_v19  ;;  %v5218_v31 = vpop.f32.mrf.mxu0  ;;  %v3376_v2 = vld [vmem:[#allocation9 + $0x118] sm:$0xf0]  ;;  %v4798_v58 = vld [vmem:[#allocation9 + $0x7cc] sm:$0xf] }
 0x13b   :  { %v3872_v6 = vld [vmem:[#allocation9 + $0x4f8] sm:$0xf0] }
 0x13c   :  { %2361 = vmatpush.bf16.msrb.mxu2 %v4031_v37  ;;  %v3571_v37 = vor.u32 %v4630_v25, %v3568_v26  ;;  %v4734_v25 = vld [vmem:[#allocation9 + $0x5cc] sm:$0xf]  ;;  %v3984_v26 = vld [vmem:[#allocation9 + $0x5d8] sm:$0xf0] }
 0x13d   :  { %2375 = vmatpush.bf16.msrb.mxu3 %v4159_v41  ;;  %2335 = vmatmul.bf16.vlgmr.msrb.gmra.mxu0 %v5184_v28  ;;  %v4626_v41 = vld [vmem:[#allocation9 + $0x26c] sm:$0xf]  ;;  %v3504_v30 = vld [vmem:[#allocation9 + $0x218] sm:$0xf0] }
 0x13e   :  { %2383 = vmatpush.bf16.msra.mxu0 %v3363_v32  ;;  %2397 = vmatpush.bf16.msra.mxu1 %v3491_v36  ;;  %v3427_v32 = vor.u32 %v4594_v21, %v3424_v22  ;;  %v3280_v36 = vld [vmem:[#allocation9 + $0x58] sm:$0xf0]  ;;  %v3555_v24 = vor.u32 %v4626_v41, %v3552_v43  ;;  %v3523_v22 = vor.u32 %v4618_v10, %v3520_v15  ;;  %v4690_v15 = vld [vmem:[#allocation9 + $0x46c] sm:$0xf] }
 0x13f   :  { %2349 = vmatmul.bf16.vlgmr.msrb.gmra.mxu1 %v5186_v35  ;;  %v3283_v45 = vor.u32 %v4558_v33, %v3280_v36  ;;  %v3632_v33 = vld [vmem:[#allocation9 + $0x318] sm:$0xf0]  ;;  %v4770_v36 = vld [vmem:[#allocation9 + $0x6ec] sm:$0xf]  ;;  %v3987_v43 = vor.u32 %v4734_v25, %v3984_v26 }
 0x140   :  { %2362 = vmatpush.bf16.msrb.mxu2 %v4015_v55  ;;  %v5220_v55 = vpop.f32.mrf.mxu1  ;;  %v4256_v41 = vld [vmem:[#allocation9 + $0x7f8] sm:$0xf0]  ;;  %v4686_v26 = vld [vmem:[#allocation9 + $0x44c] sm:$0xf] }
 0x141   :  { %2376 = vmatpush.bf16.msrb.mxu3 %v4143_v44  ;;  %v3536_v44 = vld [vmem:[#allocation9 + $0x258] sm:$0xf0] }
 0x142   :  { %2384 = vmatpush.bf16.msra.mxu0 %v3347_v52  ;;  %2398 = vmatpush.bf16.msra.mxu1 %v3475_v54  ;;  %v3264_v52 = vld [vmem:[#allocation9 + $0x38] sm:$0xf0]  ;;  %v3539_v3 = vor.u32 %v4622_v34, %v3536_v44 }
 0x143   :  { %2363 = vmatmul.bf16.vlgmr.msrb.gmra.mxu2 %v5196_v59  ;;  %v3392_v54 = vld [vmem:[#allocation9 + $0x138] sm:$0xf0] }
 0x144   :  { %2411 = vmatpush.bf16.msra.mxu2 %v3619_v57  ;;  %2377 = vmatmul.bf16.vlgmr.msrb.gmra.mxu3 %v5198_v1  ;;  %v3267_v57 = vor.u32 %v4554_v50, %v3264_v52  ;;  %v3395_v62 = vor.u32 %v4586_v53, %v3392_v54  ;;  %v3840_v48 = vld [vmem:[#allocation9 + $0x4b8] sm:$0xf0]  ;;  %v4730_v52 = vld [vmem:[#allocation9 + $0x5ac] sm:$0xf] }
 0x145   :  { %2425 = vmatpush.bf16.msra.mxu3 %v3747_v61  ;;  %v4550_v61 = vld [vmem:[#allocation9 + $0xc] sm:$0xf]  ;;  %v4240_v60 = vld [vmem:[#allocation9 + $0x7d8] sm:$0xf0] }
 0x146   :  { %2385 = vmatpush.bf16.msra.mxu0 %v3331_v0  ;;  %2399 = vmatpush.bf16.msra.mxu1 %v3459_v5  ;;  %v4582_v0 = vld [vmem:[#allocation9 + $0x10c] sm:$0xf]  ;;  %v5224_v12 = vpop.f32.mrf.mxu2  ;;  %v3251_v16 = vor.u32 %v4550_v61, %v3248_v63  ;;  %v3824_v63 = vld [vmem:[#allocation9 + $0x498] sm:$0xf0] }
 0x147   :  { %v4706_v5 = vld [vmem:[#allocation9 + $0x4ec] sm:$0xf]  ;;  %v3379_v11 = vor.u32 %v4582_v0, %v3376_v2  ;;  %v3952_v2 = vld [vmem:[#allocation9 + $0x598] sm:$0xf0] }
 0x148   :  { %2412 = vmatpush.bf16.msra.mxu2 %v3603_v9  ;;  %v5222_v9 = vpop.f32.mrf.mxu0  ;;  %v3875_v19 = vor.u32 %v4706_v5, %v3872_v6  ;;  %v5228_v38 = vpop.f32.mrf.mxu1  ;;  %v4766_v54 = vld [vmem:[#allocation9 + $0x6cc] sm:$0xf]  ;;  %v4096_v6 = vld [vmem:[#allocation9 + $0x6b8] sm:$0xf0] }
 0x149   :  { %2426 = vmatpush.bf16.msra.mxu3 %v3731_v14  ;;  %v4000_v14 = vld [vmem:[#allocation9 + $0x5f8] sm:$0xf0]  ;;  %v4726_v0 = vld [vmem:[#allocation9 + $0x58c] sm:$0xf] }
 0x14a   :  { %2386 = vmatpush.bf16.msra.mxu0 %v3315_v51  ;;  %2400 = vmatpush.bf16.msra.mxu1 %v3443_v18  ;;  %v5226_v51 = vpop.f32.mrf.mxu3  ;;  %v3648_v18 = vld [vmem:[#allocation9 + $0x338] sm:$0xf0]  ;;  %v4003_v21 = vor.u32 %v4738_v7, %v4000_v14  ;;  %v4762_v5 = vld [vmem:[#allocation9 + $0x6ac] sm:$0xf]  ;;  %v3955_v10 = vor.u32 %v4726_v0, %v3952_v2 }
 0x14b   :  { %v4224_v14 = vld [vmem:[#allocation9 + $0x7b8] sm:$0xf0]  ;;  %v4678_v2 = vld [vmem:[#allocation9 + $0x40c] sm:$0xf] }
 0x14c   :  { %2413 = vmatpush.bf16.msra.mxu2 %v3587_v20  ;;  %v4702_v20 = vld [vmem:[#allocation9 + $0x4cc] sm:$0xf]  ;;  %v4208_v25 = vld [vmem:[#allocation9 + $0x798] sm:$0xf0] }
 0x14d   :  { %2427 = vmatpush.bf16.msra.mxu3 %v3715_v23  ;;  %v3856_v23 = vld [vmem:[#allocation9 + $0x4d8] sm:$0xf0] }
 0x14e   :  { %2387 = vmatpush.bf16.msra.mxu0 %v3299_v27  ;;  %2401 = vmatpush.bf16.msra.mxu1 %v3427_v32  ;;  %v3651_v27 = vor.u32 %v4650_v17, %v3648_v18  ;;  %v4646_v32 = vld [vmem:[#allocation9 + $0x30c] sm:$0xf]  ;;  %v3859_v39 = vor.u32 %v4702_v20, %v3856_v23  ;;  %v5234_v44 = vpop.f32.mrf.mxu2  ;;  %v4099_v18 = vor.u32 %v4762_v5, %v4096_v6  ;;  %v4176_v0 = vld [vmem:[#allocation9 + $0x758] sm:$0xf0] }
 0x14f   :  { %v4790_v23 = vld [vmem:[#allocation9 + $0x78c] sm:$0xf]  ;;  %v3760_v5 = vld [vmem:[#allocation9 + $0x418] sm:$0xf0] }
 0x150   :  { %2414 = vmatpush.bf16.msra.mxu2 %v3571_v37  ;;  %v4128_v37 = vld [vmem:[#allocation9 + $0x6f8] sm:$0xf0]  ;;  %v5232_v34 = vpop.f32.mrf.mxu0  ;;  %v5240_v17 = vpop.f32.mrf.mxu1  ;;  %v4710_v6 = vld [vmem:[#allocation9 + $0x50c] sm:$0xf] }
 0x151   :  { %2428 = vmatpush.bf16.msra.mxu3 %v3699_v40  ;;  %v4802_v40 = vld [vmem:[#allocation9 + $0x7ec] sm:$0xf]  ;;  %v4131_v50 = vor.u32 %v4770_v36, %v4128_v37  ;;  %v3920_v36 = vld [vmem:[#allocation9 + $0x558] sm:$0xf0] }
 0x152   :  { %2388 = vmatpush.bf16.msra.mxu0 %v3283_v45  ;;  %2402 = vmatpush.bf16.msra.mxu1 %v3411_v49  ;;  %v3507_v45 = vor.u32 %v4614_v29, %v3504_v30  ;;  %v3635_v49 = vor.u32 %v4646_v32, %v3632_v33  ;;  %v4259_v53 = vor.u32 %v4802_v40, %v4256_v41  ;;  %v5236_v61 = vpop.f32.mrf.mxu3  ;;  %v4718_v33 = vld [vmem:[#allocation9 + $0x54c] sm:$0xf] }
 0x153   :  { %v5249_v37 = vld [vmem:[%s5301_s4] sm:$0xf]  ;;  %v4211_v40 = vor.u32 %v4790_v23, %v4208_v25  ;;  %v4160_v25 = vld [vmem:[#allocation9 + $0x738] sm:$0xf0] }
 0x154   :  { %2415 = vmatpush.bf16.msra.mxu2 %v3555_v24  ;;  %v3968_v24 = vld [vmem:[#allocation9 + $0x5b8] sm:$0xf0]  ;;  %v4754_v41 = vld [vmem:[#allocation9 + $0x66c] sm:$0xf] }
 0x155   :  { %2429 = vmatpush.bf16.msra.mxu3 %v3683_v56  ;;  %v4112_v56 = vld [vmem:[#allocation9 + $0x6d8] sm:$0xf0]  ;;  %v4778_v23 = vld [vmem:[#allocation9 + $0x72c] sm:$0xf] }
 0x156   :  { %2389 = vmatpush.bf16.msra.mxu0 %v3267_v57  ;;  %2403 = vmatpush.bf16.msra.mxu1 %v3395_v62  ;;  %v3843_v57 = vor.u32 %v4698_v46, %v3840_v48  ;;  %v4694_v62 = vld [vmem:[#allocation9 + $0x48c] sm:$0xf]  ;;  %v5244_v30 = vpop.f32.mrf.mxu2  ;;  %v4192_v48 = vld [vmem:[#allocation9 + $0x778] sm:$0xf0] }
 0x157   :  { %v3827_v7 = vor.u32 %v4694_v62, %v3824_v63  ;;  %v4786_v46 = vld [vmem:[#allocation9 + $0x76c] sm:$0xf] }
 0x158   :  { %2416 = vmatpush.bf16.msra.mxu2 %v3539_v3  ;;  %v4243_v3 = vor.u32 %v4798_v58, %v4240_v60  ;;  %v5242_v29 = vpop.f32.mrf.mxu0  ;;  %v4750_v58 = vld [vmem:[#allocation9 + $0x64c] sm:$0xf]  ;;  %v4048_v60 = vld [vmem:[#allocation9 + $0x658] sm:$0xf0]  ;;  %v5255_v62 = vpop.f32.mrf.mxu1 }
 0x159   :  { %2430 = vmatpush.bf16.msra.mxu3 %v3667_v13  ;;  %v4794_v13 = vld [vmem:[#allocation9 + $0x7ac] sm:$0xf] }
 0x15a   :  { %2390 = vmatpush.bf16.msra.mxu0 %v3251_v16  ;;  %2404 = vmatpush.bf16.msra.mxu1 %v3379_v11  ;;  %v3808_v16 = vld [vmem:[#allocation9 + $0x478] sm:$0xf0]  ;;  %v4722_v11 = vld [vmem:[#allocation9 + $0x56c] sm:$0xf]  ;;  %v4227_v20 = vor.u32 %v4794_v13, %v4224_v14  ;;  %v4051_v13 = vor.u32 %v4750_v58, %v4048_v60  ;;  %v4318_v14 = vld [vmem:[#allocation11 + $0x70] sm:$0xf] }
 0x15b   :  { %v4366_v60 = vld [vmem:[#allocation11 + $0xd0] sm:$0xf] }
 0x15c   :  { %2417 = vmatpush.bf16.msra.mxu2 %v3523_v22  ;;  %v3811_v22 = vor.u32 %v4690_v15, %v3808_v16  ;;  %v4382_v15 = vld [vmem:[#allocation11 + $0xf0] sm:$0xf] }
 0x15d   :  { %2431 = vmatpush.bf16.msra.mxu3 %v3651_v27  ;;  %2391 = vmatmul.bf16.vlgmr.msra.gmra.mxu0 %v5146_v4  ;;  %v3971_v4 = vor.u32 %v4730_v52, %v3968_v24  ;;  %v3792_v27 = vld [vmem:[#allocation9 + $0x458] sm:$0xf0]  ;;  %v759_v24 = vperm.slane %v5249_v37, 0 }
 0x15e   :  { %2439 = vmatpush.bf16.msrb.mxu0 %v3875_v19  ;;  %2453 = vmatpush.bf16.msrb.mxu1 %v4003_v21  ;;  %v3936_v19 = vld [vmem:[#allocation9 + $0x578] sm:$0xf0]  ;;  %v4758_v21 = vld [vmem:[#allocation9 + $0x68c] sm:$0xf] }
 0x15f   :  { %2405 = vmatmul.bf16.vlgmr.msra.gmra.mxu1 %v5150_v8  ;;  %v4115_v8 = vor.u32 %v4766_v54, %v4112_v56  ;;  %v3776_v52 = vld [vmem:[#allocation9 + $0x438] sm:$0xf0]  ;;  %v4714_v54 = vld [vmem:[#allocation9 + $0x52c] sm:$0xf]  ;;  %v2057_v16 = vadd.f32 %v5218_v31, %v759_v24 }
 0x160   :  { %2418 = vmatpush.bf16.msra.mxu2 %v3507_v45  ;;  %v3795_v45 = vor.u32 %v4686_v26, %v3792_v27  ;;  %v3904_v56 = vld [vmem:[#allocation9 + $0x538] sm:$0xf0] }
 0x161   :  { %2432 = vmatpush.bf16.msra.mxu3 %v3635_v49  ;;  %v3923_v49 = vor.u32 %v4718_v33, %v3920_v36  ;;  %v4310_v36 = vld [vmem:[#allocation11 + $0x60] sm:$0xf] }
 0x162   :  { %2440 = vmatpush.bf16.msrb.mxu0 %v3859_v39  ;;  %2454 = vmatpush.bf16.msrb.mxu1 %v3987_v43  ;;  %v5251_v39 = vpop.f32.mrf.mxu3  ;;  %v4064_v43 = vld [vmem:[#allocation9 + $0x678] sm:$0xf0] }
 0x163   :  { %2419 = vmatmul.bf16.vlgmr.msra.gmra.mxu2 %v5167_v42  ;;  %v4080_v42 = vld [vmem:[#allocation9 + $0x698] sm:$0xf0] }
 0x164   :  { %2467 = vmatpush.bf16.msrb.mxu2 %v4131_v50  ;;  %2433 = vmatmul.bf16.vlgmr.msra.gmra.mxu3 %v5170_v47  ;;  %v3939_v47 = vor.u32 %v4722_v11, %v3936_v19  ;;  %v4083_v32 = vor.u32 %v4758_v21, %v4080_v42  ;;  %v4682_v50 = vld [vmem:[#allocation9 + $0x42c] sm:$0xf]  ;;  %v4032_v19 = vld [vmem:[#allocation9 + $0x638] sm:$0xf0]  ;;  %v2168_v21 = vpop.f32.mrf.mxu0  ;;  %v5259_v42 = vpop.f32.mrf.mxu2 }
 0x165   :  { %2481 = vmatpush.bf16.msrb.mxu3 %v4259_v53  ;;  %v4067_v53 = vor.u32 %v4754_v41, %v4064_v43  ;;  %v3779_v63 = vor.u32 %v4682_v50, %v3776_v52  ;;  %v4746_v11 = vld [vmem:[#allocation9 + $0x62c] sm:$0xf]  ;;  %v2071_v41 = vadd.f32 %v5220_v55, %v2057_v16  ;;  %v4163_v43 = vor.u32 %v4778_v23, %v4160_v25  ;;  %v4144_v50 = vld [vmem:[#allocation9 + $0x718] sm:$0xf0]  ;;  %v4812_v16 = vld [vmem:[#allocation11 + $0x34] sm:$0xf0] }
 0x166   :  { %2441 = vmatpush.bf16.msrb.mxu0 %v3843_v57  ;;  %2455 = vmatpush.bf16.msrb.mxu1 %v3971_v4  ;;  %v4195_v57 = vor.u32 %v4786_v46, %v4192_v48  ;;  %v2059_v4 = vadd.f32 %v5222_v9, %v759_v24  ;;  %v4035_v33 = vor.u32 %v4746_v11, %v4032_v19  ;;  %v4742_v46 = vld [vmem:[#allocation9 + $0x60c] sm:$0xf]  ;;  %v4016_v48 = vld [vmem:[#allocation9 + $0x618] sm:$0xf0]  ;;  %v4810_v23 = vld [vmem:[#allocation11 + $0x24] sm:$0xf0] }
 0x167   :  { %v2085_v52 = vadd.f32 %v5224_v12, %v2071_v41  ;;  %v4019_v55 = vor.u32 %v4742_v46, %v4016_v48  ;;  %v760_v12 = vperm.slane %v5249_v37, 1  ;;  %v4824_v46 = vld [vmem:[#allocation11 + $0x94] sm:$0xf0] }
 0x168   :  { %2468 = vmatpush.bf16.msrb.mxu2 %v4115_v8  ;;  %v4782_v8 = vld [vmem:[#allocation9 + $0x74c] sm:$0xf] }
 0x169   :  { %2482 = vmatpush.bf16.msrb.mxu3 %v4243_v3  ;;  %v3907_v3 = vor.u32 %v4714_v54, %v3904_v56  ;;  %v4179_v9 = vor.u32 %v4782_v8, %v4176_v0  ;;  %v4302_v56 = vld [vmem:[#allocation11 + $0x50] sm:$0xf] }
 0x16a   :  { %2442 = vmatpush.bf16.msrb.mxu0 %v3827_v7  ;;  %2456 = vmatpush.bf16.msrb.mxu1 %v3955_v10  ;;  %v3888_v7 = vld [vmem:[#allocation9 + $0x518] sm:$0xf0]  ;;  %v4820_v10 = vld [vmem:[#allocation11 + $0x74] sm:$0xf0] }
 0x16b   :  { %v3891_v26 = vor.u32 %v4710_v6, %v3888_v7  ;;  %v4319_v27 = vor.u32 %v4820_v10, %v4318_v14  ;;  %v4358_v7 = vld [vmem:[#allocation11 + $0xc0] sm:$0xf] }
 0x16c   :  { %2469 = vmatpush.bf16.msrb.mxu2 %v4099_v18  ;;  %v4836_v18 = vld [vmem:[#allocation11 + $0xf4] sm:$0xf0]  ;;  %v2170_v0 = vpop.f32.mrf.mxu0 }
 0x16d   :  { %2483 = vmatpush.bf16.msrb.mxu3 %v4227_v20  ;;  %v2073_v20 = vadd.f32 %v5228_v38, %v2059_v4  ;;  %v4374_v38 = vld [vmem:[#allocation11 + $0xe0] sm:$0xf]  ;;  %v4832_v4 = vld [vmem:[#allocation11 + $0xd4] sm:$0xf0] }
 0x16e   :  { %2443 = vmatpush.bf16.msrb.mxu0 %v3811_v22  ;;  %2457 = vmatpush.bf16.msrb.mxu1 %v3939_v47  ;;  %v3763_v22 = vor.u32 %v4678_v2, %v3760_v5  ;;  %v5261_v47 = vpop.f32.mrf.mxu3  ;;  %v2196_v2 = vpop.f32.mrf.mxu2  ;;  %v4294_v5 = vld [vmem:[#allocation11 + $0x40] sm:$0xf] }
 0x16f   :  { %v2087_v31 = vadd.f32 %v5234_v44, %v2073_v20 }
 0x170   :  { %2470 = vmatpush.bf16.msrb.mxu2 %v4083_v32  ;;  %v4383_v32 = vor.u32 %v4836_v18, %v4382_v15  ;;  %v4286_v15 = vld [vmem:[#allocation11 + $0x30] sm:$0xf]  ;;  %v4828_v18 = vld [vmem:[#allocation11 + $0xb4] sm:$0xf0] }
 0x171   :  { %2484 = vmatpush.bf16.msrb.mxu3 %v4211_v40  ;;  %v4818_v40 = vld [vmem:[#allocation11 + $0x64] sm:$0xf0]  ;;  %v2101_v24 = vadd.f32 %v5236_v61, %v2087_v31  ;;  %v2099_v61 = vadd.f32 %v5226_v51, %v2085_v52 }
 0x172   :  { %2444 = vmatpush.bf16.msrb.mxu0 %v3795_v45  ;;  %2458 = vmatpush.bf16.msrb.mxu1 %v3923_v49  ;;  %v4834_v45 = vld [vmem:[#allocation11 + $0xe4] sm:$0xf0]  ;;  %v4774_v49 = vld [vmem:[#allocation9 + $0x70c] sm:$0xf]  ;;  %v4311_v44 = vor.u32 %v4818_v40, %v4310_v36 }
 0x173   :  { %v4375_v54 = vor.u32 %v4834_v45, %v4374_v38  ;;  %v4147_v58 = vor.u32 %v4774_v49, %v4144_v50  ;;  %v2115_v8 = vadd.f32 %v5242_v29, %v2101_v24  ;;  %v2113_v51 = vadd.f32 %v5232_v34, %v2099_v61  ;;  %v4808_v38 = vld [vmem:[#allocation11 + $0x14] sm:$0xf0]  ;;  %v4334_v45 = vld [vmem:[#allocation11 + $0x90] sm:$0xf]  ;;  %v4806_v24 = vld [vmem:[#allocation11 + $0x4] sm:$0xf0] }
 0x174   :  { %2471 = vmatpush.bf16.msrb.mxu2 %v4067_v53  ;;  %v2182_v53 = vpop.f32.mrf.mxu1  ;;  %v4384_v61 = vld [vmem:[#allocation11 + $0xf8] sm:$0xf0] }
 0x175   :  { %2485 = vmatpush.bf16.msrb.mxu3 %v4195_v57  ;;  %v4816_v57 = vld [vmem:[#allocation11 + $0x54] sm:$0xf0]  ;;  %v2129_v29 = vadd.f32 %v5255_v62, %v2115_v8  ;;  %v4278_v62 = vld [vmem:[#allocation11 + $0x20] sm:$0xf] }
 0x176   :  { %2445 = vmatpush.bf16.msrb.mxu0 %v3779_v63  ;;  %2459 = vmatpush.bf16.msrb.mxu1 %v3907_v3  ;;  %v4303_v63 = vor.u32 %v4816_v57, %v4302_v56  ;;  %v4367_v3 = vor.u32 %v4832_v4, %v4366_v60  ;;  %v2210_v6 = vpop.f32.mrf.mxu3  ;;  %v4279_v36 = vor.u32 %v4810_v23, %v4278_v62  ;;  %v4852_v56 = vld [vmem:[#allocation11 + $0x174] sm:$0xf0]  ;;  %v4822_v57 = vld [vmem:[#allocation11 + $0x84] sm:$0xf0]  ;;  %v4320_v60 = vld [vmem:[#allocation11 + $0x78] sm:$0xf0] }
 0x177   :  { %v2143_v11 = vadd.f32 %v5259_v42, %v2129_v29  ;;  %v2198_v42 = vpop.f32.mrf.mxu2 }
 0x178   :  { %2472 = vmatpush.bf16.msrb.mxu2 %v4051_v13  ;;  %v4830_v13 = vld [vmem:[#allocation11 + $0xc4] sm:$0xf0] }
 0x179   :  { %2486 = vmatpush.bf16.msrb.mxu3 %v4179_v9  ;;  %v4359_v10 = vor.u32 %v4830_v13, %v4358_v7  ;;  %v4350_v9 = vld [vmem:[#allocation11 + $0xb0] sm:$0xf]  ;;  %v4438_v13 = vld [vmem:[#allocation11 + $0x160] sm:$0xf] }
 0x17a   :  { %2446 = vmatpush.bf16.msrb.mxu0 %v3763_v22  ;;  %2460 = vmatpush.bf16.msrb.mxu1 %v3891_v26  ;;  %v2224_v22 = vpop.f32.mrf.mxu0  ;;  %v4351_v34 = vor.u32 %v4828_v18, %v4350_v9  ;;  %v4342_v26 = vld [vmem:[#allocation11 + $0xa0] sm:$0xf]  ;;  %v4833_v9 = vld [vmem:[#allocation11 + $0xe4] sm:$0xf]  ;;  %v4376_v18 = vld [vmem:[#allocation11 + $0xe8] sm:$0xf0] }
 0x17b   :  { %v4379_v23 = vor.u32 %v4833_v9, %v4376_v18  ;;  %v4390_v9 = vld [vmem:[#allocation11 + $0x100] sm:$0xf]  ;;  %v4838_v18 = vld [vmem:[#allocation11 + $0x104] sm:$0xf0] }
 0x17c   :  { %2473 = vmatpush.bf16.msrb.mxu2 %v4035_v33  ;;  %v2184_v19 = vpop.f32.mrf.mxu1 }
 0x17d   :  { %2487 = vmatpush.bf16.msrb.mxu3 %v4163_v43  ;;  %2447 = vmatmul.bf16.vlgmr.msrb.gmra.mxu0 %v5184_v28  ;;  %v4814_v28 = vld [vmem:[#allocation11 + $0x44] sm:$0xf0] }
 0x17e   :  { %2913 = vmatpush.bf16.msra.mxu0 %v4319_v27  ;;  %2927 = vmatpush.bf16.msra.mxu1 %v4383_v32  ;;  %v4295_v14 = vor.u32 %v4814_v28, %v4294_v5  ;;  %v4826_v27 = vld [vmem:[#allocation11 + $0xa4] sm:$0xf0]  ;;  %v2157_v32 = vadd.f32 %v5261_v47, %v2143_v11  ;;  %v2212_v33 = vpop.f32.mrf.mxu3 }
 0x17f   :  { %2461 = vmatmul.bf16.vlgmr.msrb.gmra.mxu1 %v5186_v35  ;;  %v2169_v35 = vadd.f32 %v2168_v21, %v760_v12  ;;  %v2127_v21 = vadd.f32 %v5240_v17, %v2113_v51  ;;  %v4343_v40 = vor.u32 %v4826_v27, %v4342_v26  ;;  %v4270_v17 = vld [vmem:[#allocation11 + $0x10] sm:$0xf]  ;;  %v4831_v26 = vld [vmem:[#allocation11 + $0xd4] sm:$0xf] }
 0x180   :  { %2474 = vmatpush.bf16.msrb.mxu2 %v4019_v55  ;;  %vm2499_vm1 = vcmp.gt.f32.partialorder %v2157_v32, 0.0  ;;  %v2507_v50 = vmul.f32 0.2, %v2157_v32  ;;  %v4271_v47 = vor.u32 %v4808_v38, %v4270_v17  ;;  %v4446_v55 = vld [vmem:[#allocation11 + $0x170] sm:$0xf] }
 0x181   :  { %2488 = vmatpush.bf16.msrb.mxu3 %v4147_v58  ;;  %v2183_v20 = vadd.f32 %v2182_v53, %v2169_v35  ;;  %v2141_v31 = vadd.f32 %v5244_v30, %v2127_v21  ;;  %v4335_v53 = vor.u32 %v4824_v46, %v4334_v45  ;;  %v4819_v58 = vld [vmem:[#allocation11 + $0x74] sm:$0xf]  ;;  %v4447_v4 = vor.u32 %v4852_v56, %v4446_v55  ;;  %v4850_v35 = vld [vmem:[#allocation11 + $0x164] sm:$0xf0]  ;;  %v4430_v21 = vld [vmem:[#allocation11 + $0x150] sm:$0xf] }
 0x182   :  { %2914 = vmatpush.bf16.msra.mxu0 %v4311_v44  ;;  %2928 = vmatpush.bf16.msra.mxu1 %v4375_v54  ;;  %v4262_v44 = vld [vmem:[#allocation11] sm:$0xf]  ;;  %v2515_v28 = vsel %vm2499_vm1, %v2157_v32, %v2507_v50  ;;  %v4323_v7 = vor.u32 %v4819_v58, %v4320_v60  ;;  %v4368_v32 = vld [vmem:[#allocation11 + $0xd8] sm:$0xf0]  ;;  %v4813_v46 = vld [vmem:[#allocation11 + $0x44] sm:$0xf] }
 0x183   :  { %2475 = vmatmul.bf16.vlgmr.msrb.gmra.mxu2 %v5196_v59  ;;  %v4287_v59 = vor.u32 %v4812_v16, %v4286_v15  ;;  %v2197_v25 = vadd.f32 %v2196_v2, %v2183_v20  ;;  %v2155_v48 = vadd.f32 %v5251_v39, %v2141_v31  ;;  %v4326_v54 = vld [vmem:[#allocation11 + $0x80] sm:$0xf]  ;;  %v4263_v5 = vor.u32 %v4806_v24, %v4262_v44  ;;  %v4312_v15 = vld [vmem:[#allocation11 + $0x68] sm:$0xf0]  ;;  %v4844_v44 = vld [vmem:[#allocation11 + $0x134] sm:$0xf0] }
 0x184   :  { %2489 = vmatmul.bf16.vlgmr.msrb.gmra.mxu3 %v5198_v1  ;;  %v2171_v1 = vadd.f32 %v2170_v0, %v760_v12  ;;  %v2238_v49 = vpop.f32.mrf.mxu1  ;;  %v2226_v12 = vpop.f32.mrf.mxu0  ;;  %2941 = vmatpush.bf16.msra.mxu2 %v4447_v4  ;;  %v4439_v16 = vor.u32 %v4850_v35, %v4438_v13  ;;  %v4371_v45 = vor.u32 %v4831_v26, %v4368_v32  ;;  %v4360_v50 = vld [vmem:[#allocation11 + $0xc8] sm:$0xf0]  ;;  %v4811_v55 = vld [vmem:[#allocation11 + $0x34] sm:$0xf]  ;;  %v4288_v56 = vld [vmem:[#allocation11 + $0x38] sm:$0xf0] }
 0x185   :  { %v2211_v43 = vadd.f32 %v2210_v6, %v2197_v25  ;;  %v2503_v8 = vmul.f32 0.2, %v2155_v48  ;;  %vm2495_vm2 = vcmp.gt.f32.partialorder %v2155_v48, 0.0  ;;  %v4327_v6 = vor.u32 %v4822_v57, %v4326_v54  ;;  %v4304_v25 = vld [vmem:[#allocation11 + $0x58] sm:$0xf0] }
 0x186   :  { %2915 = vmatpush.bf16.msra.mxu0 %v4303_v63  ;;  %2929 = vmatpush.bf16.msra.mxu1 %v4367_v3  ;;  %v2185_v41 = vadd.f32 %v2184_v19, %v2171_v1  ;;  %v2252_v39 = vpop.f32.mrf.mxu2  ;;  %v4835_v63 = vld [vmem:[#allocation11 + $0xf4] sm:$0xf]  ;;  %v4352_v4 = vld [vmem:[#allocation11 + $0xb8] sm:$0xf0] }
 0x187   :  { %v2225_v52 = vadd.f32 %v2224_v22, %v2211_v43  ;;  %v2266_v3 = vpop.f32.mrf.mxu3  ;;  %v4387_v29 = vor.u32 %v4835_v63, %v4384_v61  ;;  %v2511_v11 = vsel %vm2495_vm2, %v2155_v48, %v2503_v8  ;;  %v4848_v22 = vld [vmem:[#allocation11 + $0x154] sm:$0xf0]  ;;  %v4815_v1 = vld [vmem:[#allocation11 + $0x54] sm:$0xf]  ;;  %v4296_v48 = vld [vmem:[#allocation11 + $0x48] sm:$0xf0]  ;;  %v4291_v63 = vor.u32 %v4811_v55, %v4288_v56 }
 0x188   :  { %v2199_v30 = vadd.f32 %v2198_v42, %v2185_v41  ;;  %2942 = vmatpush.bf16.msra.mxu2 %v4439_v16  ;;  %v5282_v19 = vpack.c.bf16 %v2515_v28, %v2511_v11  ;;  %v4431_v27 = vor.u32 %v4848_v22, %v4430_v21  ;;  %v4422_v42 = vld [vmem:[#allocation11 + $0x140] sm:$0xf]  ;;  %v4307_v38 = vor.u32 %v4815_v1, %v4304_v25  ;;  %v4827_v60 = vld [vmem:[#allocation11 + $0xb4] sm:$0xf]  ;;  %v4805_v16 = vld [vmem:[#allocation11 + $0x4] sm:$0xf] }
 0x189   :  { %v2239_v2 = vadd.f32 %v2238_v49, %v2225_v52  ;;  %v4829_v49 = vld [vmem:[#allocation11 + $0xc4] sm:$0xf]  ;;  %v4299_v52 = vor.u32 %v4813_v46, %v4296_v48  ;;  %v4355_v8 = vor.u32 %v4827_v60, %v4352_v4  ;;  %v4807_v35 = vld [vmem:[#allocation11 + $0x14] sm:$0xf]  ;;  %v4448_v22 = vld [vmem:[#allocation11 + $0x178] sm:$0xf0] }
 0x18a   :  { %2916 = vmatpush.bf16.msra.mxu0 %v4295_v14  ;;  %2930 = vmatpush.bf16.msra.mxu1 %v4359_v10  ;;  %v2213_v0 = vadd.f32 %v2212_v33, %v2199_v30  ;;  %v4817_v10 = vld [vmem:[#allocation11 + $0x64] sm:$0xf]  ;;  %v4846_v33 = vld [vmem:[#allocation11 + $0x144] sm:$0xf0]  ;;  %v4363_v54 = vor.u32 %v4829_v49, %v4360_v50  ;;  %v4851_v21 = vld [vmem:[#allocation11 + $0x174] sm:$0xf] }
 0x18b   :  { %v2253_v51 = vadd.f32 %v2252_v39, %v2239_v2  ;;  %v4842_v39 = vld [vmem:[#allocation11 + $0x124] sm:$0xf0]  ;;  %v4280_v2 = vld [vmem:[#allocation11 + $0x28] sm:$0xf0]  ;;  %v4843_v50 = vld [vmem:[#allocation11 + $0x134] sm:$0xf] }
 0x18c   :  { %v2227_v14 = vadd.f32 %v2226_v12, %v2213_v0  ;;  %v2240_v20 = vpop.f32.mrf.mxu1  ;;  %2943 = vmatpush.bf16.msra.mxu2 %v4431_v27  ;;  %v4406_v12 = vld [vmem:[#allocation11 + $0x120] sm:$0xf]  ;;  %v4809_v0 = vld [vmem:[#allocation11 + $0x24] sm:$0xf]  ;;  %v4839_v60 = vld [vmem:[#allocation11 + $0x114] sm:$0xf] }
 0x18d   :  { %v2267_v62 = vadd.f32 %v2266_v3, %v2253_v51  ;;  %v4407_v61 = vor.u32 %v4842_v39, %v4406_v12  ;;  %v4825_v3 = vld [vmem:[#allocation11 + $0xa4] sm:$0xf]  ;;  %v4283_v28 = vor.u32 %v4809_v0, %v4280_v2  ;;  %v4400_v4 = vld [vmem:[#allocation11 + $0x118] sm:$0xf0] }
 0x18e   :  { %2917 = vmatpush.bf16.msra.mxu0 %v4287_v59  ;;  %2931 = vmatpush.bf16.msra.mxu1 %v4351_v34  ;;  %v4315_v59 = vor.u32 %v4817_v10, %v4312_v15  ;;  %v2241_v34 = vadd.f32 %v2240_v20, %v2227_v14  ;;  %v2254_v31 = vpop.f32.mrf.mxu2  ;;  %v4272_v14 = vld [vmem:[#allocation11 + $0x18] sm:$0xf0]  ;;  %v4264_v20 = vld [vmem:[#allocation11 + $0x8] sm:$0xf0]  ;;  %v4849_v27 = vld [vmem:[#allocation11 + $0x164] sm:$0xf]  ;;  %v4403_v12 = vor.u32 %v4839_v60, %v4400_v4 }
 0x18f   :  { %v2268_v17 = vpop.f32.mrf.mxu3  ;;  %v2504_v41 = vmul.f32 0.2, %v2267_v62  ;;  %vm2496_vm3 = vcmp.gt.f32.partialorder %v2267_v62, 0.0  ;;  %v4336_v10 = vld [vmem:[#allocation11 + $0x98] sm:$0xf0]  ;;  %v4275_v15 = vor.u32 %v4807_v35, %v4272_v14  ;;  %v4267_v25 = vor.u32 %v4805_v16, %v4264_v20 }
 0x190   :  { %v4837_v2 = vld [vmem:[#allocation11 + $0x104] sm:$0xf]  ;;  %v4494_v20 = vld [vmem:[#allocation11 + $0x1d0] sm:$0xf] }
 0x191   :  { %v2512_v24 = vsel %vm2496_vm3, %v2267_v62, %v2504_v41  ;;  %v4328_v62 = vld [vmem:[#allocation11 + $0x88] sm:$0xf0] }
 0x192   :  { %2918 = vmatpush.bf16.msra.mxu0 %v4279_v36  ;;  %2932 = vmatpush.bf16.msra.mxu1 %v4343_v40  ;;  %v2255_v36 = vadd.f32 %v2254_v31, %v2241_v34  ;;  %v4423_v40 = vor.u32 %v4846_v33, %v4422_v42  ;;  %v4821_v34 = vld [vmem:[#allocation11 + $0x84] sm:$0xf]  ;;  %v4440_v31 = vld [vmem:[#allocation11 + $0x168] sm:$0xf0]  ;;  %v4847_v42 = vld [vmem:[#allocation11 + $0x154] sm:$0xf] }
 0x193   :  { %v4331_v26 = vor.u32 %v4821_v34, %v4328_v62  ;;  %v4443_v32 = vor.u32 %v4849_v27, %v4440_v31  ;;  %v4432_v33 = vld [vmem:[#allocation11 + $0x158] sm:$0xf0]  ;;  %v4424_v41 = vld [vmem:[#allocation11 + $0x148] sm:$0xf0] }
 0x194   :  { %v2269_v43 = vadd.f32 %v2268_v17, %v2255_v36  ;;  %2944 = vmatpush.bf16.msra.mxu2 %v4423_v40  ;;  %v4435_v40 = vor.u32 %v4847_v42, %v4432_v33  ;;  %v761_v17 = vperm.slane %v5249_v37, 2  ;;  %v4478_v33 = vld [vmem:[#allocation11 + $0x1b0] sm:$0xf] }
 0x196   :  { %2919 = vmatpush.bf16.msra.mxu0 %v4271_v47  ;;  %2933 = vmatpush.bf16.msra.mxu1 %v4335_v53  ;;  %vm2500_vm4 = vcmp.gt.f32.partialorder %v2269_v43, 0.0  ;;  %v2508_v30 = vmul.f32 0.2, %v2269_v43  ;;  %v4414_v47 = vld [vmem:[#allocation11 + $0x130] sm:$0xf] }
 0x197   :  { %v4415_v57 = vor.u32 %v4844_v44, %v4414_v47  ;;  %v4841_v44 = vld [vmem:[#allocation11 + $0x124] sm:$0xf] }
 0x198   :  { %v2516_v53 = vsel %vm2500_vm4, %v2269_v43, %v2508_v30  ;;  %v4416_v30 = vld [vmem:[#allocation11 + $0x138] sm:$0xf0] }
 0x199   :  { %v2520_v58 = vpack.c.bf16 %v2516_v53, %v2512_v24  ;;  %2945 = vmatpush.bf16.msra.mxu2 %v4415_v57  ;;  %v4408_v24 = vld [vmem:[#allocation11 + $0x128] sm:$0xf0] }
 0x19a   :  { %2920 = vmatpush.bf16.msra.mxu0 %v4263_v5  ;;  %2934 = vmatpush.bf16.msra.mxu1 %v4327_v6  ;;  %v4344_v5 = vld [vmem:[#allocation11 + $0xa8] sm:$0xf0]  ;;  %v4398_v6 = vld [vmem:[#allocation11 + $0x110] sm:$0xf]  ;;  %v2280_v1 = vpop.f32.mrf.mxu0  ;;  %v4411_v53 = vor.u32 %v4841_v44, %v4408_v24  ;;  %v4867_v44 = vld [vmem:[#allocation11 + $0x1f4] sm:$0xf] }
 0x19b   :  { %v4347_v13 = vor.u32 %v4825_v3, %v4344_v5  ;;  %v2281_v49 = vadd.f32 %v2280_v1, %v761_v17  ;;  %v4392_v3 = vld [vmem:[#allocation11 + $0x108] sm:$0xf0]  ;;  %v4862_v1 = vld [vmem:[#allocation11 + $0x1c4] sm:$0xf0]  ;;  %v4512_v24 = vld [vmem:[#allocation11 + $0x1f8] sm:$0xf0] }
 0x19c   :  { %v2294_v36 = vpop.f32.mrf.mxu1  ;;  %v4395_v5 = vor.u32 %v4837_v2, %v4392_v3 }
 0x19d   :  { %2921 = vmatmul.bf16.vlgmr.msra.gmra.mxu0 %v5282_v19  ;;  %2935 = vmatmul.bf16.vlgmr.msra.gmra.mxu1 %v2520_v58 }
 0x19e   :  { %2969 = vmatpush.bf16.msrb.mxu0 %v4323_v7  ;;  %2983 = vmatpush.bf16.msrb.mxu1 %v4387_v29  ;;  %v4840_v7 = vld [vmem:[#allocation11 + $0x114] sm:$0xf0]  ;;  %v4823_v29 = vld [vmem:[#allocation11 + $0x94] sm:$0xf] }
 0x19f   :  { %2946 = vmatpush.bf16.msra.mxu2 %v4407_v61  ;;  %v4399_v51 = vor.u32 %v4840_v7, %v4398_v6  ;;  %v4339_v11 = vor.u32 %v4823_v29, %v4336_v10  ;;  %v4868_v6 = vld [vmem:[#allocation11 + $0x1f4] sm:$0xf0]  ;;  %v4502_v10 = vld [vmem:[#allocation11 + $0x1e0] sm:$0xf] }
 0x1a2   :  { %2970 = vmatpush.bf16.msrb.mxu0 %v4315_v59  ;;  %2984 = vmatpush.bf16.msrb.mxu1 %v4379_v23  ;;  %v4391_v59 = vor.u32 %v4838_v18, %v4390_v9  ;;  %v4451_v23 = vor.u32 %v4851_v21, %v4448_v22  ;;  %v2282_v43 = vpop.f32.mrf.mxu0 }
 0x1a3   :  { %2947 = vmatpush.bf16.msra.mxu2 %v4399_v51  ;;  %v2283_v55 = vadd.f32 %v2282_v43, %v761_v17  ;;  %v4470_v43 = vld [vmem:[#allocation11 + $0x1a0] sm:$0xf] }
 0x1a4   :  { %v2296_v47 = vpop.f32.mrf.mxu1 }
 0x1a5   :  { %v2297_v39 = vadd.f32 %v2296_v47, %v2283_v55  ;;  %v4504_v55 = vld [vmem:[#allocation11 + $0x1e8] sm:$0xf0] }
 0x1a6   :  { %2971 = vmatpush.bf16.msrb.mxu0 %v4307_v38  ;;  %2985 = vmatpush.bf16.msrb.mxu1 %v4371_v45  ;;  %v4845_v38 = vld [vmem:[#allocation11 + $0x144] sm:$0xf]  ;;  %v2308_v45 = vpop.f32.mrf.mxu2 }
 0x1a7   :  { %2948 = vmatpush.bf16.msra.mxu2 %v4391_v59  ;;  %v4427_v46 = vor.u32 %v4845_v38, %v4424_v41  ;;  %v2322_v48 = vpop.f32.mrf.mxu3  ;;  %v4864_v59 = vld [vmem:[#allocation11 + $0x1d4] sm:$0xf0] }
 0x1a8   :  { %v4495_v34 = vor.u32 %v4864_v59, %v4494_v20 }
 0x1aa   :  { %2972 = vmatpush.bf16.msrb.mxu0 %v4299_v52  ;;  %2986 = vmatpush.bf16.msrb.mxu1 %v4363_v54  ;;  %v4419_v52 = vor.u32 %v4843_v50, %v4416_v30  ;;  %v4454_v30 = vld [vmem:[#allocation11 + $0x180] sm:$0xf] }
 0x1ab   :  { %2997 = vmatpush.bf16.msrb.mxu2 %v4451_v23  ;;  %v4486_v23 = vld [vmem:[#allocation11 + $0x1c0] sm:$0xf] }
 0x1ae   :  { %2973 = vmatpush.bf16.msrb.mxu0 %v4291_v63  ;;  %2987 = vmatpush.bf16.msrb.mxu1 %v4355_v8  ;;  %v2310_v57 = vpop.f32.mrf.mxu2 }
 0x1af   :  { %2998 = vmatpush.bf16.msrb.mxu2 %v4443_v32  ;;  %v2311_v8 = vadd.f32 %v2310_v57, %v2297_v39  ;;  %v4863_v57 = vld [vmem:[#allocation11 + $0x1d4] sm:$0xf]  ;;  %v4861_v39 = vld [vmem:[#allocation11 + $0x1c4] sm:$0xf] }
 0x1b2   :  { %2974 = vmatpush.bf16.msrb.mxu0 %v4283_v28  ;;  %2988 = vmatpush.bf16.msrb.mxu1 %v4347_v13  ;;  %v4510_v28 = vld [vmem:[#allocation11 + $0x1f0] sm:$0xf] }
 0x1b3   :  { %2999 = vmatpush.bf16.msrb.mxu2 %v4435_v40  ;;  %v4511_v7 = vor.u32 %v4868_v6, %v4510_v28  ;;  %v4480_v28 = vld [vmem:[#allocation11 + $0x1b8] sm:$0xf0] }
 0x1b5   :  { %2955 = vmatpush.bf16.msra.mxu3 %v4511_v7  ;;  %v4857_v7 = vld [vmem:[#allocation11 + $0x1a4] sm:$0xf] }
 0x1b6   :  { %2975 = vmatpush.bf16.msrb.mxu0 %v4275_v15  ;;  %2989 = vmatpush.bf16.msrb.mxu1 %v4339_v11  ;;  %v4866_v15 = vld [vmem:[#allocation11 + $0x1e4] sm:$0xf0] }
 0x1b7   :  { %3000 = vmatpush.bf16.msrb.mxu2 %v4427_v46  ;;  %v4503_v18 = vor.u32 %v4866_v15, %v4502_v10 }
 0x1b9   :  { %2956 = vmatpush.bf16.msra.mxu3 %v4503_v18  ;;  %v4464_v18 = vld [vmem:[#allocation11 + $0x198] sm:$0xf0] }
 0x1ba   :  { %2976 = vmatpush.bf16.msrb.mxu0 %v4267_v25  ;;  %2990 = vmatpush.bf16.msrb.mxu1 %v4331_v26  ;;  %v2336_v54 = vpop.f32.mrf.mxu0  ;;  %v4487_v26 = vor.u32 %v4862_v1, %v4486_v23 }
 0x1bb   :  { %3001 = vmatpush.bf16.msrb.mxu2 %v4419_v52  ;;  %v4854_v52 = vld [vmem:[#allocation11 + $0x184] sm:$0xf0] }
 0x1bc   :  { %v2350_v61 = vpop.f32.mrf.mxu1  ;;  %v4455_v47 = vor.u32 %v4854_v52, %v4454_v30 }
 0x1bd   :  { %2977 = vmatmul.bf16.vlgmr.msrb.gmra.mxu0 %v5282_v19  ;;  %2991 = vmatmul.bf16.vlgmr.msrb.gmra.mxu1 %v2520_v58  ;;  %v2295_v19 = vadd.f32 %v2294_v36, %v2281_v49  ;;  %v2324_v58 = vpop.f32.mrf.mxu3  ;;  %v4860_v36 = vld [vmem:[#allocation11 + $0x1b4] sm:$0xf0] }
 0x1be   :  { %v2325_v14 = vadd.f32 %v2324_v58, %v2311_v8  ;;  %2957 = vmatpush.bf16.msra.mxu3 %v4495_v34  ;;  %v4479_v38 = vor.u32 %v4860_v36, %v4478_v33  ;;  %v4856_v49 = vld [vmem:[#allocation11 + $0x194] sm:$0xf0]  ;;  %v4496_v58 = vld [vmem:[#allocation11 + $0x1d8] sm:$0xf0]  ;;  %v4456_v34 = vld [vmem:[#allocation11 + $0x188] sm:$0xf0] }
 0x1bf   :  { %v2309_v56 = vadd.f32 %v2308_v45, %v2295_v19  ;;  %3002 = vmatpush.bf16.msrb.mxu2 %v4411_v53  ;;  %v4858_v45 = vld [vmem:[#allocation11 + $0x1a4] sm:$0xf0]  ;;  %v4515_v19 = vor.u32 %v4867_v44, %v4512_v24  ;;  %v4499_v4 = vor.u32 %v4863_v57, %v4496_v58 }
 0x1c0   :  { %v4471_v46 = vor.u32 %v4858_v45, %v4470_v43 }
 0x1c1   :  { %v2323_v63 = vadd.f32 %v2322_v48, %v2309_v56  ;;  %v4462_v48 = vld [vmem:[#allocation11 + $0x190] sm:$0xf] }
 0x1c2   :  { %v2338_v13 = vpop.f32.mrf.mxu0  ;;  %2958 = vmatpush.bf16.msra.mxu3 %v4487_v26  ;;  %v4463_v50 = vor.u32 %v4856_v49, %v4462_v48 }
 0x1c3   :  { %3003 = vmatpush.bf16.msrb.mxu2 %v4403_v12  ;;  %v2337_v0 = vadd.f32 %v2336_v54, %v2323_v63  ;;  %v2339_v16 = vadd.f32 %v2338_v13, %v2325_v14  ;;  %v4865_v54 = vld [vmem:[#allocation11 + $0x1e4] sm:$0xf]  ;;  %v762_v12 = vperm.slane %v5249_v37, 3  ;;  %v4488_v63 = vld [vmem:[#allocation11 + $0x1c8] sm:$0xf0] }
 0x1c4   :  { %v2352_v11 = vpop.f32.mrf.mxu1  ;;  %v4507_v56 = vor.u32 %v4865_v54, %v4504_v55  ;;  %v4472_v13 = vld [vmem:[#allocation11 + $0x1a8] sm:$0xf0] }
 0x1c5   :  { %v2351_v51 = vadd.f32 %v2350_v61, %v2337_v0  ;;  %v2353_v21 = vadd.f32 %v2352_v11, %v2339_v16  ;;  %v4491_v0 = vor.u32 %v4861_v39, %v4488_v63  ;;  %v4475_v14 = vor.u32 %v4857_v7, %v4472_v13  ;;  %v3037_v13 = vld [vmem:[%s5304_s7] sm:$0x3]  ;;  %s5053_s7 = smov [#allocation12]  }
 0x1c6   :  { %v2364_v35 = vpop.f32.mrf.mxu2  ;;  %2959 = vmatpush.bf16.msra.mxu3 %v4479_v38  ;;  %s3082_s8 = sshll.u32 %s5053_s7, 4  ;;  %s3083_s8 = int_to_ptr.vmem [resolvable:$true] %s3082_s8 }
 0x1c7   :  { %3004 = vmatpush.bf16.msrb.mxu2 %v4395_v5  ;;  %v2378_v29 = vpop.f32.mrf.mxu3  ;;  %v2365_v9 = vadd.f32 %v2364_v35, %v2351_v51  ;;  %v4859_v5 = vld [vmem:[#allocation11 + $0x1b4] sm:$0xf] }
 0x1c8   :  { %v4483_v6 = vor.u32 %v4859_v5, %v4480_v28 }
 0x1c9   :  { %v2379_v22 = vadd.f32 %v2378_v29, %v2365_v9  ;;  %v4855_v9 = vld [vmem:[#allocation11 + $0x194] sm:$0xf] }
 0x1ca   :  { %2960 = vmatpush.bf16.msra.mxu3 %v4471_v46  ;;  %v4467_v11 = vor.u32 %v4855_v9, %v4464_v18 }
 0x1cb   :  { %v2505_v31 = vmul.f32 0.2, %v2379_v22  ;;  %vm2497_vm5 = vcmp.gt.f32.partialorder %v2379_v22, 0.0 }
 0x1cd   :  { %v2513_v40 = vsel %vm2497_vm5, %v2379_v22, %v2505_v31  ;;  %v4853_v22 = vld [vmem:[#allocation11 + $0x184] sm:$0xf] }
 0x1ce   :  { %v2366_v62 = vpop.f32.mrf.mxu2  ;;  %2961 = vmatpush.bf16.msra.mxu3 %v4463_v50  ;;  %v4459_v1 = vor.u32 %v4853_v22, %v4456_v34 }
 0x1cf   :  { %v2367_v25 = vadd.f32 %v2366_v62, %v2353_v21  ;;  %v2380_v27 = vpop.f32.mrf.mxu3 }
 0x1d1   :  { %v2381_v32 = vadd.f32 %v2380_v27, %v2367_v25 }
 0x1d2   :  { %2962 = vmatpush.bf16.msra.mxu3 %v4455_v47 }
 0x1d3   :  { %vm2501_vm6 = vcmp.gt.f32.partialorder %v2381_v32, 0.0  ;;  %v2509_v42 = vmul.f32 0.2, %v2381_v32 }
 0x1d5   :  { %v2517_v17 = vsel %vm2501_vm6, %v2381_v32, %v2509_v42 }
 0x1d6   :  { %v2521_v41 = vpack.c.bf16 %v2517_v17, %v2513_v40  ;;  %3011 = vmatpush.bf16.msrb.mxu3 %v4515_v19  ;;  %v2587_v19 = vld [vmem:[%s5303_s6] sm:$0x3] }
 0x1d7   :  { %v2589_v55 = vperm.slane %v2587_v19, 0 }
 0x1d8   :  { %2949 = vmatmul.bf16.vlgmr.msra.gmra.mxu2 %v2521_v41 }
 0x1da   :  { %v2392_v53 = vpop.f32.mrf.mxu0  ;;  %3012 = vmatpush.bf16.msrb.mxu3 %v4507_v56 }
 0x1db   :  { %v2393_v3 = vadd.f32 %v2392_v53, %v762_v12 }
 0x1dc   :  { %v2406_v60 = vpop.f32.mrf.mxu1 }
 0x1dd   :  { %v2407_v51 = vadd.f32 %v2406_v60, %v2393_v3  ;;  %v2590_v60 = vperm.slane %v2587_v19, 1 }
 0x1de   :  { %3013 = vmatpush.bf16.msrb.mxu3 %v4499_v4 }
 0x1e2   :  { %v2394_v61 = vpop.f32.mrf.mxu0  ;;  %3014 = vmatpush.bf16.msrb.mxu3 %v4491_v0 }
 0x1e3   :  { %v2395_v10 = vadd.f32 %v2394_v61, %v762_v12 }
 0x1e4   :  { %v2408_v35 = vpop.f32.mrf.mxu1 }
 0x1e5   :  { %v2409_v20 = vadd.f32 %v2408_v35, %v2395_v10  ;;  %v3039_v10 = vperm.slane %v3037_v13, 0 }
 0x1e6   :  { %v2420_v8 = vpop.f32.mrf.mxu2  ;;  %3015 = vmatpush.bf16.msrb.mxu3 %v4483_v6 }
 0x1e7   :  { %v2434_v2 = vpop.f32.mrf.mxu3  ;;  %v2421_v37 = vadd.f32 %v2420_v8, %v2407_v51 }
 0x1e8   :  { %3005 = vmatmul.bf16.vlgmr.msrb.gmra.mxu2 %v2521_v41 }
 0x1e9   :  { %v2435_v59 = vadd.f32 %v2434_v2, %v2421_v37  ;;  %v3040_v37 = vperm.slane %v3037_v13, 1 }
 0x1ea   :  { %3016 = vmatpush.bf16.msrb.mxu3 %v4475_v14 }
 0x1ee   :  { %v2422_v15 = vpop.f32.mrf.mxu2  ;;  %3017 = vmatpush.bf16.msrb.mxu3 %v4467_v11 }
 0x1ef   :  { %v2436_v16 = vpop.f32.mrf.mxu3  ;;  %v2423_v62 = vadd.f32 %v2422_v15, %v2409_v20 }
 0x1f1   :  { %v2437_v27 = vadd.f32 %v2436_v16, %v2423_v62 }
 0x1f2   :  { %3018 = vmatpush.bf16.msrb.mxu3 %v4459_v1 }
 0x1fa   :  { %v2448_v29 = vpop.f32.mrf.mxu0 }
 0x1fb   :  { %v2449_v23 = vadd.f32 %v2448_v29, %v2435_v59 }
 0x1fc   :  { %v2462_v21 = vpop.f32.mrf.mxu1 }
 0x1fd   :  { %v2463_v31 = vadd.f32 %v2462_v21, %v2449_v23 }
 0x202   :  { %v2450_v25 = vpop.f32.mrf.mxu0 }
 0x203   :  { %v2451_v42 = vadd.f32 %v2450_v25, %v2437_v27 }
 0x204   :  { %v2464_v36 = vpop.f32.mrf.mxu1 }
 0x205   :  { %v2465_v40 = vadd.f32 %v2464_v36, %v2451_v42  ;;  %v5052_v36 = vmov 0  }
 0x206   :  { %v2476_v26 = vpop.f32.mrf.mxu2  ;;  %4884 = vset.pattern.permute.xlu1 %v5052_v36  ;;  %4885 = vset.pattern.permute.xlu0 %v5052_v36 }
 0x207   :  { %v2490_v32 = vpop.f32.mrf.mxu3  ;;  %v2477_v33 = vadd.f32 %v2476_v26, %v2463_v31 }
 0x209   :  { %v2491_v17 = vadd.f32 %v2490_v32, %v2477_v33 }
 0x20b   :  { %v2506_v45 = vmul.f32 0.2, %v2491_v17  ;;  %vm2498_vm7 = vcmp.gt.f32.partialorder %v2491_v17, 0.0 }
 0x20d   :  { %v2514_v49 = vsel %vm2498_vm7, %v2491_v17, %v2506_v45  ;;  %v3067_v45 = vlaneseq }
 0x20e   :  { %v2478_v38 = vpop.f32.mrf.mxu2 }
 0x20f   :  { %v2479_v41 = vadd.f32 %v2478_v38, %v2465_v40  ;;  %v2492_v43 = vpop.f32.mrf.mxu3  ;;  %v4886_v40 = vld [vmem:[#allocation2] ss:$0 sm:$0xff] }
 0x211   :  { %v2493_v46 = vadd.f32 %v2492_v43, %v2479_v41 }
 0x213   :  { %vm2502_vm8 = vcmp.gt.f32.partialorder %v2493_v46, 0.0  ;;  %v2510_v48 = vmul.f32 0.2, %v2493_v46 }
 0x215   :  { %v2518_v50 = vsel %vm2502_vm8, %v2493_v46, %v2510_v48  ;;  %v3068_v48 = vand.u32 127, %v3067_v45 }
 0x216   :  { %v2522_v30 = vpack.c.bf16 %v2518_v50, %v2514_v49 }
 0x217   :  { %v3070_v49 = vadd.s32 4294967288, %v3068_v48 }
 0x218   :  { %2963 = vmatmul.bf16.vlgmr.msra.gmra.mxu3 %v2522_v30 }
 0x21a   :  { %v2922_v52 = vpop.f32.mrf.mxu0  ;;  %v2936_v44 = vpop.f32.mrf.mxu1 }
 0x21b   :  { %v2923_v58 = vadd.f32 %v2922_v52, %v2589_v55 }
 0x21d   :  { %v2937_v4 = vadd.f32 %v2936_v44, %v2923_v58 }
 0x222   :  { %v2924_v24 = vpop.f32.mrf.mxu0  ;;  %v2938_v56 = vpop.f32.mrf.mxu1 }
 0x223   :  { %v2925_v2 = vadd.f32 %v2924_v24, %v2589_v55 }
 0x225   :  { %v2939_v28 = vadd.f32 %v2938_v56, %v2925_v2 }
 0x228   :  { %3019 = vmatmul.bf16.vlgmr.msrb.gmra.mxu3 %v2522_v30 }
 0x23a   :  { %v2978_v57 = vpop.f32.mrf.mxu0  ;;  %v2992_v61 = vpop.f32.mrf.mxu1 }
 0x23b   :  { %v2979_v39 = vadd.f32 %v2978_v57, %v2590_v60 }
 0x23d   :  { %v2993_v3 = vadd.f32 %v2992_v61, %v2979_v39 }
 0x242   :  { %v2980_v5 = vpop.f32.mrf.mxu0  ;;  %v2994_v18 = vpop.f32.mrf.mxu1 }
 0x243   :  { %v2981_v14 = vadd.f32 %v2980_v5, %v2590_v60 }
 0x245   :  { %v2995_v20 = vadd.f32 %v2994_v18, %v2981_v14 }
 0x25b   :  { %v2950_v47 = vpop.f32.mrf.mxu2 }
 0x25c   :  { %v2951_v63 = vadd.f32 %v2950_v47, %v2937_v4 }
 0x263   :  { %v2952_v53 = vpop.f32.mrf.mxu2 }
 0x264   :  { %v2953_v51 = vadd.f32 %v2952_v53, %v2939_v28 }
 0x26b   :  { %v3006_v8 = vpop.f32.mrf.mxu2 }
 0x26c   :  { %v3007_v6 = vadd.f32 %v3006_v8, %v2993_v3 }
 0x273   :  { %v3008_v11 = vpop.f32.mrf.mxu2 }
 0x274   :  { %v3009_v34 = vadd.f32 %v3008_v11, %v2995_v20 }
 0x29b   :  { %v2964_v54 = vpop.f32.mrf.mxu3 }
 0x29c   :  { %v2965_v0 = vadd.f32 %v2964_v54, %v2951_v63 }
 0x29e   :  { %v3029_v7 = vmul.f32 0.2, %v2965_v0  ;;  %vm3025_vm9 = vcmp.gt.f32.partialorder %v2965_v0, 0.0 }
 0x2a0   :  { %v3033_v9 = vsel %vm3025_vm9, %v2965_v0, %v3029_v7 }
 0x2a1   :  { %v3043_v21 = vmul.f32 %v3039_v10, %v3033_v9 }
 0x2a3   :  { %v2966_v12 = vpop.f32.mrf.mxu3 }
 0x2a4   :  { %v2967_v15 = vadd.f32 %v2966_v12, %v2953_v51 }
 0x2a6   :  { %v3031_v62 = vmul.f32 0.2, %v2967_v15  ;;  %vm3027_vm11 = vcmp.gt.f32.partialorder %v2967_v15, 0.0 }
 0x2a8   :  { %v3035_v27 = vsel %vm3027_vm11, %v2967_v15, %v3031_v62 }
 0x2a9   :  { %v3045_v32 = vmul.f32 %v3039_v10, %v3035_v27 }
 0x2ab   :  { %v3020_v35 = vpop.f32.mrf.mxu3 }
 0x2ac   :  { %v3021_v29 = vadd.f32 %v3020_v35, %v3007_v6 }
 0x2ae   :  { %vm3026_vm10 = vcmp.gt.f32.partialorder %v3021_v29, 0.0  ;;  %v3030_v16 = vmul.f32 0.2, %v3021_v29 }
 0x2b0   :  { %v3034_v59 = vsel %vm3026_vm10, %v3021_v29, %v3030_v16 }
 0x2b1   :  { %v3044_v22 = vmul.f32 %v3040_v37, %v3034_v59 }
 0x2b3   :  { %v3022_v23 = vpop.f32.mrf.mxu3  ;;  %v3047_v1 = vadd.f32 %v3044_v22, %v3043_v21 }
 0x2b4   :  { %v3023_v25 = vadd.f32 %v3022_v23, %v3009_v34 }
 0x2b5   :  { %3048 = vadd.xlane.f32.xlu0 %v3047_v1 }
 0x2b6   :  { %vm3028_vm12 = vcmp.gt.f32.partialorder %v3023_v25, 0.0  ;;  %v3032_v26 = vmul.f32 0.2, %v3023_v25 }
 0x2b8   :  { %v3036_v31 = vsel %vm3028_vm12, %v3023_v25, %v3032_v26 }
 0x2b9   :  { %v3046_v42 = vmul.f32 %v3040_v37, %v3036_v31 }
 0x2bb   :  { %v3050_v33 = vadd.f32 %v3046_v42, %v3045_v32 }
 0x2bd   :  { %3051 = vadd.xlane.f32.xlu0 %v3050_v33 }
 0x328   :  { %v3049_v17 = vpop.xlane.xlu0 %3048 }
 0x329   :  { %v3057_v38 = vadd.f32 %v4886_v40, %v3049_v17 }
 0x32b   :  { %3062 = vperm.xlu1 %4884, %v3057_v38  }
 0x330   :  { %v3052_v41 = vpop.xlane.xlu0 %3051 }
 0x331   :  { %v3058_v43 = vadd.f32 %v4886_v40, %v3052_v41 }
 0x333   :  { %3065 = vperm.xlu1 %4884, %v3058_v43  }
 0x39d   :  { %v3063_v46 = vpop.permute.xlu1 %3062 }
 0x39e   :  { %v3069_v30 = vperm.slane %v3063_v46, %v3068_v48 }
 0x3a5   :  { %v3066_v50 = vpop.permute.xlu1 %3065 }
 0x3a6   :  { %v3071_v52 = vperm.slane %v3066_v50, %v3070_v49 }
 0x3a8   :  { %v3073_v47 = vsel %vm3072_vm13, %v3071_v52, %v3069_v30 }
 0x3a9   :  { %3076 = vst.msk [vmem:[#allocation12] sm:$0x1] %vm3075_vm14, %v3073_v47 }
 0x3aa   :  { %3087 = dma.vmem_to_hbm [thread:$0]  %s3083_s8, 16, %s3085_s23, [#allocation5]  }
 0x3ab   :  { %5037 = dma.done.wait [#allocation5], 16  }
 0x3ac   :  { %5038 = vsyncadd [#allocation5], 4294967280 }
 0x3ad   :  { %3092 = vsyncpa [#allocation4], 1 }
 0x3ae   :  { %3093 = vsyncpa [#allocation7], 1 }
 0x3af   :  { %3094 = vsyncpa [#allocation10], 1 }
 0x3b0   :  { %3095 = vsyncpa [#allocation5], 1 }

// kernel: tpu_custom_call.1
= control target key start
LH: loop header
LB: loop body
LE: loop exit
PB: predicated region body
PF: predicated region fallthrough
CT: control target
= control target key end

     0   :  { %s5297_s0 = inlined_call_operand.hbm [shape: bf16[16,64], index: 0, kind: input, shape index: {}]   ;;  %s5298_s1 = inlined_call_operand.hbm [shape: bf16[64,1024], index: 1, kind: input, shape index: {}]   ;;  %s5299_s2 = inlined_call_operand.hbm [shape: f32[1,1024], index: 2, kind: input, shape index: {}]   ;;  %s5300_s3 = inlined_call_operand.hbm [shape: bf16[1024,512], index: 3, kind: input, shape index: {}]   ;;  %s5301_s4 = inlined_call_operand.vmem [shape: f32[1,512], index: 4, kind: input, shape index: {}]   ;;  %s5302_s5 = inlined_call_operand.hbm [shape: bf16[512,256], index: 5, kind: input, shape index: {}]   ;;  %s5303_s6 = inlined_call_operand.vmem [shape: f32[1,256], index: 6, kind: input, shape index: {}]   ;;  %s5304_s7 = inlined_call_operand.vmem [shape: f32[1,256], index: 7, kind: input, shape index: {}]   ;;  %s5305_s8 = inlined_call_operand.<no memory space> [shape: f32[1,1], index: 8, kind: input, shape index: {}]   ;;  %s5306_s9 = inlined_call_operand.hbm [shape: f32[1,1,16], index: 9, kind: output, shape index: {}]  }
   0x1   :  { %v14_v0 = vstv %s5305_s8 }
   0x2   :  { %15 = vst [vmem:[#allocation2] sm:$0x1] %v14_v0 }
   0x3   :  { %16 = vsyncpa [#allocation4], 0 }
   0x4   :  { %17 = vsyncpa [#allocation7], 0 }
   0x5   :  { %18 = vsyncpa [#allocation10], 0  ;;  %s37_s13 = sshll.u32 %s5298_s1, 4  ;;  %s38_s13 = int_to_ptr.hbm [resolvable:$true] %s37_s13 }
   0x6   :  { %19 = vsyncpa [#allocation5], 0  ;;  %s5039_s14 = smov [#allocation6]   ;;  %s61_s18 = sshll.u32 %s5300_s3, 4  ;;  %s62_s18 = int_to_ptr.hbm [resolvable:$true] %s61_s18 }
   0x7   :  { %s39_s15 = sshll.u32 %s5039_s14, 4  ;;  %s5040_s19 = smov 512   ;;  %s40_s15 = int_to_ptr.vmem [resolvable:$true] %s39_s15 }
   0x8   :  { %s5041_s20 = smov 32   ;;  %s5042_s8 = smov [#allocation9]  }
   0x9   :  { %45 = dma.hbm_to_vmem [thread:$0]  %s38_s13, 4096, %s40_s15, [#allocation7], %s5040_s19, %s5040_s19, %s5041_s20  }
   0xa   :  { %s63_s21 = sshll.u32 %s5042_s8, 4  ;;  %s5043_s22 = smov 256   ;;  %s64_s21 = int_to_ptr.vmem [resolvable:$true] %s63_s21 }
   0xb   :  { %s5044_s23 = smov 16   ;;  %s24_s25 = sshll.u32 %s5297_s0, 4  ;;  %s25_s25 = int_to_ptr.hbm [resolvable:$true] %s24_s25 }
   0xc   :  { %69 = dma.hbm_to_vmem [thread:$0]  %s62_s18, 32768, %s64_s21, [#allocation10], %s5043_s22, %s5043_s22, %s5044_s23  }
   0xd   :  { %s5045_s26 = smov [#allocation3]   ;;  %s51_s29 = sshll.u32 %s5299_s2, 4  ;;  %s52_s29 = int_to_ptr.hbm [resolvable:$true] %s51_s29 }
   0xe   :  { %s26_s27 = sshll.u32 %s5045_s26, 4  ;;  %s5046_s30 = smov 64   ;;  %s27_s27 = int_to_ptr.vmem [resolvable:$true] %s26_s27 }
   0xf   :  { %s5047_s10 = smov 4   ;;  %s5048_s11 = smov [#allocation8]  }
  0x10   :  { %32 = dma.hbm_to_vmem [thread:$0]  %s25_s25, 128, %s27_s27, [#allocation4], %s5046_s30, %s5046_s30, %s5047_s10  }
  0x11   :  { %s53_s12 = sshll.u32 %s5048_s11, 4  ;;  %s76_s15 = sshll.u32 %s5302_s5, 4  ;;  %s54_s12 = int_to_ptr.vmem [resolvable:$true] %s53_s12  ;;  %s77_s15 = int_to_ptr.hbm [resolvable:$true] %s76_s15 }
  0x12   :  { %56 = dma.hbm_to_vmem [thread:$0]  %s52_s29, 128, %s54_s12, [#allocation7]  }
  0x13   :  { %s5049_s0 = smov [#allocation11]   ;;  %s5050_s17 = smov 128  }
  0x14   :  { %s78_s16 = sshll.u32 %s5049_s0, 4  ;;  %s5051_s18 = smov 8   ;;  %s79_s16 = int_to_ptr.vmem [resolvable:$true] %s78_s16 }
  0x15   :  { %84 = dma.hbm_to_vmem [thread:$0]  %s77_s15, 8192, %s79_s16, [#allocation10], %s5050_s17, %s5050_s17, %s5051_s18  }
  0x16   :  { %5031 = dma.done.wait [#allocation4], 128  }
  0x17   :  { %5032 = vsyncadd [#allocation4], 4294967168 }
  0x18   :  { %5033 = dma.done.wait [#allocation7], 4224  }
  0x19   :  { %5034 = vsyncadd [#allocation7], 4294963072 }
  0x1a   :  { %5035 = dma.done.wait [#allocation10], 40960  }
  0x1b   :  { %5036 = vsyncadd [#allocation10], 4294926336  ;;  %v3198_v1 = vld [vmem:[#allocation6 + $0xc0] sm:$0xf]  ;;  %v4541_v3 = vld [vmem:[#allocation6 + $0xc4] sm:$0xf] }
  0x1c   :  { %v4545_v2 = vld [vmem:[#allocation6 + $0xdc] sm:$0xf0]  ;;  %v3200_v5 = vld [vmem:[#allocation6 + $0xe0] sm:$0xf0]  ;;  %v3206_v6 = vld [vmem:[#allocation6 + $0xc8] sm:$0xf] }
  0x1d   :  { %v3199_v4 = vor.u32 %v4545_v2, %v3198_v1  ;;  %v4546_v7 = vld [vmem:[#allocation6 + $0xe4] sm:$0xf0]  ;;  %v3203_v8 = vor.u32 %v4541_v3, %v3200_v5  ;;  %v4542_v10 = vld [vmem:[#allocation6 + $0xcc] sm:$0xf]  ;;  %v3166_v12 = vld [vmem:[#allocation6 + $0x80] sm:$0xf] }
  0x1e   :  { %v3207_v9 = vor.u32 %v4546_v7, %v3206_v6  ;;  %v3208_v11 = vld [vmem:[#allocation6 + $0xe8] sm:$0xf0]  ;;  %v4537_v14 = vld [vmem:[#allocation6 + $0x9c] sm:$0xf0]  ;;  %v4533_v15 = vld [vmem:[#allocation6 + $0x84] sm:$0xf] }
  0x1f   :  { %337 = vmatpush.bf16.msra.mxu0 %v3199_v4  ;;  %v3211_v13 = vor.u32 %v4542_v10, %v3208_v11  ;;  %v3168_v16 = vld [vmem:[#allocation6 + $0xa0] sm:$0xf0]  ;;  %351 = vmatpush.bf16.msra.mxu1 %v3203_v8  ;;  %v3167_v17 = vor.u32 %v4537_v14, %v3166_v12  ;;  %v3174_v19 = vld [vmem:[#allocation6 + $0x88] sm:$0xf]  ;;  %v4534_v21 = vld [vmem:[#allocation6 + $0x8c] sm:$0xf] }
  0x20   :  { %365 = vmatpush.bf16.msra.mxu2 %v3207_v9  ;;  %v3171_v18 = vor.u32 %v4533_v15, %v3168_v16  ;;  %v4538_v20 = vld [vmem:[#allocation6 + $0xa4] sm:$0xf0]  ;;  %v3176_v23 = vld [vmem:[#allocation6 + $0xa8] sm:$0xf0]  ;;  %v3134_v24 = vld [vmem:[#allocation6 + $0x40] sm:$0xf] }
  0x21   :  { %379 = vmatpush.bf16.msra.mxu3 %v3211_v13  ;;  %v3175_v22 = vor.u32 %v4538_v20, %v3174_v19  ;;  %v4529_v25 = vld [vmem:[#allocation6 + $0x5c] sm:$0xf0]  ;;  %v3179_v26 = vor.u32 %v4534_v21, %v3176_v23  ;;  %v4525_v27 = vld [vmem:[#allocation6 + $0x44] sm:$0xf]  ;;  %v3142_v29 = vld [vmem:[#allocation6 + $0x48] sm:$0xf] }
  0x22   :  { %v3136_v28 = vld [vmem:[#allocation6 + $0x60] sm:$0xf0]  ;;  %v3135_v30 = vor.u32 %v4529_v25, %v3134_v24  ;;  %v4530_v31 = vld [vmem:[#allocation6 + $0x64] sm:$0xf0]  ;;  %v4526_v32 = vld [vmem:[#allocation6 + $0x4c] sm:$0xf] }
  0x23   :  { %338 = vmatpush.bf16.msra.mxu0 %v3167_v17  ;;  %v3144_v33 = vld [vmem:[#allocation6 + $0x68] sm:$0xf0]  ;;  %352 = vmatpush.bf16.msra.mxu1 %v3171_v18  ;;  %v3139_v34 = vor.u32 %v4525_v27, %v3136_v28  ;;  %v3143_v35 = vor.u32 %v4530_v31, %v3142_v29  ;;  %v3102_v36 = vld [vmem:[#allocation6] sm:$0xf]  ;;  %v4517_v38 = vld [vmem:[#allocation6 + $0x4] sm:$0xf] }
  0x24   :  { %366 = vmatpush.bf16.msra.mxu2 %v3175_v22  ;;  %v4521_v37 = vld [vmem:[#allocation6 + $0x1c] sm:$0xf0]  ;;  %v3147_v39 = vor.u32 %v4526_v32, %v3144_v33  ;;  %v3104_v40 = vld [vmem:[#allocation6 + $0x20] sm:$0xf0]  ;;  %v3110_v41 = vld [vmem:[#allocation6 + $0x8] sm:$0xf] }
  0x25   :  { %380 = vmatpush.bf16.msra.mxu3 %v3179_v26  ;;  %v4522_v42 = vld [vmem:[#allocation6 + $0x24] sm:$0xf0]  ;;  %v4518_v43 = vld [vmem:[#allocation6 + $0xc] sm:$0xf]  ;;  %v3103_v45 = vor.u32 %v4521_v37, %v3102_v36  ;;  %v3214_v46 = vld [vmem:[#allocation6 + $0xd0] sm:$0xf]  ;;  %v3107_v49 = vor.u32 %v4517_v38, %v3104_v40 }
  0x26   :  { %v3112_v44 = vld [vmem:[#allocation6 + $0x28] sm:$0xf0]  ;;  %v4547_v47 = vld [vmem:[#allocation6 + $0xec] sm:$0xf0]  ;;  %v4543_v48 = vld [vmem:[#allocation6 + $0xd4] sm:$0xf]  ;;  %v3111_v50 = vor.u32 %v4522_v42, %v3110_v41 }
  0x27   :  { %339 = vmatpush.bf16.msra.mxu0 %v3135_v30  ;;  %353 = vmatpush.bf16.msra.mxu1 %v3139_v34  ;;  %v5122_v51 = vld [vmem:[#allocation3] sm:$0xff]  ;;  %v3216_v52 = vld [vmem:[#allocation6 + $0xf0] sm:$0xf0]  ;;  %v3115_v53 = vor.u32 %v4518_v43, %v3112_v44  ;;  %v3215_v54 = vor.u32 %v4547_v47, %v3214_v46  ;;  %v3182_v60 = vld [vmem:[#allocation6 + $0x90] sm:$0xf]  ;;  %vm329_vm0 = vcmask 523264  }
  0x28   :  { %367 = vmatpush.bf16.msra.mxu2 %v3143_v35  ;;  %v3222_v55 = vld [vmem:[#allocation6 + $0xd8] sm:$0xf]  ;;  %v4544_v57 = vld [vmem:[#allocation6 + $0xdc] sm:$0xf]  ;;  %v3219_v58 = vor.u32 %v4543_v48, %v3216_v52  ;;  %v4539_v61 = vld [vmem:[#allocation6 + $0xac] sm:$0xf0] }
  0x29   :  { %381 = vmatpush.bf16.msra.mxu3 %v3147_v39  ;;  %v4548_v56 = vld [vmem:[#allocation6 + $0xf4] sm:$0xf0]  ;;  %v3224_v59 = vld [vmem:[#allocation6 + $0xf8] sm:$0xf0]  ;;  %v4535_v62 = vld [vmem:[#allocation6 + $0x94] sm:$0xf]  ;;  %v3183_v2 = vor.u32 %v4539_v61, %v3182_v60 }
  0x2a   :  { %v3184_v63 = vld [vmem:[#allocation6 + $0xb0] sm:$0xf0]  ;;  %v3223_v0 = vor.u32 %v4548_v56, %v3222_v55  ;;  %v3227_v1 = vor.u32 %v4544_v57, %v3224_v59  ;;  %v3190_v3 = vld [vmem:[#allocation6 + $0x98] sm:$0xf]  ;;  %v4536_v5 = vld [vmem:[#allocation6 + $0x9c] sm:$0xf] }
  0x2b   :  { %340 = vmatpush.bf16.msra.mxu0 %v3103_v45  ;;  %354 = vmatpush.bf16.msra.mxu1 %v3107_v49  ;;  %v4540_v4 = vld [vmem:[#allocation6 + $0xb4] sm:$0xf0]  ;;  %v3187_v6 = vor.u32 %v4535_v62, %v3184_v63  ;;  %v3192_v7 = vld [vmem:[#allocation6 + $0xb8] sm:$0xf0]  ;;  %v3150_v8 = vld [vmem:[#allocation6 + $0x50] sm:$0xf] }
  0x2c   :  { %368 = vmatpush.bf16.msra.mxu2 %v3111_v50  ;;  %v4531_v9 = vld [vmem:[#allocation6 + $0x6c] sm:$0xf0]  ;;  %v4527_v10 = vld [vmem:[#allocation6 + $0x54] sm:$0xf]  ;;  %v3191_v12 = vor.u32 %v4540_v4, %v3190_v3  ;;  %v3158_v13 = vld [vmem:[#allocation6 + $0x58] sm:$0xf]  ;;  %v3195_v14 = vor.u32 %v4536_v5, %v3192_v7 }
  0x2d   :  { %382 = vmatpush.bf16.msra.mxu3 %v3115_v53  ;;  %v3152_v11 = vld [vmem:[#allocation6 + $0x70] sm:$0xf0]  ;;  %v3151_v15 = vor.u32 %v4531_v9, %v3150_v8  ;;  %v4532_v16 = vld [vmem:[#allocation6 + $0x74] sm:$0xf0]  ;;  %v4528_v17 = vld [vmem:[#allocation6 + $0x5c] sm:$0xf] }
  0x2e   :  { %3228 = vmatmul.msk.bf16.vlgmr.msra.gmra.mxu0 %vm329_vm0, %v5122_v51  ;;  %3229 = vmatmul.msk.bf16.vlgmr.msra.gmra.mxu1 %vm329_vm0, %v5122_v51  ;;  %v3160_v18 = vld [vmem:[#allocation6 + $0x78] sm:$0xf0]  ;;  %v3155_v19 = vor.u32 %v4527_v10, %v3152_v11  ;;  %v3118_v20 = vld [vmem:[#allocation6 + $0x10] sm:$0xf]  ;;  %v4519_v22 = vld [vmem:[#allocation6 + $0x14] sm:$0xf]  ;;  %v3159_v26 = vor.u32 %v4532_v16, %v3158_v13 }
  0x2f   :  { %393 = vmatpush.bf16.msrb.mxu0 %v3215_v54  ;;  %407 = vmatpush.bf16.msrb.mxu1 %v3219_v58  ;;  %v4523_v21 = vld [vmem:[#allocation6 + $0x2c] sm:$0xf0]  ;;  %v3120_v23 = vld [vmem:[#allocation6 + $0x30] sm:$0xf0]  ;;  %v3350_v24 = vld [vmem:[#allocation9 + $0xe0] sm:$0xf]  ;;  %v3163_v29 = vor.u32 %v4528_v17, %v3160_v18 }
  0x30   :  { %3230 = vmatmul.msk.bf16.vlgmr.msra.gmra.mxu2 %vm329_vm0, %v5122_v51  ;;  %3231 = vmatmul.msk.bf16.vlgmr.msra.gmra.mxu3 %vm329_vm0, %v5122_v51  ;;  %v4579_v25 = vld [vmem:[#allocation9 + $0xec] sm:$0xf0]  ;;  %v3478_v27 = vld [vmem:[#allocation9 + $0x1e0] sm:$0xf]  ;;  %v3119_v30 = vor.u32 %v4523_v21, %v3118_v20  ;;  %v4520_v33 = vld [vmem:[#allocation6 + $0x1c] sm:$0xf]  ;;  %v3123_v34 = vor.u32 %v4519_v22, %v3120_v23 }
  0x31   :  { %421 = vmatpush.bf16.msrb.mxu2 %v3223_v0  ;;  %435 = vmatpush.bf16.msrb.mxu3 %v3227_v1  ;;  %v4611_v28 = vld [vmem:[#allocation9 + $0x1ec] sm:$0xf0]  ;;  %v3128_v35 = vld [vmem:[#allocation6 + $0x38] sm:$0xf0]  ;;  %v3351_v36 = vor.u32 %v4579_v25, %v3350_v24  ;;  %v3606_v37 = vld [vmem:[#allocation9 + $0x2e0] sm:$0xf] }
  0x32   :  { %v3126_v31 = vld [vmem:[#allocation6 + $0x18] sm:$0xf]  ;;  %v3479_v39 = vor.u32 %v4611_v28, %v3478_v27  ;;  %v3734_v40 = vld [vmem:[#allocation9 + $0x3e0] sm:$0xf]  ;;  %v3131_v43 = vor.u32 %v4520_v33, %v3128_v35  ;;  %s3084_s23 = sshll.u32 %s5306_s9, 4  ;;  %s3085_s23 = int_to_ptr.hbm [resolvable:$true] %s3084_s23 }
  0x33   :  { %394 = vmatpush.bf16.msrb.mxu0 %v3183_v2  ;;  %408 = vmatpush.bf16.msrb.mxu1 %v3187_v6  ;;  %v4524_v32 = vld [vmem:[#allocation6 + $0x34] sm:$0xf0]  ;;  %v3334_v44 = vld [vmem:[#allocation9 + $0xc0] sm:$0xf] }
  0x34   :  { %v4643_v38 = vld [vmem:[#allocation9 + $0x2ec] sm:$0xf0]  ;;  %v3127_v42 = vor.u32 %v4524_v32, %v3126_v31  ;;  %v3462_v46 = vld [vmem:[#allocation9 + $0x1c0] sm:$0xf] }
  0x35   :  { %422 = vmatpush.bf16.msrb.mxu2 %v3191_v12  ;;  %436 = vmatpush.bf16.msrb.mxu3 %v3195_v14  ;;  %v4675_v41 = vld [vmem:[#allocation9 + $0x3ec] sm:$0xf0]  ;;  %v3607_v47 = vor.u32 %v4643_v38, %v3606_v37  ;;  %v3590_v50 = vld [vmem:[#allocation9 + $0x2c0] sm:$0xf] }
  0x36   :  { %v4575_v45 = vld [vmem:[#allocation9 + $0xcc] sm:$0xf0]  ;;  %v3735_v49 = vor.u32 %v4675_v41, %v3734_v40  ;;  %v3718_v53 = vld [vmem:[#allocation9 + $0x3c0] sm:$0xf] }
  0x37   :  { %395 = vmatpush.bf16.msrb.mxu0 %v3151_v15  ;;  %409 = vmatpush.bf16.msrb.mxu1 %v3155_v19  ;;  %v4607_v48 = vld [vmem:[#allocation9 + $0x1cc] sm:$0xf0]  ;;  %v3335_v55 = vor.u32 %v4575_v45, %v3334_v44  ;;  %v3318_v57 = vld [vmem:[#allocation9 + $0xa0] sm:$0xf] }
  0x38   :  { %v4639_v52 = vld [vmem:[#allocation9 + $0x2cc] sm:$0xf0]  ;;  %v3463_v56 = vor.u32 %v4607_v48, %v3462_v46  ;;  %v3446_v59 = vld [vmem:[#allocation9 + $0x1a0] sm:$0xf] }
  0x39   :  { %423 = vmatpush.bf16.msrb.mxu2 %v3159_v26  ;;  %437 = vmatpush.bf16.msrb.mxu3 %v3163_v29  ;;  %v4671_v54 = vld [vmem:[#allocation9 + $0x3cc] sm:$0xf0]  ;;  %v3591_v60 = vor.u32 %v4639_v52, %v3590_v50  ;;  %v3574_v63 = vld [vmem:[#allocation9 + $0x2a0] sm:$0xf] }
  0x3a   :  { %v4571_v58 = vld [vmem:[#allocation9 + $0xac] sm:$0xf0]  ;;  %v3719_v62 = vor.u32 %v4671_v54, %v3718_v53  ;;  %v3702_v1 = vld [vmem:[#allocation9 + $0x3a0] sm:$0xf] }
  0x3b   :  { %396 = vmatpush.bf16.msrb.mxu0 %v3119_v30  ;;  %410 = vmatpush.bf16.msrb.mxu1 %v3123_v34  ;;  %v4603_v61 = vld [vmem:[#allocation9 + $0x1ac] sm:$0xf0]  ;;  %v3319_v3 = vor.u32 %v4571_v58, %v3318_v57  ;;  %v3302_v5 = vld [vmem:[#allocation9 + $0x80] sm:$0xf] }
  0x3c   :  { %v4635_v0 = vld [vmem:[#allocation9 + $0x2ac] sm:$0xf0]  ;;  %v3447_v4 = vor.u32 %v4603_v61, %v3446_v59  ;;  %v3430_v7 = vld [vmem:[#allocation9 + $0x180] sm:$0xf] }
  0x3d   :  { %424 = vmatpush.bf16.msrb.mxu2 %v3127_v42  ;;  %438 = vmatpush.bf16.msrb.mxu3 %v3131_v43  ;;  %v4667_v2 = vld [vmem:[#allocation9 + $0x3ac] sm:$0xf0]  ;;  %v3575_v8 = vor.u32 %v4635_v0, %v3574_v63  ;;  %v3558_v11 = vld [vmem:[#allocation9 + $0x280] sm:$0xf] }
  0x3e   :  { %3232 = vmatmul.msk.bf16.vlgmr.msrb.gmra.mxu0 %vm329_vm0, %v5122_v51  ;;  %3233 = vmatmul.msk.bf16.vlgmr.msrb.gmra.mxu1 %vm329_vm0, %v5122_v51  ;;  %v4567_v6 = vld [vmem:[#allocation9 + $0x8c] sm:$0xf0]  ;;  %v3703_v10 = vor.u32 %v4667_v2, %v3702_v1  ;;  %v3686_v13 = vld [vmem:[#allocation9 + $0x380] sm:$0xf] }
  0x3f   :  { %2047 = vmatpush.bf16.msra.mxu0 %v3351_v36  ;;  %2061 = vmatpush.bf16.msra.mxu1 %v3479_v39  ;;  %v4599_v9 = vld [vmem:[#allocation9 + $0x18c] sm:$0xf0]  ;;  %v3303_v15 = vor.u32 %v4567_v6, %v3302_v5  ;;  %v3286_v16 = vld [vmem:[#allocation9 + $0x60] sm:$0xf] }
  0x40   :  { %3234 = vmatmul.msk.bf16.vlgmr.msrb.gmra.mxu2 %vm329_vm0, %v5122_v51  ;;  %3235 = vmatmul.msk.bf16.vlgmr.msrb.gmra.mxu3 %vm329_vm0, %v5122_v51  ;;  %v4631_v12 = vld [vmem:[#allocation9 + $0x28c] sm:$0xf0]  ;;  %v3431_v51 = vor.u32 %v4599_v9, %v3430_v7  ;;  %v3414_v18 = vld [vmem:[#allocation9 + $0x160] sm:$0xf] }
  0x41   :  { %2075 = vmatpush.bf16.msra.mxu2 %v3607_v47  ;;  %2089 = vmatpush.bf16.msra.mxu3 %v3735_v49  ;;  %v4663_v14 = vld [vmem:[#allocation9 + $0x38c] sm:$0xf0]  ;;  %v3559_v19 = vor.u32 %v4631_v12, %v3558_v11  ;;  %v3542_v22 = vld [vmem:[#allocation9 + $0x260] sm:$0xf] }
  0x42   :  { %v4563_v17 = vld [vmem:[#allocation9 + $0x6c] sm:$0xf0]  ;;  %v3687_v21 = vor.u32 %v4663_v14, %v3686_v13  ;;  %v3670_v24 = vld [vmem:[#allocation9 + $0x360] sm:$0xf] }
  0x43   :  { %2048 = vmatpush.bf16.msra.mxu0 %v3335_v55  ;;  %2062 = vmatpush.bf16.msra.mxu1 %v3463_v56  ;;  %v4595_v20 = vld [vmem:[#allocation9 + $0x16c] sm:$0xf0]  ;;  %v3287_v26 = vor.u32 %v4563_v17, %v3286_v16  ;;  %v3270_v28 = vld [vmem:[#allocation9 + $0x40] sm:$0xf] }
  0x44   :  { %v4627_v23 = vld [vmem:[#allocation9 + $0x26c] sm:$0xf0]  ;;  %v3415_v27 = vor.u32 %v4595_v20, %v3414_v18  ;;  %v3398_v30 = vld [vmem:[#allocation9 + $0x140] sm:$0xf] }
  0x45   :  { %2076 = vmatpush.bf16.msra.mxu2 %v3591_v60  ;;  %2090 = vmatpush.bf16.msra.mxu3 %v3719_v62  ;;  %v4659_v25 = vld [vmem:[#allocation9 + $0x36c] sm:$0xf0]  ;;  %v3543_v31 = vor.u32 %v4627_v23, %v3542_v22  ;;  %v3526_v34 = vld [vmem:[#allocation9 + $0x240] sm:$0xf] }
  0x46   :  { %v4559_v29 = vld [vmem:[#allocation9 + $0x4c] sm:$0xf0]  ;;  %v3671_v33 = vor.u32 %v4659_v25, %v3670_v24  ;;  %v3654_v36 = vld [vmem:[#allocation9 + $0x340] sm:$0xf] }
  0x47   :  { %2049 = vmatpush.bf16.msra.mxu0 %v3319_v3  ;;  %2063 = vmatpush.bf16.msra.mxu1 %v3447_v4  ;;  %v4591_v32 = vld [vmem:[#allocation9 + $0x14c] sm:$0xf0]  ;;  %v3271_v38 = vor.u32 %v4559_v29, %v3270_v28  ;;  %v3254_v40 = vld [vmem:[#allocation9 + $0x20] sm:$0xf] }
  0x48   :  { %v4623_v35 = vld [vmem:[#allocation9 + $0x24c] sm:$0xf0]  ;;  %v3399_v39 = vor.u32 %v4591_v32, %v3398_v30  ;;  %v3382_v42 = vld [vmem:[#allocation9 + $0x120] sm:$0xf] }
  0x49   :  { %2077 = vmatpush.bf16.msra.mxu2 %v3575_v8  ;;  %2091 = vmatpush.bf16.msra.mxu3 %v3703_v10  ;;  %v4655_v37 = vld [vmem:[#allocation9 + $0x34c] sm:$0xf0]  ;;  %v3527_v43 = vor.u32 %v4623_v35, %v3526_v34  ;;  %v3510_v46 = vld [vmem:[#allocation9 + $0x220] sm:$0xf] }
  0x4a   :  { %v4555_v41 = vld [vmem:[#allocation9 + $0x2c] sm:$0xf0]  ;;  %v3655_v45 = vor.u32 %v4655_v37, %v3654_v36  ;;  %v3638_v48 = vld [vmem:[#allocation9 + $0x320] sm:$0xf] }
  0x4b   :  { %2050 = vmatpush.bf16.msra.mxu0 %v3303_v15  ;;  %2064 = vmatpush.bf16.msra.mxu1 %v3431_v51  ;;  %v4587_v44 = vld [vmem:[#allocation9 + $0x12c] sm:$0xf0]  ;;  %v3255_v50 = vor.u32 %v4555_v41, %v3254_v40  ;;  %v3238_v52 = vld [vmem:[#allocation9] sm:$0xf] }
  0x4c   :  { %v4619_v47 = vld [vmem:[#allocation9 + $0x22c] sm:$0xf0]  ;;  %v3383_v54 = vor.u32 %v4587_v44, %v3382_v42  ;;  %v3366_v55 = vld [vmem:[#allocation9 + $0x100] sm:$0xf] }
  0x4d   :  { %2078 = vmatpush.bf16.msra.mxu2 %v3559_v19  ;;  %2092 = vmatpush.bf16.msra.mxu3 %v3687_v21  ;;  %v4651_v49 = vld [vmem:[#allocation9 + $0x32c] sm:$0xf0]  ;;  %v3862_v57 = vld [vmem:[#allocation9 + $0x4e0] sm:$0xf]  ;;  %v3511_v58 = vor.u32 %v4619_v47, %v3510_v46 }
  0x4e   :  { %v4551_v53 = vld [vmem:[#allocation9 + $0xc] sm:$0xf0]  ;;  %v3990_v60 = vld [vmem:[#allocation9 + $0x5e0] sm:$0xf]  ;;  %v3639_v62 = vor.u32 %v4651_v49, %v3638_v48 }
  0x4f   :  { %2051 = vmatpush.bf16.msra.mxu0 %v3287_v26  ;;  %2065 = vmatpush.bf16.msra.mxu1 %v3415_v27  ;;  %v4583_v56 = vld [vmem:[#allocation9 + $0x10c] sm:$0xf0]  ;;  %v3494_v63 = vld [vmem:[#allocation9 + $0x200] sm:$0xf]  ;;  %v3239_v2 = vor.u32 %v4551_v53, %v3238_v52 }
  0x50   :  { %v4707_v59 = vld [vmem:[#allocation9 + $0x4ec] sm:$0xf0]  ;;  %v3622_v1 = vld [vmem:[#allocation9 + $0x300] sm:$0xf]  ;;  %v3367_v6 = vor.u32 %v4583_v56, %v3366_v55 }
  0x51   :  { %2079 = vmatpush.bf16.msra.mxu2 %v3543_v31  ;;  %2093 = vmatpush.bf16.msra.mxu3 %v3671_v33  ;;  %v4739_v61 = vld [vmem:[#allocation9 + $0x5ec] sm:$0xf0]  ;;  %v4118_v4 = vld [vmem:[#allocation9 + $0x6e0] sm:$0xf]  ;;  %v3863_v7 = vor.u32 %v4707_v59, %v3862_v57 }
  0x52   :  { %v4615_v0 = vld [vmem:[#allocation9 + $0x20c] sm:$0xf0]  ;;  %v4246_v8 = vld [vmem:[#allocation9 + $0x7e0] sm:$0xf]  ;;  %v3991_v10 = vor.u32 %v4739_v61, %v3990_v60 }
  0x53   :  { %2052 = vmatpush.bf16.msra.mxu0 %v3271_v38  ;;  %2066 = vmatpush.bf16.msra.mxu1 %v3399_v39  ;;  %v4647_v3 = vld [vmem:[#allocation9 + $0x30c] sm:$0xf0]  ;;  %v3846_v11 = vld [vmem:[#allocation9 + $0x4c0] sm:$0xf]  ;;  %v3495_v13 = vor.u32 %v4615_v0, %v3494_v63 }
  0x54   :  { %v4771_v5 = vld [vmem:[#allocation9 + $0x6ec] sm:$0xf0]  ;;  %v3974_v14 = vld [vmem:[#allocation9 + $0x5c0] sm:$0xf]  ;;  %v3623_v51 = vor.u32 %v4647_v3, %v3622_v1 }
  0x55   :  { %2080 = vmatpush.bf16.msra.mxu2 %v3527_v43  ;;  %2094 = vmatpush.bf16.msra.mxu3 %v3655_v45  ;;  %v4803_v9 = vld [vmem:[#allocation9 + $0x7ec] sm:$0xf0]  ;;  %v4119_v16 = vor.u32 %v4771_v5, %v4118_v4  ;;  %v4102_v18 = vld [vmem:[#allocation9 + $0x6c0] sm:$0xf] }
  0x56   :  { %v4703_v12 = vld [vmem:[#allocation9 + $0x4cc] sm:$0xf0]  ;;  %v4247_v17 = vor.u32 %v4803_v9, %v4246_v8  ;;  %v4230_v21 = vld [vmem:[#allocation9 + $0x7c0] sm:$0xf] }
  0x57   :  { %2053 = vmatpush.bf16.msra.mxu0 %v3255_v50  ;;  %2067 = vmatpush.bf16.msra.mxu1 %v3383_v54  ;;  %v4735_v15 = vld [vmem:[#allocation9 + $0x5cc] sm:$0xf0]  ;;  %v3847_v20 = vor.u32 %v4703_v12, %v3846_v11  ;;  %v3830_v24 = vld [vmem:[#allocation9 + $0x4a0] sm:$0xf] }
  0x58   :  { %v4767_v19 = vld [vmem:[#allocation9 + $0x6cc] sm:$0xf0]  ;;  %v3975_v23 = vor.u32 %v4735_v15, %v3974_v14  ;;  %v3958_v26 = vld [vmem:[#allocation9 + $0x5a0] sm:$0xf] }
  0x59   :  { %2081 = vmatpush.bf16.msra.mxu2 %v3511_v58  ;;  %2095 = vmatpush.bf16.msra.mxu3 %v3639_v62  ;;  %v4799_v22 = vld [vmem:[#allocation9 + $0x7cc] sm:$0xf0]  ;;  %v4103_v28 = vor.u32 %v4767_v19, %v4102_v18  ;;  %v3814_v32 = vld [vmem:[#allocation9 + $0x480] sm:$0xf] }
  0x5a   :  { %v4699_v25 = vld [vmem:[#allocation9 + $0x4ac] sm:$0xf0]  ;;  %v4231_v29 = vor.u32 %v4799_v22, %v4230_v21  ;;  %v3942_v34 = vld [vmem:[#allocation9 + $0x580] sm:$0xf] }
  0x5b   :  { %2054 = vmatpush.bf16.msra.mxu0 %v3239_v2  ;;  %2068 = vmatpush.bf16.msra.mxu1 %v3367_v6  ;;  %v4731_v27 = vld [vmem:[#allocation9 + $0x5ac] sm:$0xf0]  ;;  %v3831_v30 = vor.u32 %v4699_v25, %v3830_v24  ;;  %v4086_v38 = vld [vmem:[#allocation9 + $0x6a0] sm:$0xf] }
  0x5c   :  { %v3959_v31 = vor.u32 %v4731_v27, %v3958_v26  ;;  %v4695_v33 = vld [vmem:[#allocation9 + $0x48c] sm:$0xf0]  ;;  %v4214_v40 = vld [vmem:[#allocation9 + $0x7a0] sm:$0xf] }
  0x5d   :  { %2082 = vmatpush.bf16.msra.mxu2 %v3495_v13  ;;  %2096 = vmatpush.bf16.msra.mxu3 %v3623_v51  ;;  %v4727_v35 = vld [vmem:[#allocation9 + $0x58c] sm:$0xf0]  ;;  %v3815_v36 = vor.u32 %v4695_v33, %v3814_v32  ;;  %v3798_v44 = vld [vmem:[#allocation9 + $0x460] sm:$0xf] }
  0x5e   :  { %v3943_v37 = vor.u32 %v4727_v35, %v3942_v34  ;;  %v4763_v39 = vld [vmem:[#allocation9 + $0x6ac] sm:$0xf0]  ;;  %v3926_v46 = vld [vmem:[#allocation9 + $0x560] sm:$0xf]  ;;  %v5140_v34 = vld [vmem:[#allocation8] sm:$0xff] }
  0x5f   :  { %2103 = vmatpush.bf16.msrb.mxu0 %v3863_v7  ;;  %2117 = vmatpush.bf16.msrb.mxu1 %v3991_v10  ;;  %v4087_v41 = vor.u32 %v4763_v39, %v4086_v38  ;;  %v4795_v42 = vld [vmem:[#allocation9 + $0x7ac] sm:$0xf0]  ;;  %v4070_v50 = vld [vmem:[#allocation9 + $0x680] sm:$0xf] }
  0x60   :  { %v4215_v43 = vor.u32 %v4795_v42, %v4214_v40  ;;  %v4691_v45 = vld [vmem:[#allocation9 + $0x46c] sm:$0xf0]  ;;  %v4198_v53 = vld [vmem:[#allocation9 + $0x780] sm:$0xf] }
  0x61   :  { %2131 = vmatpush.bf16.msrb.mxu2 %v4119_v16  ;;  %2145 = vmatpush.bf16.msrb.mxu3 %v4247_v17  ;;  %v3799_v47 = vor.u32 %v4691_v45, %v3798_v44  ;;  %v4723_v48 = vld [vmem:[#allocation9 + $0x56c] sm:$0xf0]  ;;  %v3782_v57 = vld [vmem:[#allocation9 + $0x440] sm:$0xf] }
  0x62   :  { %v3927_v49 = vor.u32 %v4723_v48, %v3926_v46  ;;  %v4759_v52 = vld [vmem:[#allocation9 + $0x68c] sm:$0xf0]  ;;  %v3910_v60 = vld [vmem:[#allocation9 + $0x540] sm:$0xf] }
  0x63   :  { %2104 = vmatpush.bf16.msrb.mxu0 %v3847_v20  ;;  %2118 = vmatpush.bf16.msrb.mxu1 %v3975_v23  ;;  %v4071_v54 = vor.u32 %v4759_v52, %v4070_v50  ;;  %v4791_v55 = vld [vmem:[#allocation9 + $0x78c] sm:$0xf0]  ;;  %v4054_v63 = vld [vmem:[#allocation9 + $0x660] sm:$0xf]  ;;  %v4577_v50 = vld [vmem:[#allocation9 + $0xe4] sm:$0xf] }
  0x64   :  { %v4199_v56 = vor.u32 %v4791_v55, %v4198_v53  ;;  %v4687_v58 = vld [vmem:[#allocation9 + $0x44c] sm:$0xf0]  ;;  %v4182_v1 = vld [vmem:[#allocation9 + $0x760] sm:$0xf]  ;;  %v3352_v53 = vld [vmem:[#allocation9 + $0xf0] sm:$0xf0] }
  0x65   :  { %2132 = vmatpush.bf16.msrb.mxu2 %v4103_v28  ;;  %2146 = vmatpush.bf16.msrb.mxu3 %v4231_v29  ;;  %v3783_v59 = vor.u32 %v4687_v58, %v3782_v57  ;;  %v4719_v61 = vld [vmem:[#allocation9 + $0x54c] sm:$0xf0]  ;;  %v3766_v5 = vld [vmem:[#allocation9 + $0x420] sm:$0xf] }
  0x66   :  { %v3911_v62 = vor.u32 %v4719_v61, %v3910_v60  ;;  %v4755_v0 = vld [vmem:[#allocation9 + $0x66c] sm:$0xf0]  ;;  %v3894_v7 = vld [vmem:[#allocation9 + $0x520] sm:$0xf]  ;;  %v4573_v60 = vld [vmem:[#allocation9 + $0xc4] sm:$0xf] }
  0x67   :  { %2105 = vmatpush.bf16.msrb.mxu0 %v3831_v30  ;;  %2119 = vmatpush.bf16.msrb.mxu1 %v3959_v31  ;;  %v4055_v2 = vor.u32 %v4755_v0, %v4054_v63  ;;  %v4787_v3 = vld [vmem:[#allocation9 + $0x76c] sm:$0xf0]  ;;  %v4038_v11 = vld [vmem:[#allocation9 + $0x640] sm:$0xf]  ;;  %v3355_v0 = vor.u32 %v4577_v50, %v3352_v53  ;;  %v4597_v50 = vld [vmem:[#allocation9 + $0x184] sm:$0xf] }
  0x68   :  { %v4183_v4 = vor.u32 %v4787_v3, %v4182_v1  ;;  %v4683_v6 = vld [vmem:[#allocation9 + $0x42c] sm:$0xf0]  ;;  %v4166_v13 = vld [vmem:[#allocation9 + $0x740] sm:$0xf]  ;;  %v3336_v1 = vld [vmem:[#allocation9 + $0xd0] sm:$0xf0] }
  0x69   :  { %2133 = vmatpush.bf16.msrb.mxu2 %v4087_v41  ;;  %2147 = vmatpush.bf16.msrb.mxu3 %v4215_v43  ;;  %v3767_v8 = vor.u32 %v4683_v6, %v3766_v5  ;;  %v4715_v9 = vld [vmem:[#allocation9 + $0x52c] sm:$0xf0]  ;;  %v3750_v16 = vld [vmem:[#allocation9 + $0x400] sm:$0xf]  ;;  %v150_v43 = vperm.slane %v5140_v34, 2 }
  0x6a   :  { %v3895_v10 = vor.u32 %v4715_v9, %v3894_v7  ;;  %v4751_v12 = vld [vmem:[#allocation9 + $0x64c] sm:$0xf0]  ;;  %v3878_v18 = vld [vmem:[#allocation9 + $0x500] sm:$0xf]  ;;  %v3464_v3 = vld [vmem:[#allocation9 + $0x1d0] sm:$0xf0] }
  0x6b   :  { %2106 = vmatpush.bf16.msrb.mxu0 %v3815_v36  ;;  %2120 = vmatpush.bf16.msrb.mxu1 %v3943_v37  ;;  %v4039_v14 = vor.u32 %v4751_v12, %v4038_v11  ;;  %v4783_v15 = vld [vmem:[#allocation9 + $0x74c] sm:$0xf0]  ;;  %v4022_v22 = vld [vmem:[#allocation9 + $0x620] sm:$0xf]  ;;  %v149_v36 = vperm.slane %v5140_v34, 1  ;;  %v148_v37 = vperm.slane %v5140_v34, 0 }
  0x6c   :  { %v4167_v51 = vor.u32 %v4783_v15, %v4166_v13  ;;  %v4679_v17 = vld [vmem:[#allocation9 + $0x40c] sm:$0xf0]  ;;  %v4150_v24 = vld [vmem:[#allocation9 + $0x720] sm:$0xf]  ;;  %v5148_v7 = vld [vmem:[#allocation9 + $0x2e4] sm:$0xf] }
  0x6d   :  { %2134 = vmatpush.bf16.msrb.mxu2 %v4071_v54  ;;  %2148 = vmatpush.bf16.msrb.mxu3 %v4199_v56  ;;  %v3751_v19 = vor.u32 %v4679_v17, %v3750_v16  ;;  %v4711_v20 = vld [vmem:[#allocation9 + $0x50c] sm:$0xf0]  ;;  %v4006_v28 = vld [vmem:[#allocation9 + $0x600] sm:$0xf]  ;;  %v4609_v54 = vld [vmem:[#allocation9 + $0x1e4] sm:$0xf]  ;;  %v3339_v17 = vor.u32 %v4573_v60, %v3336_v1 }
  0x6e   :  { %v3879_v21 = vor.u32 %v4711_v20, %v3878_v18  ;;  %v4747_v23 = vld [vmem:[#allocation9 + $0x62c] sm:$0xf0]  ;;  %v4134_v31 = vld [vmem:[#allocation9 + $0x700] sm:$0xf]  ;;  %v3480_v56 = vld [vmem:[#allocation9 + $0x1f0] sm:$0xf0] }
  0x6f   :  { %2107 = vmatpush.bf16.msrb.mxu0 %v3799_v47  ;;  %2121 = vmatpush.bf16.msrb.mxu1 %v3927_v49  ;;  %v4779_v25 = vld [vmem:[#allocation9 + $0x72c] sm:$0xf0]  ;;  %v4023_v26 = vor.u32 %v4747_v23, %v4022_v22  ;;  %v151_v47 = vperm.slane %v5140_v34, 3  ;;  %v3483_v6 = vor.u32 %v4609_v54, %v3480_v56  ;;  %v153_v11 = vperm.slane %v5140_v34, 5  ;;  %v3608_v12 = vld [vmem:[#allocation9 + $0x2f0] sm:$0xf0] }
  0x70   :  { %v4151_v27 = vor.u32 %v4779_v25, %v4150_v24  ;;  %v4743_v29 = vld [vmem:[#allocation9 + $0x60c] sm:$0xf0]  ;;  %v5154_v13 = vld [vmem:[#allocation9 + $0x3e4] sm:$0xf]  ;;  %v154_v24 = vperm.slane %v5140_v34, 6 }
  0x71   :  { %2135 = vmatpush.bf16.msrb.mxu2 %v4055_v2  ;;  %2149 = vmatpush.bf16.msrb.mxu3 %v4183_v4  ;;  %v4007_v30 = vor.u32 %v4743_v29, %v4006_v28  ;;  %v4775_v32 = vld [vmem:[#allocation9 + $0x70c] sm:$0xf0]  ;;  %v4605_v2 = vld [vmem:[#allocation9 + $0x1c4] sm:$0xf]  ;;  %v3320_v25 = vld [vmem:[#allocation9 + $0xb0] sm:$0xf0] }
  0x72   :  { %v4135_v33 = vor.u32 %v4775_v32, %v4134_v31  ;;  %v3467_v18 = vor.u32 %v4605_v2, %v3464_v3  ;;  %v4569_v20 = vld [vmem:[#allocation9 + $0xa4] sm:$0xf]  ;;  %v3448_v32 = vld [vmem:[#allocation9 + $0x1b0] sm:$0xf0] }
  0x73   :  { %2108 = vmatpush.bf16.msrb.mxu0 %v3783_v59  ;;  %2122 = vmatpush.bf16.msrb.mxu1 %v3911_v62  ;;  %v4601_v28 = vld [vmem:[#allocation9 + $0x1a4] sm:$0xf]  ;;  %v3576_v56 = vld [vmem:[#allocation9 + $0x2b0] sm:$0xf0] }
  0x74   :  { %v3704_v2 = vld [vmem:[#allocation9 + $0x3b0] sm:$0xf0]  ;;  %v4561_v3 = vld [vmem:[#allocation9 + $0x64] sm:$0xf] }
  0x75   :  { %2136 = vmatpush.bf16.msrb.mxu2 %v4039_v14  ;;  %2150 = vmatpush.bf16.msrb.mxu3 %v4167_v51 }
  0x77   :  { %2109 = vmatpush.bf16.msrb.mxu0 %v3767_v8  ;;  %2123 = vmatpush.bf16.msrb.mxu1 %v3895_v10  ;;  %v152_v10 = vperm.slane %v5140_v34, 4 }
  0x79   :  { %2137 = vmatpush.bf16.msrb.mxu2 %v4023_v26  ;;  %2151 = vmatpush.bf16.msrb.mxu3 %v4151_v27  ;;  %v3611_v27 = vor.u32 %v5148_v7, %v3608_v12  ;;  %v4593_v12 = vld [vmem:[#allocation9 + $0x164] sm:$0xf] }
  0x7b   :  { %2110 = vmatpush.bf16.msrb.mxu0 %v3751_v19  ;;  %2124 = vmatpush.bf16.msrb.mxu1 %v3879_v21  ;;  %v3736_v19 = vld [vmem:[#allocation9 + $0x3f0] sm:$0xf0] }
  0x7c   :  { %v3739_v31 = vor.u32 %v5154_v13, %v3736_v19  ;;  %v3416_v13 = vld [vmem:[#allocation9 + $0x170] sm:$0xf0]  ;;  %v4661_v19 = vld [vmem:[#allocation9 + $0x384] sm:$0xf] }
  0x7d   :  { %2138 = vmatpush.bf16.msrb.mxu2 %v4007_v30  ;;  %2152 = vmatpush.bf16.msrb.mxu3 %v4135_v33 }
  0xab   :  { %v342_v35 = vpop.f32.mrf.mxu0  ;;  %v356_v38 = vpop.f32.mrf.mxu1 }
  0xac   :  { %v357_v39 = vadd.f32 %v356_v38, %v149_v36  ;;  %v343_v40 = vadd.f32 %v342_v35, %v148_v37  ;;  %v4637_v38 = vld [vmem:[#allocation9 + $0x2c4] sm:$0xf] }
  0xae   :  { %v462_v42 = vmul.f32 0.2, %v357_v39  ;;  %v461_v46 = vmul.f32 0.2, %v343_v40  ;;  %vm446_vm1 = vcmp.gt.f32.partialorder %v357_v39, 0.0  ;;  %vm445_vm2 = vcmp.gt.f32.partialorder %v343_v40, 0.0 }
  0xb0   :  { %v478_v57 = vsel %vm446_vm1, %v357_v39, %v462_v42  ;;  %v477_v61 = vsel %vm445_vm2, %v343_v40, %v461_v46  ;;  %v3592_v39 = vld [vmem:[#allocation9 + $0x2d0] sm:$0xf0]  ;;  %v4669_v40 = vld [vmem:[#allocation9 + $0x3c4] sm:$0xf] }
  0xb1   :  { %v4565_v46 = vld [vmem:[#allocation9 + $0x84] sm:$0xf]  ;;  %v3595_v60 = vor.u32 %v4637_v38, %v3592_v39 }
  0xb3   :  { %v370_v41 = vpop.f32.mrf.mxu2  ;;  %v384_v44 = vpop.f32.mrf.mxu3 }
  0xb4   :  { %v344_v45 = vpop.f32.mrf.mxu0  ;;  %v358_v49 = vpop.f32.mrf.mxu1  ;;  %v371_v58 = vadd.f32 %v370_v41, %v150_v43  ;;  %v385_v62 = vadd.f32 %v384_v44, %v151_v47  ;;  %v155_v44 = vperm.slane %v5140_v34, 7 }
  0xb5   :  { %v345_v48 = vadd.f32 %v344_v45, %v148_v37  ;;  %v359_v52 = vadd.f32 %v358_v49, %v149_v36  ;;  %v3323_v37 = vor.u32 %v4569_v20, %v3320_v25  ;;  %v3720_v45 = vld [vmem:[#allocation9 + $0x3d0] sm:$0xf0]  ;;  %v4557_v25 = vld [vmem:[#allocation9 + $0x44] sm:$0xf] }
  0xb6   :  { %v463_v14 = vmul.f32 0.2, %v371_v58  ;;  %vm447_vm5 = vcmp.gt.f32.partialorder %v371_v58, 0.0  ;;  %v464_v21 = vmul.f32 0.2, %v385_v62  ;;  %vm448_vm6 = vcmp.gt.f32.partialorder %v385_v62, 0.0 }
  0xb7   :  { %vm453_vm3 = vcmp.gt.f32.partialorder %v345_v48, 0.0  ;;  %v469_v55 = vmul.f32 0.2, %v345_v48  ;;  %vm454_vm4 = vcmp.gt.f32.partialorder %v359_v52, 0.0  ;;  %v470_v59 = vmul.f32 0.2, %v359_v52 }
  0xb8   :  { %v479_v33 = vsel %vm447_vm5, %v371_v58, %v463_v14  ;;  %v480_v41 = vsel %vm448_vm6, %v385_v62, %v464_v21  ;;  %v3304_v49 = vld [vmem:[#allocation9 + $0x90] sm:$0xf0] }
  0xb9   :  { %v485_v63 = vsel %vm453_vm3, %v345_v48, %v469_v55  ;;  %v486_v5 = vsel %vm454_vm4, %v359_v52, %v470_v59  ;;  %v3451_v48 = vor.u32 %v4601_v28, %v3448_v32  ;;  %v3432_v52 = vld [vmem:[#allocation9 + $0x190] sm:$0xf0]  ;;  %v4633_v55 = vld [vmem:[#allocation9 + $0x2a4] sm:$0xf]  ;;  %v3307_v1 = vor.u32 %v4565_v46, %v3304_v49 }
  0xba   :  { %v5146_v4 = vpack.c.bf16 %v485_v63, %v477_v61  ;;  %v5150_v8 = vpack.c.bf16 %v486_v5, %v478_v57  ;;  %v4665_v61 = vld [vmem:[#allocation9 + $0x3a4] sm:$0xf]  ;;  %v3435_v7 = vor.u32 %v4597_v50, %v3432_v52  ;;  %v3400_v32 = vld [vmem:[#allocation9 + $0x150] sm:$0xf0] }
  0xbb   :  { %v372_v9 = vpop.f32.mrf.mxu2  ;;  %v386_v51 = vpop.f32.mrf.mxu3  ;;  %v3707_v21 = vor.u32 %v4665_v61, %v3704_v2  ;;  %v3672_v49 = vld [vmem:[#allocation9 + $0x370] sm:$0xf0]  ;;  %v4553_v50 = vld [vmem:[#allocation9 + $0x24] sm:$0xf] }
  0xbc   :  { %v373_v15 = vadd.f32 %v372_v9, %v150_v43  ;;  %v398_v16 = vpop.f32.mrf.mxu0  ;;  %2055 = vmatmul.bf16.vlgmr.msra.gmra.mxu0 %v5146_v4  ;;  %v387_v22 = vadd.f32 %v386_v51, %v151_v47  ;;  %v412_v23 = vpop.f32.mrf.mxu1  ;;  %2069 = vmatmul.bf16.vlgmr.msra.gmra.mxu1 %v5150_v8  ;;  %v3288_v9 = vld [vmem:[#allocation9 + $0x70] sm:$0xf0]  ;;  %v4629_v51 = vld [vmem:[#allocation9 + $0x284] sm:$0xf] }
  0xbd   :  { %2159 = vmatpush.bf16.msra.mxu0 %v3355_v0  ;;  %2173 = vmatpush.bf16.msra.mxu1 %v3483_v6  ;;  %v399_v30 = vadd.f32 %v398_v16, %v152_v10  ;;  %v413_v36 = vadd.f32 %v412_v23, %v153_v11  ;;  %v3723_v0 = vor.u32 %v4669_v40, %v3720_v45  ;;  %v3560_v16 = vld [vmem:[#allocation9 + $0x290] sm:$0xf0] }
  0xbe   :  { %vm455_vm7 = vcmp.gt.f32.partialorder %v373_v15, 0.0  ;;  %v471_v26 = vmul.f32 0.2, %v373_v15  ;;  %vm456_vm8 = vcmp.gt.f32.partialorder %v387_v22, 0.0  ;;  %v472_v29 = vmul.f32 0.2, %v387_v22 }
  0xbf   :  { %v465_v53 = vmul.f32 0.2, %v399_v30  ;;  %vm449_vm9 = vcmp.gt.f32.partialorder %v399_v30, 0.0  ;;  %v466_v57 = vmul.f32 0.2, %v413_v36  ;;  %vm450_vm10 = vcmp.gt.f32.partialorder %v413_v36, 0.0 }
  0xc0   :  { %v487_v35 = vsel %vm455_vm7, %v373_v15, %v471_v26  ;;  %v488_v43 = vsel %vm456_vm8, %v387_v22, %v472_v29  ;;  %v3291_v22 = vor.u32 %v4561_v3, %v3288_v9  ;;  %v3688_v23 = vld [vmem:[#allocation9 + $0x390] sm:$0xf0]  ;;  %v3563_v40 = vor.u32 %v4629_v51, %v3560_v16  ;;  %v4581_v9 = vld [vmem:[#allocation9 + $0x104] sm:$0xf] }
  0xc1   :  { %v5167_v42 = vpack.c.bf16 %v487_v35, %v479_v33  ;;  %2160 = vmatpush.bf16.msra.mxu0 %v3339_v17  ;;  %v5170_v47 = vpack.c.bf16 %v488_v43, %v480_v41  ;;  %2174 = vmatpush.bf16.msra.mxu1 %v3467_v18  ;;  %v481_v14 = vsel %vm449_vm9, %v399_v30, %v465_v53  ;;  %v3272_v26 = vld [vmem:[#allocation9 + $0x50] sm:$0xf0]  ;;  %v4657_v43 = vld [vmem:[#allocation9 + $0x364] sm:$0xf] }
  0xc2   :  { %v482_v17 = vsel %vm450_vm10, %v413_v36, %v466_v57  ;;  %v3419_v30 = vor.u32 %v4593_v12, %v3416_v13  ;;  %v3544_v41 = vld [vmem:[#allocation9 + $0x270] sm:$0xf0]  ;;  %v3691_v46 = vor.u32 %v4661_v19, %v3688_v23  ;;  %v3675_v61 = vor.u32 %v4657_v43, %v3672_v49  ;;  %v4705_v13 = vld [vmem:[#allocation9 + $0x4e4] sm:$0xf] }
  0xc3   :  { %v426_v54 = vpop.f32.mrf.mxu2  ;;  %2083 = vmatmul.bf16.vlgmr.msra.gmra.mxu2 %v5167_v42  ;;  %v440_v58 = vpop.f32.mrf.mxu3  ;;  %2097 = vmatmul.bf16.vlgmr.msra.gmra.mxu3 %v5170_v47  ;;  %v3256_v52 = vld [vmem:[#allocation9 + $0x30] sm:$0xf0]  ;;  %v4801_v43 = vld [vmem:[#allocation9 + $0x7e4] sm:$0xf] }
  0xc4   :  { %2187 = vmatpush.bf16.msra.mxu2 %v3611_v27  ;;  %v400_v59 = vpop.f32.mrf.mxu0  ;;  %2201 = vmatpush.bf16.msra.mxu3 %v3739_v31  ;;  %v414_v63 = vpop.f32.mrf.mxu1  ;;  %v427_v5 = vadd.f32 %v426_v54, %v154_v24  ;;  %v4589_v31 = vld [vmem:[#allocation9 + $0x144] sm:$0xf]  ;;  %v3259_v2 = vor.u32 %v4553_v50, %v3256_v52  ;;  %v3368_v12 = vld [vmem:[#allocation9 + $0x110] sm:$0xf0] }
  0xc5   :  { %v401_v62 = vadd.f32 %v400_v59, %v152_v10  ;;  %2161 = vmatpush.bf16.msra.mxu0 %v3323_v37  ;;  %v415_v6 = vadd.f32 %v414_v63, %v153_v11  ;;  %2175 = vmatpush.bf16.msra.mxu1 %v3451_v48  ;;  %v441_v10 = vadd.f32 %v440_v58, %v155_v44  ;;  %v4625_v37 = vld [vmem:[#allocation9 + $0x264] sm:$0xf]  ;;  %v3528_v63 = vld [vmem:[#allocation9 + $0x250] sm:$0xf0] }
  0xc6   :  { %v3579_v11 = vor.u32 %v4633_v55, %v3576_v56  ;;  %v467_v27 = vmul.f32 0.2, %v427_v5  ;;  %vm451_vm13 = vcmp.gt.f32.partialorder %v427_v5, 0.0  ;;  %v3275_v48 = vor.u32 %v4557_v25, %v3272_v26  ;;  %v4585_v55 = vld [vmem:[#allocation9 + $0x124] sm:$0xf] }
  0xc7   :  { %vm457_vm11 = vcmp.gt.f32.partialorder %v401_v62, 0.0  ;;  %v473_v15 = vmul.f32 0.2, %v401_v62  ;;  %vm458_vm12 = vcmp.gt.f32.partialorder %v415_v6, 0.0  ;;  %v474_v18 = vmul.f32 0.2, %v415_v6 }
  0xc8   :  { %2188 = vmatpush.bf16.msra.mxu2 %v3595_v60  ;;  %2202 = vmatpush.bf16.msra.mxu3 %v3723_v0  ;;  %v468_v33 = vmul.f32 0.2, %v441_v10  ;;  %vm452_vm14 = vcmp.gt.f32.partialorder %v441_v10, 0.0  ;;  %v3403_v54 = vor.u32 %v4589_v31, %v3400_v32  ;;  %v3547_v58 = vor.u32 %v4625_v37, %v3544_v41  ;;  %v4653_v0 = vld [vmem:[#allocation9 + $0x344] sm:$0xf] }
  0xc9   :  { %v489_v20 = vsel %vm457_vm11, %v401_v62, %v473_v15  ;;  %2162 = vmatpush.bf16.msra.mxu0 %v3307_v1  ;;  %v490_v29 = vsel %vm458_vm12, %v415_v6, %v474_v18  ;;  %2176 = vmatpush.bf16.msra.mxu1 %v3435_v7  ;;  %v4621_v62 = vld [vmem:[#allocation9 + $0x244] sm:$0xf]  ;;  %v3240_v7 = vld [vmem:[#allocation9 + $0x10] sm:$0xf0]  ;;  %v3371_v19 = vor.u32 %v4581_v9, %v3368_v12 }
  0xca   :  { %v5184_v28 = vpack.c.bf16 %v489_v20, %v481_v14  ;;  %v5186_v35 = vpack.c.bf16 %v490_v29, %v482_v17  ;;  %v484_v56 = vsel %vm452_vm14, %v441_v10, %v468_v33  ;;  %v4549_v6 = vld [vmem:[#allocation9 + $0x4] sm:$0xf]  ;;  %v3531_v14 = vor.u32 %v4621_v62, %v3528_v63  ;;  %v3864_v10 = vld [vmem:[#allocation9 + $0x4f0] sm:$0xf0] }
  0xcb   :  { %v428_v36 = vpop.f32.mrf.mxu2  ;;  %v442_v39 = vpop.f32.mrf.mxu3  ;;  %v4737_v15 = vld [vmem:[#allocation9 + $0x5e4] sm:$0xf]  ;;  %v3992_v51 = vld [vmem:[#allocation9 + $0x5f0] sm:$0xf0]  ;;  %vm3075_vm14 = vcmask 122880  }
  0xcc   :  { %v429_v38 = vadd.f32 %v428_v36, %v154_v24  ;;  %2189 = vmatpush.bf16.msra.mxu2 %v3579_v11  ;;  %2111 = vmatmul.bf16.vlgmr.msrb.gmra.mxu0 %v5184_v28  ;;  %v443_v45 = vadd.f32 %v442_v39, %v155_v44  ;;  %v483_v24 = vsel %vm451_vm13, %v427_v5, %v467_v27  ;;  %v3384_v44 = vld [vmem:[#allocation9 + $0x130] sm:$0xf0]  ;;  %v4617_v17 = vld [vmem:[#allocation9 + $0x224] sm:$0xf]  ;;  %vm3072_vm13 = vcmask 130112  }
  0xcd   :  { %2203 = vmatpush.bf16.msra.mxu3 %v3707_v21  ;;  %2125 = vmatmul.bf16.vlgmr.msrb.gmra.mxu1 %v5186_v35  ;;  %v3387_v3 = vor.u32 %v4585_v55, %v3384_v44  ;;  %v3656_v5 = vld [vmem:[#allocation9 + $0x350] sm:$0xf0]  ;;  %v3243_v11 = vor.u32 %v4549_v6, %v3240_v7  ;;  %v4649_v20 = vld [vmem:[#allocation9 + $0x324] sm:$0xf]  ;;  %v3995_v23 = vor.u32 %v4737_v15, %v3992_v51 }
  0xce   :  { %vm459_vm15 = vcmp.gt.f32.partialorder %v429_v38, 0.0  ;;  %v475_v53 = vmul.f32 0.2, %v429_v38  ;;  %2163 = vmatpush.bf16.msra.mxu0 %v3291_v22  ;;  %2177 = vmatpush.bf16.msra.mxu1 %v3419_v30  ;;  %vm460_vm0 = vcmp.gt.f32.partialorder %v443_v45, 0.0  ;;  %v476_v34 = vmul.f32 0.2, %v443_v45 }
  0xcf   :  { %v3659_v16 = vor.u32 %v4653_v0, %v3656_v5  ;;  %v3512_v18 = vld [vmem:[#allocation9 + $0x230] sm:$0xf0]  ;;  %v3867_v22 = vor.u32 %v4705_v13, %v3864_v10  ;;  %v4701_v25 = vld [vmem:[#allocation9 + $0x4c4] sm:$0xf] }
  0xd0   :  { %v491_v57 = vsel %vm459_vm15, %v429_v38, %v475_v53  ;;  %2190 = vmatpush.bf16.msra.mxu2 %v3563_v40  ;;  %v492_v60 = vsel %vm460_vm0, %v443_v45, %v476_v34  ;;  %v3640_v21 = vld [vmem:[#allocation9 + $0x330] sm:$0xf0]  ;;  %v3515_v26 = vor.u32 %v4617_v17, %v3512_v18  ;;  %v4733_v29 = vld [vmem:[#allocation9 + $0x5c4] sm:$0xf] }
  0xd1   :  { %v5196_v59 = vpack.c.bf16 %v491_v57, %v483_v24  ;;  %2204 = vmatpush.bf16.msra.mxu3 %v3691_v46  ;;  %v5198_v1 = vpack.c.bf16 %v492_v60, %v484_v56  ;;  %v3848_v27 = vld [vmem:[#allocation9 + $0x4d0] sm:$0xf0]  ;;  %v3643_v31 = vor.u32 %v4649_v20, %v3640_v21  ;;  %v4613_v32 = vld [vmem:[#allocation9 + $0x204] sm:$0xf] }
  0xd2   :  { %2164 = vmatpush.bf16.msra.mxu0 %v3275_v48  ;;  %2178 = vmatpush.bf16.msra.mxu1 %v3403_v54  ;;  %v3976_v30 = vld [vmem:[#allocation9 + $0x5d0] sm:$0xf0]  ;;  %v4645_v36 = vld [vmem:[#allocation9 + $0x304] sm:$0xf]  ;;  %v3851_v40 = vor.u32 %v4701_v25, %v3848_v27 }
  0xd3   :  { %2139 = vmatmul.bf16.vlgmr.msrb.gmra.mxu2 %v5196_v59  ;;  %2153 = vmatmul.bf16.vlgmr.msrb.gmra.mxu3 %v5198_v1  ;;  %v3496_v33 = vld [vmem:[#allocation9 + $0x210] sm:$0xf0]  ;;  %v4769_v38 = vld [vmem:[#allocation9 + $0x6e4] sm:$0xf]  ;;  %v3979_v41 = vor.u32 %v4733_v29, %v3976_v30 }
  0xd4   :  { %2191 = vmatpush.bf16.msra.mxu2 %v3547_v58  ;;  %v3624_v37 = vld [vmem:[#allocation9 + $0x310] sm:$0xf0]  ;;  %v4697_v46 = vld [vmem:[#allocation9 + $0x4a4] sm:$0xf]  ;;  %v3499_v48 = vor.u32 %v4613_v32, %v3496_v33 }
  0xd5   :  { %2205 = vmatpush.bf16.msra.mxu3 %v3675_v61  ;;  %v4120_v39 = vld [vmem:[#allocation9 + $0x6f0] sm:$0xf0]  ;;  %v4729_v50 = vld [vmem:[#allocation9 + $0x5a4] sm:$0xf]  ;;  %v3627_v24 = vor.u32 %v4645_v36, %v3624_v37 }
  0xd6   :  { %2165 = vmatpush.bf16.msra.mxu0 %v3259_v2  ;;  %2179 = vmatpush.bf16.msra.mxu1 %v3387_v3  ;;  %v4248_v45 = vld [vmem:[#allocation9 + $0x7f0] sm:$0xf0]  ;;  %v4123_v53 = vor.u32 %v4769_v38, %v4120_v39  ;;  %v4765_v55 = vld [vmem:[#allocation9 + $0x6c4] sm:$0xf] }
  0xd7   :  { %v3832_v49 = vld [vmem:[#allocation9 + $0x4b0] sm:$0xf0]  ;;  %v4251_v54 = vor.u32 %v4801_v43, %v4248_v45  ;;  %v4797_v57 = vld [vmem:[#allocation9 + $0x7c4] sm:$0xf] }
  0xd8   :  { %2192 = vmatpush.bf16.msra.mxu2 %v3531_v14  ;;  %v3960_v52 = vld [vmem:[#allocation9 + $0x5b0] sm:$0xf0]  ;;  %v3835_v34 = vor.u32 %v4697_v46, %v3832_v49  ;;  %v4693_v60 = vld [vmem:[#allocation9 + $0x484] sm:$0xf] }
  0xd9   :  { %2206 = vmatpush.bf16.msra.mxu3 %v3659_v16  ;;  %v4104_v56 = vld [vmem:[#allocation9 + $0x6d0] sm:$0xf0]  ;;  %v3963_v44 = vor.u32 %v4729_v50, %v3960_v52  ;;  %v4725_v62 = vld [vmem:[#allocation9 + $0x584] sm:$0xf] }
  0xda   :  { %2166 = vmatpush.bf16.msra.mxu0 %v3243_v11  ;;  %2180 = vmatpush.bf16.msra.mxu1 %v3371_v19  ;;  %v4232_v58 = vld [vmem:[#allocation9 + $0x7d0] sm:$0xf0]  ;;  %v4107_v0 = vor.u32 %v4765_v55, %v4104_v56  ;;  %v4761_v3 = vld [vmem:[#allocation9 + $0x6a4] sm:$0xf] }
  0xdb   :  { %v3816_v61 = vld [vmem:[#allocation9 + $0x490] sm:$0xf0]  ;;  %v4235_v2 = vor.u32 %v4797_v57, %v4232_v58  ;;  %v4793_v9 = vld [vmem:[#allocation9 + $0x7a4] sm:$0xf]  ;;  %v4580_v57 = vld [vmem:[#allocation9 + $0xf4] sm:$0xf0] }
  0xdc   :  { %2193 = vmatpush.bf16.msra.mxu2 %v3515_v26  ;;  %v3944_v63 = vld [vmem:[#allocation9 + $0x590] sm:$0xf0]  ;;  %v3819_v6 = vor.u32 %v4693_v60, %v3816_v61  ;;  %v4689_v13 = vld [vmem:[#allocation9 + $0x464] sm:$0xf]  ;;  %v3486_v58 = vld [vmem:[#allocation9 + $0x1e8] sm:$0xf] }
  0xdd   :  { %2207 = vmatpush.bf16.msra.mxu3 %v3643_v31  ;;  %2167 = vmatmul.bf16.vlgmr.msra.gmra.mxu0 %v5146_v4  ;;  %v4088_v5 = vld [vmem:[#allocation9 + $0x6b0] sm:$0xf0]  ;;  %v3947_v7 = vor.u32 %v4725_v62, %v3944_v63  ;;  %v4721_v10 = vld [vmem:[#allocation9 + $0x564] sm:$0xf]  ;;  %v4612_v60 = vld [vmem:[#allocation9 + $0x1f4] sm:$0xf0] }
  0xde   :  { %2215 = vmatpush.bf16.msrb.mxu0 %v3867_v22  ;;  %2229 = vmatpush.bf16.msrb.mxu1 %v3995_v23  ;;  %v4216_v12 = vld [vmem:[#allocation9 + $0x7b0] sm:$0xf0]  ;;  %v4091_v51 = vor.u32 %v4761_v3, %v4088_v5  ;;  %v4757_v17 = vld [vmem:[#allocation9 + $0x684] sm:$0xf] }
  0xdf   :  { %2181 = vmatmul.bf16.vlgmr.msra.gmra.mxu1 %v5150_v8  ;;  %v3800_v14 = vld [vmem:[#allocation9 + $0x470] sm:$0xf0]  ;;  %v4219_v16 = vor.u32 %v4793_v9, %v4216_v12  ;;  %v4789_v20 = vld [vmem:[#allocation9 + $0x784] sm:$0xf]  ;;  %v3342_v9 = vld [vmem:[#allocation9 + $0xc8] sm:$0xf] }
  0xe0   :  { %2194 = vmatpush.bf16.msra.mxu2 %v3499_v48  ;;  %v3928_v15 = vld [vmem:[#allocation9 + $0x570] sm:$0xf0]  ;;  %v3803_v11 = vor.u32 %v4689_v13, %v3800_v14  ;;  %v4685_v22 = vld [vmem:[#allocation9 + $0x444] sm:$0xf]  ;;  %v4576_v13 = vld [vmem:[#allocation9 + $0xd4] sm:$0xf0] }
  0xe1   :  { %2208 = vmatpush.bf16.msra.mxu3 %v3627_v24  ;;  %v4072_v18 = vld [vmem:[#allocation9 + $0x690] sm:$0xf0]  ;;  %v3931_v19 = vor.u32 %v4721_v10, %v3928_v15  ;;  %v4717_v25 = vld [vmem:[#allocation9 + $0x544] sm:$0xf]  ;;  %v3470_v14 = vld [vmem:[#allocation9 + $0x1c8] sm:$0xf] }
  0xe2   :  { %2216 = vmatpush.bf16.msrb.mxu0 %v3851_v40  ;;  %2230 = vmatpush.bf16.msrb.mxu1 %v3979_v41  ;;  %v4200_v21 = vld [vmem:[#allocation9 + $0x790] sm:$0xf0]  ;;  %v4075_v27 = vor.u32 %v4757_v17, %v4072_v18  ;;  %v4753_v30 = vld [vmem:[#allocation9 + $0x664] sm:$0xf]  ;;  %v4608_v10 = vld [vmem:[#allocation9 + $0x1d4] sm:$0xf0] }
  0xe3   :  { %2195 = vmatmul.bf16.vlgmr.msra.gmra.mxu2 %v5167_v42  ;;  %v3784_v23 = vld [vmem:[#allocation9 + $0x450] sm:$0xf0]  ;;  %v4203_v29 = vor.u32 %v4789_v20, %v4200_v21  ;;  %v4785_v36 = vld [vmem:[#allocation9 + $0x764] sm:$0xf]  ;;  %v3343_v20 = vor.u32 %v4576_v13, %v3342_v9  ;;  %v3471_v21 = vor.u32 %v4608_v10, %v3470_v14  ;;  %v4592_v13 = vld [vmem:[#allocation9 + $0x154] sm:$0xf0] }
  0xe4   :  { %2243 = vmatpush.bf16.msrb.mxu2 %v4123_v53  ;;  %2209 = vmatmul.bf16.vlgmr.msra.gmra.mxu3 %v5170_v47  ;;  %v3912_v26 = vld [vmem:[#allocation9 + $0x550] sm:$0xf0]  ;;  %v3787_v32 = vor.u32 %v4685_v22, %v3784_v23  ;;  %v4681_v38 = vld [vmem:[#allocation9 + $0x424] sm:$0xf]  ;;  %v3742_v22 = vld [vmem:[#allocation9 + $0x3e8] sm:$0xf] }
  0xe5   :  { %2257 = vmatpush.bf16.msrb.mxu3 %v4251_v54  ;;  %v4056_v31 = vld [vmem:[#allocation9 + $0x670] sm:$0xf0]  ;;  %v3915_v33 = vor.u32 %v4717_v25, %v3912_v26  ;;  %v4713_v40 = vld [vmem:[#allocation9 + $0x524] sm:$0xf]  ;;  %v4676_v23 = vld [vmem:[#allocation9 + $0x3f4] sm:$0xf0] }
  0xe6   :  { %2217 = vmatpush.bf16.msrb.mxu0 %v3835_v34  ;;  %2231 = vmatpush.bf16.msrb.mxu1 %v3963_v44  ;;  %v4184_v37 = vld [vmem:[#allocation9 + $0x770] sm:$0xf0]  ;;  %v4059_v43 = vor.u32 %v4753_v30, %v4056_v31  ;;  %v4749_v46 = vld [vmem:[#allocation9 + $0x644] sm:$0xf]  ;;  %v3358_v34 = vld [vmem:[#allocation9 + $0xe8] sm:$0xf] }
  0xe7   :  { %v3768_v39 = vld [vmem:[#allocation9 + $0x430] sm:$0xf0]  ;;  %v4187_v45 = vor.u32 %v4785_v36, %v4184_v37  ;;  %v4781_v49 = vld [vmem:[#allocation9 + $0x744] sm:$0xf]  ;;  %v3326_v26 = vld [vmem:[#allocation9 + $0xa8] sm:$0xf] }
  0xe8   :  { %2244 = vmatpush.bf16.msrb.mxu2 %v4107_v0  ;;  %v3896_v41 = vld [vmem:[#allocation9 + $0x530] sm:$0xf0]  ;;  %v3771_v50 = vor.u32 %v4681_v38, %v3768_v39  ;;  %v4677_v53 = vld [vmem:[#allocation9 + $0x404] sm:$0xf]  ;;  %v3454_v31 = vld [vmem:[#allocation9 + $0x1a8] sm:$0xf] }
  0xe9   :  { %2258 = vmatpush.bf16.msrb.mxu3 %v4235_v2  ;;  %v4040_v48 = vld [vmem:[#allocation9 + $0x650] sm:$0xf0]  ;;  %v3899_v52 = vor.u32 %v4713_v40, %v3896_v41  ;;  %v4709_v55 = vld [vmem:[#allocation9 + $0x504] sm:$0xf]  ;;  %v3598_v36 = vld [vmem:[#allocation9 + $0x2c8] sm:$0xf] }
  0xea   :  { %2218 = vmatpush.bf16.msrb.mxu0 %v3819_v6  ;;  %2232 = vmatpush.bf16.msrb.mxu1 %v3947_v7  ;;  %v4168_v24 = vld [vmem:[#allocation9 + $0x750] sm:$0xf0]  ;;  %v4043_v44 = vor.u32 %v4749_v46, %v4040_v48  ;;  %v4745_v62 = vld [vmem:[#allocation9 + $0x624] sm:$0xf]  ;;  %v3359_v6 = vor.u32 %v4580_v57, %v3358_v34  ;;  %v3487_v7 = vor.u32 %v4612_v60, %v3486_v58  ;;  %v4640_v37 = vld [vmem:[#allocation9 + $0x2d4] sm:$0xf0] }
  0xeb   :  { %v3752_v54 = vld [vmem:[#allocation9 + $0x410] sm:$0xf0]  ;;  %v4171_v61 = vor.u32 %v4781_v49, %v4168_v24  ;;  %v4777_v3 = vld [vmem:[#allocation9 + $0x724] sm:$0xf]  ;;  %v3726_v39 = vld [vmem:[#allocation9 + $0x3c8] sm:$0xf]  ;;  %v3599_v46 = vor.u32 %v4640_v37, %v3598_v36 }
  0xec   :  { %2245 = vmatpush.bf16.msrb.mxu2 %v4091_v51  ;;  %v3880_v56 = vld [vmem:[#allocation9 + $0x510] sm:$0xf0]  ;;  %v3755_v0 = vor.u32 %v4677_v53, %v3752_v54  ;;  %v4741_v51 = vld [vmem:[#allocation9 + $0x604] sm:$0xf]  ;;  %v4672_v40 = vld [vmem:[#allocation9 + $0x3d4] sm:$0xf0] }
  0xed   :  { %2259 = vmatpush.bf16.msrb.mxu3 %v4219_v16  ;;  %v4024_v63 = vld [vmem:[#allocation9 + $0x630] sm:$0xf0]  ;;  %v3883_v2 = vor.u32 %v4709_v55, %v3880_v56  ;;  %v4773_v17 = vld [vmem:[#allocation9 + $0x704] sm:$0xf]  ;;  %v3438_v48 = vld [vmem:[#allocation9 + $0x188] sm:$0xf] }
  0xee   :  { %2219 = vmatpush.bf16.msrb.mxu0 %v3803_v11  ;;  %2233 = vmatpush.bf16.msrb.mxu1 %v3931_v19  ;;  %v4152_v5 = vld [vmem:[#allocation9 + $0x730] sm:$0xf0]  ;;  %v4027_v12 = vor.u32 %v4745_v62, %v4024_v63  ;;  %v3614_v11 = vld [vmem:[#allocation9 + $0x2e8] sm:$0xf]  ;;  %v4644_v19 = vld [vmem:[#allocation9 + $0x2f4] sm:$0xf0] }
  0xef   :  { %v4155_v15 = vor.u32 %v4777_v3, %v4152_v5  ;;  %v4008_v16 = vld [vmem:[#allocation9 + $0x610] sm:$0xf0]  ;;  %v3615_v30 = vor.u32 %v4644_v19, %v3614_v11  ;;  %v4600_v49 = vld [vmem:[#allocation9 + $0x194] sm:$0xf0]  ;;  %v3710_v54 = vld [vmem:[#allocation9 + $0x3a8] sm:$0xf] }
  0xf0   :  { %2246 = vmatpush.bf16.msrb.mxu2 %v4075_v27  ;;  %v4136_v18 = vld [vmem:[#allocation9 + $0x710] sm:$0xf0]  ;;  %v4011_v25 = vor.u32 %v4741_v51, %v4008_v16  ;;  %v4572_v27 = vld [vmem:[#allocation9 + $0xb4] sm:$0xf0]  ;;  %v3439_v56 = vor.u32 %v4600_v49, %v3438_v48  ;;  %v3294_v34 = vld [vmem:[#allocation9 + $0x68] sm:$0xf] }
  0xf1   :  { %2260 = vmatpush.bf16.msrb.mxu3 %v4203_v29  ;;  %v4139_v29 = vor.u32 %v4773_v17, %v4136_v18  ;;  %v3327_v38 = vor.u32 %v4572_v27, %v3326_v26  ;;  %v4636_v24 = vld [vmem:[#allocation9 + $0x2b4] sm:$0xf0]  ;;  %v3422_v58 = vld [vmem:[#allocation9 + $0x168] sm:$0xf] }
  0xf2   :  { %2220 = vmatpush.bf16.msrb.mxu0 %v3787_v32  ;;  %2234 = vmatpush.bf16.msrb.mxu1 %v3915_v33  ;;  %v4604_v32 = vld [vmem:[#allocation9 + $0x1b4] sm:$0xf0]  ;;  %v3743_v33 = vor.u32 %v4676_v23, %v3742_v22  ;;  %v3566_v62 = vld [vmem:[#allocation9 + $0x288] sm:$0xf] }
  0xf3   :  { %v3455_v41 = vor.u32 %v4604_v32, %v3454_v31  ;;  %v4668_v55 = vld [vmem:[#allocation9 + $0x3b4] sm:$0xf0]  ;;  %v3550_v10 = vld [vmem:[#allocation9 + $0x268] sm:$0xf] }
  0xf4   :  { %2247 = vmatpush.bf16.msrb.mxu2 %v4059_v43  ;;  %v3310_v43 = vld [vmem:[#allocation9 + $0x88] sm:$0xf]  ;;  %v4596_v60 = vld [vmem:[#allocation9 + $0x174] sm:$0xf0] }
  0xf5   :  { %2261 = vmatpush.bf16.msrb.mxu3 %v4187_v45  ;;  %v4568_v45 = vld [vmem:[#allocation9 + $0x94] sm:$0xf0]  ;;  %v3423_v5 = vor.u32 %v4596_v60, %v3422_v58  ;;  %v3678_v16 = vld [vmem:[#allocation9 + $0x368] sm:$0xf] }
  0xf6   :  { %2221 = vmatpush.bf16.msrb.mxu0 %v3771_v50  ;;  %2235 = vmatpush.bf16.msrb.mxu1 %v3899_v52  ;;  %v3727_v50 = vor.u32 %v4672_v40, %v3726_v39  ;;  %v3582_v52 = vld [vmem:[#allocation9 + $0x2a8] sm:$0xf]  ;;  %v3311_v53 = vor.u32 %v4568_v45, %v3310_v43  ;;  %v4632_v63 = vld [vmem:[#allocation9 + $0x294] sm:$0xf0] }
  0xf7   :  { %v3583_v57 = vor.u32 %v4636_v24, %v3582_v52  ;;  %v4664_v3 = vld [vmem:[#allocation9 + $0x394] sm:$0xf0]  ;;  %v3567_v9 = vor.u32 %v4632_v63, %v3566_v62  ;;  %v3262_v11 = vld [vmem:[#allocation9 + $0x28] sm:$0xf] }
  0xf8   :  { %2248 = vmatpush.bf16.msrb.mxu2 %v4043_v44  ;;  %v4564_v44 = vld [vmem:[#allocation9 + $0x74] sm:$0xf0]  ;;  %v3246_v31 = vld [vmem:[#allocation9 + $0x8] sm:$0xf] }
  0xf9   :  { %2262 = vmatpush.bf16.msrb.mxu3 %v4171_v61  ;;  %v3711_v61 = vor.u32 %v4668_v55, %v3710_v54  ;;  %v4660_v17 = vld [vmem:[#allocation9 + $0x374] sm:$0xf0]  ;;  %v3374_v36 = vld [vmem:[#allocation9 + $0x108] sm:$0xf] }
  0xfa   :  { %2222 = vmatpush.bf16.msrb.mxu0 %v3755_v0  ;;  %2236 = vmatpush.bf16.msrb.mxu1 %v3883_v2  ;;  %v3295_v0 = vor.u32 %v4564_v44, %v3294_v34  ;;  %v3694_v2 = vld [vmem:[#allocation9 + $0x388] sm:$0xf]  ;;  %v4556_v19 = vld [vmem:[#allocation9 + $0x34] sm:$0xf0]  ;;  %v3679_v23 = vor.u32 %v4660_v17, %v3678_v16 }
  0xfb   :  { %v3695_v14 = vor.u32 %v4664_v3, %v3694_v2  ;;  %v4588_v22 = vld [vmem:[#allocation9 + $0x134] sm:$0xf0]  ;;  %v3263_v27 = vor.u32 %v4556_v19, %v3262_v11  ;;  %v3870_v39 = vld [vmem:[#allocation9 + $0x4e8] sm:$0xf] }
  0xfc   :  { %2249 = vmatpush.bf16.msrb.mxu2 %v4027_v12  ;;  %v3406_v12 = vld [vmem:[#allocation9 + $0x148] sm:$0xf]  ;;  %v4624_v26 = vld [vmem:[#allocation9 + $0x254] sm:$0xf0] }
  0xfd   :  { %2263 = vmatpush.bf16.msrb.mxu3 %v4155_v15  ;;  %2223 = vmatmul.bf16.vlgmr.msrb.gmra.mxu0 %v5184_v28  ;;  %v4628_v15 = vld [vmem:[#allocation9 + $0x274] sm:$0xf0]  ;;  %v3407_v18 = vor.u32 %v4592_v13, %v3406_v12  ;;  %v3854_v54 = vld [vmem:[#allocation9 + $0x4c8] sm:$0xf] }
  0xfe   :  { %2271 = vmatpush.bf16.msra.mxu0 %v3359_v6  ;;  %2285 = vmatpush.bf16.msra.mxu1 %v3487_v7  ;;  %v3278_v6 = vld [vmem:[#allocation9 + $0x48] sm:$0xf]  ;;  %v4560_v7 = vld [vmem:[#allocation9 + $0x54] sm:$0xf0] }
  0xff   :  { %2237 = vmatmul.bf16.vlgmr.msrb.gmra.mxu1 %v5186_v35  ;;  %v3279_v51 = vor.u32 %v4560_v7, %v3278_v6  ;;  %v4584_v37 = vld [vmem:[#allocation9 + $0x114] sm:$0xf0]  ;;  %v3982_v44 = vld [vmem:[#allocation9 + $0x5c8] sm:$0xf] }
 0x100   :  { %2250 = vmatpush.bf16.msrb.mxu2 %v4011_v25  ;;  %v3534_v25 = vld [vmem:[#allocation9 + $0x248] sm:$0xf]  ;;  %v4708_v40 = vld [vmem:[#allocation9 + $0x4f4] sm:$0xf0]  ;;  %v3375_v24 = vor.u32 %v4584_v37, %v3374_v36 }
 0x101   :  { %2264 = vmatpush.bf16.msrb.mxu3 %v4139_v29  ;;  %v3662_v29 = vld [vmem:[#allocation9 + $0x348] sm:$0xf]  ;;  %v4740_v45 = vld [vmem:[#allocation9 + $0x5f4] sm:$0xf0] }
 0x102   :  { %2272 = vmatpush.bf16.msra.mxu0 %v3343_v20  ;;  %2286 = vmatpush.bf16.msra.mxu1 %v3471_v21  ;;  %v3551_v20 = vor.u32 %v4628_v15, %v3550_v10  ;;  %v3390_v21 = vld [vmem:[#allocation9 + $0x128] sm:$0xf]  ;;  %v4620_v48 = vld [vmem:[#allocation9 + $0x234] sm:$0xf0] }
 0x103   :  { %2251 = vmatmul.bf16.vlgmr.msrb.gmra.mxu2 %v5196_v59  ;;  %v3391_v32 = vor.u32 %v4588_v22, %v3390_v21  ;;  %v4652_v52 = vld [vmem:[#allocation9 + $0x334] sm:$0xf0]  ;;  %v3502_v60 = vld [vmem:[#allocation9 + $0x208] sm:$0xf] }
 0x104   :  { %2299 = vmatpush.bf16.msra.mxu2 %v3615_v30  ;;  %2265 = vmatmul.bf16.vlgmr.msrb.gmra.mxu3 %v5198_v1  ;;  %v4656_v30 = vld [vmem:[#allocation9 + $0x354] sm:$0xf0]  ;;  %v3630_v62 = vld [vmem:[#allocation9 + $0x308] sm:$0xf] }
 0x105   :  { %2313 = vmatpush.bf16.msra.mxu3 %v3743_v33  ;;  %v4552_v33 = vld [vmem:[#allocation9 + $0x14] sm:$0xf0]  ;;  %v3663_v43 = vor.u32 %v4656_v30, %v3662_v29  ;;  %v3838_v12 = vld [vmem:[#allocation9 + $0x4a8] sm:$0xf] }
 0x106   :  { %2273 = vmatpush.bf16.msra.mxu0 %v3327_v38  ;;  %2287 = vmatpush.bf16.msra.mxu1 %v3455_v41  ;;  %v3535_v38 = vor.u32 %v4624_v26, %v3534_v25  ;;  %v3998_v41 = vld [vmem:[#allocation9 + $0x5e8] sm:$0xf]  ;;  %v3247_v49 = vor.u32 %v4552_v33, %v3246_v31  ;;  %v4704_v34 = vld [vmem:[#allocation9 + $0x4d4] sm:$0xf0] }
 0x107   :  { %v3999_v55 = vor.u32 %v4740_v45, %v3998_v41  ;;  %v4648_v63 = vld [vmem:[#allocation9 + $0x314] sm:$0xf0]  ;;  %v3855_v3 = vor.u32 %v4704_v34, %v3854_v54  ;;  %v3966_v15 = vld [vmem:[#allocation9 + $0x5a8] sm:$0xf] }
 0x108   :  { %2300 = vmatpush.bf16.msra.mxu2 %v3599_v46  ;;  %v3518_v46 = vld [vmem:[#allocation9 + $0x228] sm:$0xf]  ;;  %v4772_v2 = vld [vmem:[#allocation9 + $0x6f4] sm:$0xf0] }
 0x109   :  { %2314 = vmatpush.bf16.msra.mxu3 %v3727_v50  ;;  %v3646_v50 = vld [vmem:[#allocation9 + $0x328] sm:$0xf]  ;;  %v4804_v6 = vld [vmem:[#allocation9 + $0x7f4] sm:$0xf0] }
 0x10a   :  { %2274 = vmatpush.bf16.msra.mxu0 %v3311_v53  ;;  %2288 = vmatpush.bf16.msra.mxu1 %v3439_v56  ;;  %v3871_v53 = vor.u32 %v4708_v40, %v3870_v39  ;;  %v3519_v56 = vor.u32 %v4620_v48, %v3518_v46  ;;  %v3647_v58 = vor.u32 %v4652_v52, %v3646_v50  ;;  %v4700_v13 = vld [vmem:[#allocation9 + $0x4b4] sm:$0xf0]  ;;  %v4110_v17 = vld [vmem:[#allocation9 + $0x6c8] sm:$0xf] }
 0x10b   :  { %v3839_v11 = vor.u32 %v4700_v13, %v3838_v12  ;;  %v4238_v19 = vld [vmem:[#allocation9 + $0x7c8] sm:$0xf]  ;;  %v4764_v31 = vld [vmem:[#allocation9 + $0x6b4] sm:$0xf0] }
 0x10c   :  { %2301 = vmatpush.bf16.msra.mxu2 %v3583_v57  ;;  %v4736_v57 = vld [vmem:[#allocation9 + $0x5d4] sm:$0xf0]  ;;  %v3822_v22 = vld [vmem:[#allocation9 + $0x488] sm:$0xf] }
 0x10d   :  { %2315 = vmatpush.bf16.msra.mxu3 %v3711_v61  ;;  %v4616_v61 = vld [vmem:[#allocation9 + $0x214] sm:$0xf0]  ;;  %v3983_v7 = vor.u32 %v4736_v57, %v3982_v44  ;;  %v3950_v26 = vld [vmem:[#allocation9 + $0x588] sm:$0xf] }
 0x10e   :  { %2275 = vmatpush.bf16.msra.mxu0 %v3295_v0  ;;  %2289 = vmatpush.bf16.msra.mxu1 %v3423_v5  ;;  %v4126_v0 = vld [vmem:[#allocation9 + $0x6e8] sm:$0xf]  ;;  %v4796_v36 = vld [vmem:[#allocation9 + $0x7b4] sm:$0xf0] }
 0x10f   :  { %v4254_v5 = vld [vmem:[#allocation9 + $0x7e8] sm:$0xf]  ;;  %v4127_v10 = vor.u32 %v4772_v2, %v4126_v0  ;;  %v4692_v39 = vld [vmem:[#allocation9 + $0x474] sm:$0xf0] }
 0x110   :  { %2302 = vmatpush.bf16.msra.mxu2 %v3567_v9  ;;  %v3503_v9 = vor.u32 %v4616_v61, %v3502_v60  ;;  %v4255_v16 = vor.u32 %v4804_v6, %v4254_v5  ;;  %v4094_v30 = vld [vmem:[#allocation9 + $0x6a8] sm:$0xf]  ;;  %v4760_v48 = vld [vmem:[#allocation9 + $0x694] sm:$0xf0] }
 0x111   :  { %2316 = vmatpush.bf16.msra.mxu3 %v3695_v14  ;;  %v3631_v14 = vor.u32 %v4648_v63, %v3630_v62  ;;  %v4222_v33 = vld [vmem:[#allocation9 + $0x7a8] sm:$0xf]  ;;  %v4095_v40 = vor.u32 %v4764_v31, %v4094_v30  ;;  %v4792_v52 = vld [vmem:[#allocation9 + $0x794] sm:$0xf0] }
 0x112   :  { %2276 = vmatpush.bf16.msra.mxu0 %v3279_v51  ;;  %2290 = vmatpush.bf16.msra.mxu1 %v3407_v18  ;;  %v4732_v51 = vld [vmem:[#allocation9 + $0x5b4] sm:$0xf0]  ;;  %v3934_v41 = vld [vmem:[#allocation9 + $0x568] sm:$0xf]  ;;  %v4223_v45 = vor.u32 %v4796_v36, %v4222_v33  ;;  %v4574_v33 = vld [vmem:[#allocation9 + $0xcc] sm:$0xf] }
 0x113   :  { %v4768_v18 = vld [vmem:[#allocation9 + $0x6d4] sm:$0xf0]  ;;  %v3967_v21 = vor.u32 %v4732_v51, %v3966_v15  ;;  %v4078_v46 = vld [vmem:[#allocation9 + $0x688] sm:$0xf] }
 0x114   :  { %2303 = vmatpush.bf16.msra.mxu2 %v3551_v20  ;;  %v4800_v20 = vld [vmem:[#allocation9 + $0x7d4] sm:$0xf0]  ;;  %v4111_v25 = vor.u32 %v4768_v18, %v4110_v17  ;;  %v4206_v50 = vld [vmem:[#allocation9 + $0x788] sm:$0xf] }
 0x115   :  { %2317 = vmatpush.bf16.msra.mxu3 %v3679_v23  ;;  %v4696_v23 = vld [vmem:[#allocation9 + $0x494] sm:$0xf0]  ;;  %v4239_v29 = vor.u32 %v4800_v20, %v4238_v19  ;;  %v4207_v44 = vor.u32 %v4792_v52, %v4206_v50  ;;  %v4062_v57 = vld [vmem:[#allocation9 + $0x668] sm:$0xf]  ;;  %v4578_v19 = vld [vmem:[#allocation9 + $0xec] sm:$0xf] }
 0x116   :  { %2277 = vmatpush.bf16.msra.mxu0 %v3263_v27  ;;  %2291 = vmatpush.bf16.msra.mxu1 %v3391_v32  ;;  %v4728_v27 = vld [vmem:[#allocation9 + $0x594] sm:$0xf0]  ;;  %v3823_v32 = vor.u32 %v4696_v23, %v3822_v22  ;;  %v4190_v61 = vld [vmem:[#allocation9 + $0x768] sm:$0xf]  ;;  %v3360_v20 = vld [vmem:[#allocation9 + $0xf8] sm:$0xf0] }
 0x117   :  { %v3951_v37 = vor.u32 %v4728_v27, %v3950_v26  ;;  %v4688_v54 = vld [vmem:[#allocation9 + $0x454] sm:$0xf0]  ;;  %v3774_v0 = vld [vmem:[#allocation9 + $0x428] sm:$0xf]  ;;  %v3488_v23 = vld [vmem:[#allocation9 + $0x1f8] sm:$0xf0] }
 0x118   :  { %2304 = vmatpush.bf16.msra.mxu2 %v3535_v38  ;;  %v3806_v38 = vld [vmem:[#allocation9 + $0x468] sm:$0xf]  ;;  %v4720_v34 = vld [vmem:[#allocation9 + $0x554] sm:$0xf0]  ;;  %v3616_v50 = vld [vmem:[#allocation9 + $0x2f8] sm:$0xf0] }
 0x119   :  { %2318 = vmatpush.bf16.msra.mxu3 %v3663_v43  ;;  %v4724_v43 = vld [vmem:[#allocation9 + $0x574] sm:$0xf0]  ;;  %v3902_v5 = vld [vmem:[#allocation9 + $0x528] sm:$0xf] }
 0x11a   :  { %2278 = vmatpush.bf16.msra.mxu0 %v3247_v49  ;;  %2292 = vmatpush.bf16.msra.mxu1 %v3375_v24  ;;  %v3807_v49 = vor.u32 %v4692_v39, %v3806_v38  ;;  %v3935_v24 = vor.u32 %v4724_v43, %v3934_v41  ;;  %v4788_v62 = vld [vmem:[#allocation9 + $0x774] sm:$0xf0]  ;;  %v3758_v15 = vld [vmem:[#allocation9 + $0x408] sm:$0xf]  ;;  %v3344_v38 = vld [vmem:[#allocation9 + $0xd8] sm:$0xf0] }
 0x11b   :  { %v4684_v2 = vld [vmem:[#allocation9 + $0x434] sm:$0xf0]  ;;  %v3886_v17 = vld [vmem:[#allocation9 + $0x508] sm:$0xf]  ;;  %v4606_v39 = vld [vmem:[#allocation9 + $0x1cc] sm:$0xf]  ;;  %v3347_v52 = vor.u32 %v4574_v33, %v3344_v38 }
 0x11c   :  { %2305 = vmatpush.bf16.msra.mxu2 %v3519_v56  ;;  %v3918_v56 = vld [vmem:[#allocation9 + $0x548] sm:$0xf]  ;;  %v4716_v6 = vld [vmem:[#allocation9 + $0x534] sm:$0xf0]  ;;  %v3775_v13 = vor.u32 %v4684_v2, %v3774_v0  ;;  %v4670_v2 = vld [vmem:[#allocation9 + $0x3cc] sm:$0xf] }
 0x11d   :  { %2319 = vmatpush.bf16.msra.mxu3 %v3647_v58  ;;  %2279 = vmatmul.bf16.vlgmr.msra.gmra.mxu0 %v5146_v4  ;;  %v4756_v58 = vld [vmem:[#allocation9 + $0x674] sm:$0xf0]  ;;  %v3919_v63 = vor.u32 %v4720_v34, %v3918_v56  ;;  %v3903_v51 = vor.u32 %v4716_v6, %v3902_v5  ;;  %v4014_v43 = vld [vmem:[#allocation9 + $0x608] sm:$0xf]  ;;  %v4570_v56 = vld [vmem:[#allocation9 + $0xac] sm:$0xf] }
 0x11e   :  { %2327 = vmatpush.bf16.msrb.mxu0 %v3871_v53  ;;  %2341 = vmatpush.bf16.msrb.mxu1 %v3999_v55  ;;  %v3790_v53 = vld [vmem:[#allocation9 + $0x448] sm:$0xf]  ;;  %v4079_v55 = vor.u32 %v4760_v48, %v4078_v46  ;;  %v4752_v12 = vld [vmem:[#allocation9 + $0x654] sm:$0xf0]  ;;  %v3328_v34 = vld [vmem:[#allocation9 + $0xb8] sm:$0xf0] }
 0x11f   :  { %2293 = vmatmul.bf16.vlgmr.msra.gmra.mxu1 %v5150_v8  ;;  %v3791_v60 = vor.u32 %v4688_v54, %v3790_v53  ;;  %v4712_v18 = vld [vmem:[#allocation9 + $0x514] sm:$0xf0]  ;;  %v4142_v46 = vld [vmem:[#allocation9 + $0x708] sm:$0xf]  ;;  %v3744_v53 = vld [vmem:[#allocation9 + $0x3f8] sm:$0xf0]  ;;  %v3331_v0 = vor.u32 %v4570_v56, %v3328_v34 }
 0x120   :  { %2306 = vmatpush.bf16.msra.mxu2 %v3503_v9  ;;  %v4046_v9 = vld [vmem:[#allocation9 + $0x648] sm:$0xf]  ;;  %v4748_v26 = vld [vmem:[#allocation9 + $0x634] sm:$0xf0]  ;;  %v3887_v31 = vor.u32 %v4712_v18, %v3886_v17  ;;  %v4566_v6 = vld [vmem:[#allocation9 + $0x8c] sm:$0xf] }
 0x121   :  { %2320 = vmatpush.bf16.msra.mxu3 %v3631_v14  ;;  %v4174_v14 = vld [vmem:[#allocation9 + $0x748] sm:$0xf]  ;;  %v4780_v30 = vld [vmem:[#allocation9 + $0x734] sm:$0xf0]  ;;  %v3712_v17 = vld [vmem:[#allocation9 + $0x3b8] sm:$0xf0] }
 0x122   :  { %2328 = vmatpush.bf16.msrb.mxu0 %v3855_v3  ;;  %2342 = vmatpush.bf16.msrb.mxu1 %v3983_v7  ;;  %v4063_v3 = vor.u32 %v4756_v58, %v4062_v57  ;;  %v4191_v7 = vor.u32 %v4788_v62, %v4190_v61  ;;  %v4776_v48 = vld [vmem:[#allocation9 + $0x714] sm:$0xf0]  ;;  %v4602_v58 = vld [vmem:[#allocation9 + $0x1ac] sm:$0xf] }
 0x123   :  { %2307 = vmatmul.bf16.vlgmr.msra.gmra.mxu2 %v5167_v42  ;;  %v4638_v62 = vld [vmem:[#allocation9 + $0x2cc] sm:$0xf] }
 0x124   :  { %2355 = vmatpush.bf16.msrb.mxu2 %v4127_v10  ;;  %2321 = vmatmul.bf16.vlgmr.msra.gmra.mxu3 %v5170_v47  ;;  %v4784_v10 = vld [vmem:[#allocation9 + $0x754] sm:$0xf0]  ;;  %v4558_v33 = vld [vmem:[#allocation9 + $0x4c] sm:$0xf] }
 0x125   :  { %2369 = vmatpush.bf16.msrb.mxu3 %v4255_v16  ;;  %v4680_v16 = vld [vmem:[#allocation9 + $0x414] sm:$0xf0]  ;;  %v4175_v22 = vor.u32 %v4784_v10, %v4174_v14  ;;  %v4634_v10 = vld [vmem:[#allocation9 + $0x2ac] sm:$0xf] }
 0x126   :  { %2329 = vmatpush.bf16.msrb.mxu0 %v3839_v11  ;;  %2343 = vmatpush.bf16.msrb.mxu1 %v3967_v21  ;;  %v4047_v11 = vor.u32 %v4752_v12, %v4046_v9  ;;  %v4610_v21 = vld [vmem:[#allocation9 + $0x1ec] sm:$0xf]  ;;  %v3759_v27 = vor.u32 %v4680_v16, %v3758_v15  ;;  %v3584_v15 = vld [vmem:[#allocation9 + $0x2b8] sm:$0xf0] }
 0x127   :  { %v3491_v36 = vor.u32 %v4610_v21, %v3488_v23  ;;  %v4598_v12 = vld [vmem:[#allocation9 + $0x18c] sm:$0xf] }
 0x128   :  { %2356 = vmatpush.bf16.msrb.mxu2 %v4111_v25  ;;  %v4030_v25 = vld [vmem:[#allocation9 + $0x628] sm:$0xf]  ;;  %v4666_v16 = vld [vmem:[#allocation9 + $0x3ac] sm:$0xf] }
 0x129   :  { %2370 = vmatpush.bf16.msrb.mxu3 %v4239_v29  ;;  %v4158_v29 = vld [vmem:[#allocation9 + $0x728] sm:$0xf]  ;;  %v4594_v21 = vld [vmem:[#allocation9 + $0x16c] sm:$0xf]  ;;  %v3715_v23 = vor.u32 %v4666_v16, %v3712_v17 }
 0x12a   :  { %2330 = vmatpush.bf16.msrb.mxu0 %v3823_v32  ;;  %2344 = vmatpush.bf16.msrb.mxu1 %v3951_v37  ;;  %v3363_v32 = vor.u32 %v4578_v19, %v3360_v20  ;;  %v4031_v37 = vor.u32 %v4748_v26, %v4030_v25  ;;  %v4159_v41 = vor.u32 %v4780_v30, %v4158_v29  ;;  %v3296_v19 = vld [vmem:[#allocation9 + $0x78] sm:$0xf0]  ;;  %v4630_v25 = vld [vmem:[#allocation9 + $0x28c] sm:$0xf] }
 0x12b   :  { %v3587_v20 = vor.u32 %v4634_v10, %v3584_v15  ;;  %v3568_v26 = vld [vmem:[#allocation9 + $0x298] sm:$0xf0]  ;;  %v4662_v29 = vld [vmem:[#allocation9 + $0x38c] sm:$0xf] }
 0x12c   :  { %2357 = vmatpush.bf16.msrb.mxu2 %v4095_v40  ;;  %v3472_v40 = vld [vmem:[#allocation9 + $0x1d8] sm:$0xf0]  ;;  %v4590_v38 = vld [vmem:[#allocation9 + $0x14c] sm:$0xf] }
 0x12d   :  { %2371 = vmatpush.bf16.msrb.mxu3 %v4223_v45  ;;  %v4744_v45 = vld [vmem:[#allocation9 + $0x614] sm:$0xf0]  ;;  %v3475_v54 = vor.u32 %v4606_v39, %v3472_v40  ;;  %v3696_v30 = vld [vmem:[#allocation9 + $0x398] sm:$0xf0]  ;;  %v4622_v34 = vld [vmem:[#allocation9 + $0x24c] sm:$0xf] }
 0x12e   :  { %2331 = vmatpush.bf16.msrb.mxu0 %v3807_v49  ;;  %2345 = vmatpush.bf16.msrb.mxu1 %v3935_v24  ;;  %v4642_v49 = vld [vmem:[#allocation9 + $0x2ec] sm:$0xf]  ;;  %v3408_v39 = vld [vmem:[#allocation9 + $0x158] sm:$0xf0]  ;;  %v3699_v40 = vor.u32 %v4662_v29, %v3696_v30 }
 0x12f   :  { %v4674_v24 = vld [vmem:[#allocation9 + $0x3ec] sm:$0xf]  ;;  %v3619_v57 = vor.u32 %v4642_v49, %v3616_v50  ;;  %v3411_v49 = vor.u32 %v4590_v38, %v3408_v39  ;;  %v3520_v15 = vld [vmem:[#allocation9 + $0x238] sm:$0xf0] }
 0x130   :  { %2358 = vmatpush.bf16.msrb.mxu2 %v4079_v55  ;;  %v4015_v55 = vor.u32 %v4744_v45, %v4014_v43  ;;  %v3747_v61 = vor.u32 %v4674_v24, %v3744_v53  ;;  %v3552_v43 = vld [vmem:[#allocation9 + $0x278] sm:$0xf0]  ;;  %v4554_v50 = vld [vmem:[#allocation9 + $0x2c] sm:$0xf] }
 0x131   :  { %2372 = vmatpush.bf16.msrb.mxu3 %v4207_v44  ;;  %v4143_v44 = vor.u32 %v4776_v48, %v4142_v46  ;;  %v4658_v46 = vld [vmem:[#allocation9 + $0x36c] sm:$0xf]  ;;  %v3680_v48 = vld [vmem:[#allocation9 + $0x378] sm:$0xf0] }
 0x132   :  { %2332 = vmatpush.bf16.msrb.mxu0 %v3791_v60  ;;  %2346 = vmatpush.bf16.msrb.mxu1 %v3919_v63  ;;  %v3456_v60 = vld [vmem:[#allocation9 + $0x1b8] sm:$0xf0]  ;;  %v4586_v53 = vld [vmem:[#allocation9 + $0x12c] sm:$0xf]  ;;  %v3683_v56 = vor.u32 %v4658_v46, %v3680_v48 }
 0x133   :  { %v3600_v63 = vld [vmem:[#allocation9 + $0x2d8] sm:$0xf0]  ;;  %v3459_v5 = vor.u32 %v4602_v58, %v3456_v60  ;;  %v4654_v58 = vld [vmem:[#allocation9 + $0x34c] sm:$0xf] }
 0x134   :  { %2359 = vmatpush.bf16.msrb.mxu2 %v4063_v3  ;;  %v3728_v3 = vld [vmem:[#allocation9 + $0x3d8] sm:$0xf0]  ;;  %v3603_v9 = vor.u32 %v4638_v62, %v3600_v63  ;;  %v4618_v10 = vld [vmem:[#allocation9 + $0x22c] sm:$0xf] }
 0x135   :  { %2373 = vmatpush.bf16.msrb.mxu3 %v4191_v7  ;;  %v3312_v7 = vld [vmem:[#allocation9 + $0x98] sm:$0xf0]  ;;  %v3731_v14 = vor.u32 %v4670_v2, %v3728_v3  ;;  %v4650_v17 = vld [vmem:[#allocation9 + $0x32c] sm:$0xf] }
 0x136   :  { %2333 = vmatpush.bf16.msrb.mxu0 %v3775_v13  ;;  %2347 = vmatpush.bf16.msrb.mxu1 %v3903_v51  ;;  %v3440_v13 = vld [vmem:[#allocation9 + $0x198] sm:$0xf0]  ;;  %v3315_v51 = vor.u32 %v4566_v6, %v3312_v7  ;;  %v4738_v7 = vld [vmem:[#allocation9 + $0x5ec] sm:$0xf] }
 0x137   :  { %v3443_v18 = vor.u32 %v4598_v12, %v3440_v13  ;;  %v3664_v60 = vld [vmem:[#allocation9 + $0x358] sm:$0xf0]  ;;  %v4614_v29 = vld [vmem:[#allocation9 + $0x20c] sm:$0xf] }
 0x138   :  { %2360 = vmatpush.bf16.msrb.mxu2 %v4047_v11  ;;  %v4562_v11 = vld [vmem:[#allocation9 + $0x6c] sm:$0xf]  ;;  %v3248_v63 = vld [vmem:[#allocation9 + $0x18] sm:$0xf0]  ;;  %v3667_v13 = vor.u32 %v4654_v58, %v3664_v60 }
 0x139   :  { %2374 = vmatpush.bf16.msrb.mxu3 %v4175_v22  ;;  %v3424_v22 = vld [vmem:[#allocation9 + $0x178] sm:$0xf0]  ;;  %v4698_v46 = vld [vmem:[#allocation9 + $0x4ac] sm:$0xf] }
 0x13a   :  { %2334 = vmatpush.bf16.msrb.mxu0 %v3759_v27  ;;  %2348 = vmatpush.bf16.msrb.mxu1 %v3887_v31  ;;  %v3299_v27 = vor.u32 %v4562_v11, %v3296_v19  ;;  %v5218_v31 = vpop.f32.mrf.mxu0  ;;  %v3376_v2 = vld [vmem:[#allocation9 + $0x118] sm:$0xf0]  ;;  %v4798_v58 = vld [vmem:[#allocation9 + $0x7cc] sm:$0xf] }
 0x13b   :  { %v3872_v6 = vld [vmem:[#allocation9 + $0x4f8] sm:$0xf0] }
 0x13c   :  { %2361 = vmatpush.bf16.msrb.mxu2 %v4031_v37  ;;  %v3571_v37 = vor.u32 %v4630_v25, %v3568_v26  ;;  %v4734_v25 = vld [vmem:[#allocation9 + $0x5cc] sm:$0xf]  ;;  %v3984_v26 = vld [vmem:[#allocation9 + $0x5d8] sm:$0xf0] }
 0x13d   :  { %2375 = vmatpush.bf16.msrb.mxu3 %v4159_v41  ;;  %2335 = vmatmul.bf16.vlgmr.msrb.gmra.mxu0 %v5184_v28  ;;  %v4626_v41 = vld [vmem:[#allocation9 + $0x26c] sm:$0xf]  ;;  %v3504_v30 = vld [vmem:[#allocation9 + $0x218] sm:$0xf0] }
 0x13e   :  { %2383 = vmatpush.bf16.msra.mxu0 %v3363_v32  ;;  %2397 = vmatpush.bf16.msra.mxu1 %v3491_v36  ;;  %v3427_v32 = vor.u32 %v4594_v21, %v3424_v22  ;;  %v3280_v36 = vld [vmem:[#allocation9 + $0x58] sm:$0xf0]  ;;  %v3555_v24 = vor.u32 %v4626_v41, %v3552_v43  ;;  %v3523_v22 = vor.u32 %v4618_v10, %v3520_v15  ;;  %v4690_v15 = vld [vmem:[#allocation9 + $0x46c] sm:$0xf] }
 0x13f   :  { %2349 = vmatmul.bf16.vlgmr.msrb.gmra.mxu1 %v5186_v35  ;;  %v3283_v45 = vor.u32 %v4558_v33, %v3280_v36  ;;  %v3632_v33 = vld [vmem:[#allocation9 + $0x318] sm:$0xf0]  ;;  %v4770_v36 = vld [vmem:[#allocation9 + $0x6ec] sm:$0xf]  ;;  %v3987_v43 = vor.u32 %v4734_v25, %v3984_v26 }
 0x140   :  { %2362 = vmatpush.bf16.msrb.mxu2 %v4015_v55  ;;  %v5220_v55 = vpop.f32.mrf.mxu1  ;;  %v4256_v41 = vld [vmem:[#allocation9 + $0x7f8] sm:$0xf0]  ;;  %v4686_v26 = vld [vmem:[#allocation9 + $0x44c] sm:$0xf] }
 0x141   :  { %2376 = vmatpush.bf16.msrb.mxu3 %v4143_v44  ;;  %v3536_v44 = vld [vmem:[#allocation9 + $0x258] sm:$0xf0] }
 0x142   :  { %2384 = vmatpush.bf16.msra.mxu0 %v3347_v52  ;;  %2398 = vmatpush.bf16.msra.mxu1 %v3475_v54  ;;  %v3264_v52 = vld [vmem:[#allocation9 + $0x38] sm:$0xf0]  ;;  %v3539_v3 = vor.u32 %v4622_v34, %v3536_v44 }
 0x143   :  { %2363 = vmatmul.bf16.vlgmr.msrb.gmra.mxu2 %v5196_v59  ;;  %v3392_v54 = vld [vmem:[#allocation9 + $0x138] sm:$0xf0] }
 0x144   :  { %2411 = vmatpush.bf16.msra.mxu2 %v3619_v57  ;;  %2377 = vmatmul.bf16.vlgmr.msrb.gmra.mxu3 %v5198_v1  ;;  %v3267_v57 = vor.u32 %v4554_v50, %v3264_v52  ;;  %v3395_v62 = vor.u32 %v4586_v53, %v3392_v54  ;;  %v3840_v48 = vld [vmem:[#allocation9 + $0x4b8] sm:$0xf0]  ;;  %v4730_v52 = vld [vmem:[#allocation9 + $0x5ac] sm:$0xf] }
 0x145   :  { %2425 = vmatpush.bf16.msra.mxu3 %v3747_v61  ;;  %v4550_v61 = vld [vmem:[#allocation9 + $0xc] sm:$0xf]  ;;  %v4240_v60 = vld [vmem:[#allocation9 + $0x7d8] sm:$0xf0] }
 0x146   :  { %2385 = vmatpush.bf16.msra.mxu0 %v3331_v0  ;;  %2399 = vmatpush.bf16.msra.mxu1 %v3459_v5  ;;  %v4582_v0 = vld [vmem:[#allocation9 + $0x10c] sm:$0xf]  ;;  %v5224_v12 = vpop.f32.mrf.mxu2  ;;  %v3251_v16 = vor.u32 %v4550_v61, %v3248_v63  ;;  %v3824_v63 = vld [vmem:[#allocation9 + $0x498] sm:$0xf0] }
 0x147   :  { %v4706_v5 = vld [vmem:[#allocation9 + $0x4ec] sm:$0xf]  ;;  %v3379_v11 = vor.u32 %v4582_v0, %v3376_v2  ;;  %v3952_v2 = vld [vmem:[#allocation9 + $0x598] sm:$0xf0] }
 0x148   :  { %2412 = vmatpush.bf16.msra.mxu2 %v3603_v9  ;;  %v5222_v9 = vpop.f32.mrf.mxu0  ;;  %v3875_v19 = vor.u32 %v4706_v5, %v3872_v6  ;;  %v5228_v38 = vpop.f32.mrf.mxu1  ;;  %v4766_v54 = vld [vmem:[#allocation9 + $0x6cc] sm:$0xf]  ;;  %v4096_v6 = vld [vmem:[#allocation9 + $0x6b8] sm:$0xf0] }
 0x149   :  { %2426 = vmatpush.bf16.msra.mxu3 %v3731_v14  ;;  %v4000_v14 = vld [vmem:[#allocation9 + $0x5f8] sm:$0xf0]  ;;  %v4726_v0 = vld [vmem:[#allocation9 + $0x58c] sm:$0xf] }
 0x14a   :  { %2386 = vmatpush.bf16.msra.mxu0 %v3315_v51  ;;  %2400 = vmatpush.bf16.msra.mxu1 %v3443_v18  ;;  %v5226_v51 = vpop.f32.mrf.mxu3  ;;  %v3648_v18 = vld [vmem:[#allocation9 + $0x338] sm:$0xf0]  ;;  %v4003_v21 = vor.u32 %v4738_v7, %v4000_v14  ;;  %v4762_v5 = vld [vmem:[#allocation9 + $0x6ac] sm:$0xf]  ;;  %v3955_v10 = vor.u32 %v4726_v0, %v3952_v2 }
 0x14b   :  { %v4224_v14 = vld [vmem:[#allocation9 + $0x7b8] sm:$0xf0]  ;;  %v4678_v2 = vld [vmem:[#allocation9 + $0x40c] sm:$0xf] }
 0x14c   :  { %2413 = vmatpush.bf16.msra.mxu2 %v3587_v20  ;;  %v4702_v20 = vld [vmem:[#allocation9 + $0x4cc] sm:$0xf]  ;;  %v4208_v25 = vld [vmem:[#allocation9 + $0x798] sm:$0xf0] }
 0x14d   :  { %2427 = vmatpush.bf16.msra.mxu3 %v3715_v23  ;;  %v3856_v23 = vld [vmem:[#allocation9 + $0x4d8] sm:$0xf0] }
 0x14e   :  { %2387 = vmatpush.bf16.msra.mxu0 %v3299_v27  ;;  %2401 = vmatpush.bf16.msra.mxu1 %v3427_v32  ;;  %v3651_v27 = vor.u32 %v4650_v17, %v3648_v18  ;;  %v4646_v32 = vld [vmem:[#allocation9 + $0x30c] sm:$0xf]  ;;  %v3859_v39 = vor.u32 %v4702_v20, %v3856_v23  ;;  %v5234_v44 = vpop.f32.mrf.mxu2  ;;  %v4099_v18 = vor.u32 %v4762_v5, %v4096_v6  ;;  %v4176_v0 = vld [vmem:[#allocation9 + $0x758] sm:$0xf0] }
 0x14f   :  { %v4790_v23 = vld [vmem:[#allocation9 + $0x78c] sm:$0xf]  ;;  %v3760_v5 = vld [vmem:[#allocation9 + $0x418] sm:$0xf0] }
 0x150   :  { %2414 = vmatpush.bf16.msra.mxu2 %v3571_v37  ;;  %v4128_v37 = vld [vmem:[#allocation9 + $0x6f8] sm:$0xf0]  ;;  %v5232_v34 = vpop.f32.mrf.mxu0  ;;  %v5240_v17 = vpop.f32.mrf.mxu1  ;;  %v4710_v6 = vld [vmem:[#allocation9 + $0x50c] sm:$0xf] }
 0x151   :  { %2428 = vmatpush.bf16.msra.mxu3 %v3699_v40  ;;  %v4802_v40 = vld [vmem:[#allocation9 + $0x7ec] sm:$0xf]  ;;  %v4131_v50 = vor.u32 %v4770_v36, %v4128_v37  ;;  %v3920_v36 = vld [vmem:[#allocation9 + $0x558] sm:$0xf0] }
 0x152   :  { %2388 = vmatpush.bf16.msra.mxu0 %v3283_v45  ;;  %2402 = vmatpush.bf16.msra.mxu1 %v3411_v49  ;;  %v3507_v45 = vor.u32 %v4614_v29, %v3504_v30  ;;  %v3635_v49 = vor.u32 %v4646_v32, %v3632_v33  ;;  %v4259_v53 = vor.u32 %v4802_v40, %v4256_v41  ;;  %v5236_v61 = vpop.f32.mrf.mxu3  ;;  %v4718_v33 = vld [vmem:[#allocation9 + $0x54c] sm:$0xf] }
 0x153   :  { %v5249_v37 = vld [vmem:[%s5301_s4] sm:$0xf]  ;;  %v4211_v40 = vor.u32 %v4790_v23, %v4208_v25  ;;  %v4160_v25 = vld [vmem:[#allocation9 + $0x738] sm:$0xf0] }
 0x154   :  { %2415 = vmatpush.bf16.msra.mxu2 %v3555_v24  ;;  %v3968_v24 = vld [vmem:[#allocation9 + $0x5b8] sm:$0xf0]  ;;  %v4754_v41 = vld [vmem:[#allocation9 + $0x66c] sm:$0xf] }
 0x155   :  { %2429 = vmatpush.bf16.msra.mxu3 %v3683_v56  ;;  %v4112_v56 = vld [vmem:[#allocation9 + $0x6d8] sm:$0xf0]  ;;  %v4778_v23 = vld [vmem:[#allocation9 + $0x72c] sm:$0xf] }
 0x156   :  { %2389 = vmatpush.bf16.msra.mxu0 %v3267_v57  ;;  %2403 = vmatpush.bf16.msra.mxu1 %v3395_v62  ;;  %v3843_v57 = vor.u32 %v4698_v46, %v3840_v48  ;;  %v4694_v62 = vld [vmem:[#allocation9 + $0x48c] sm:$0xf]  ;;  %v5244_v30 = vpop.f32.mrf.mxu2  ;;  %v4192_v48 = vld [vmem:[#allocation9 + $0x778] sm:$0xf0] }
 0x157   :  { %v3827_v7 = vor.u32 %v4694_v62, %v3824_v63  ;;  %v4786_v46 = vld [vmem:[#allocation9 + $0x76c] sm:$0xf] }
 0x158   :  { %2416 = vmatpush.bf16.msra.mxu2 %v3539_v3  ;;  %v4243_v3 = vor.u32 %v4798_v58, %v4240_v60  ;;  %v5242_v29 = vpop.f32.mrf.mxu0  ;;  %v4750_v58 = vld [vmem:[#allocation9 + $0x64c] sm:$0xf]  ;;  %v4048_v60 = vld [vmem:[#allocation9 + $0x658] sm:$0xf0]  ;;  %v5255_v62 = vpop.f32.mrf.mxu1 }
 0x159   :  { %2430 = vmatpush.bf16.msra.mxu3 %v3667_v13  ;;  %v4794_v13 = vld [vmem:[#allocation9 + $0x7ac] sm:$0xf] }
 0x15a   :  { %2390 = vmatpush.bf16.msra.mxu0 %v3251_v16  ;;  %2404 = vmatpush.bf16.msra.mxu1 %v3379_v11  ;;  %v3808_v16 = vld [vmem:[#allocation9 + $0x478] sm:$0xf0]  ;;  %v4722_v11 = vld [vmem:[#allocation9 + $0x56c] sm:$0xf]  ;;  %v4227_v20 = vor.u32 %v4794_v13, %v4224_v14  ;;  %v4051_v13 = vor.u32 %v4750_v58, %v4048_v60  ;;  %v4318_v14 = vld [vmem:[#allocation11 + $0x70] sm:$0xf] }
 0x15b   :  { %v4366_v60 = vld [vmem:[#allocation11 + $0xd0] sm:$0xf] }
 0x15c   :  { %2417 = vmatpush.bf16.msra.mxu2 %v3523_v22  ;;  %v3811_v22 = vor.u32 %v4690_v15, %v3808_v16  ;;  %v4382_v15 = vld [vmem:[#allocation11 + $0xf0] sm:$0xf] }
 0x15d   :  { %2431 = vmatpush.bf16.msra.mxu3 %v3651_v27  ;;  %2391 = vmatmul.bf16.vlgmr.msra.gmra.mxu0 %v5146_v4  ;;  %v3971_v4 = vor.u32 %v4730_v52, %v3968_v24  ;;  %v3792_v27 = vld [vmem:[#allocation9 + $0x458] sm:$0xf0]  ;;  %v759_v24 = vperm.slane %v5249_v37, 0 }
 0x15e   :  { %2439 = vmatpush.bf16.msrb.mxu0 %v3875_v19  ;;  %2453 = vmatpush.bf16.msrb.mxu1 %v4003_v21  ;;  %v3936_v19 = vld [vmem:[#allocation9 + $0x578] sm:$0xf0]  ;;  %v4758_v21 = vld [vmem:[#allocation9 + $0x68c] sm:$0xf] }
 0x15f   :  { %2405 = vmatmul.bf16.vlgmr.msra.gmra.mxu1 %v5150_v8  ;;  %v4115_v8 = vor.u32 %v4766_v54, %v4112_v56  ;;  %v3776_v52 = vld [vmem:[#allocation9 + $0x438] sm:$0xf0]  ;;  %v4714_v54 = vld [vmem:[#allocation9 + $0x52c] sm:$0xf]  ;;  %v2057_v16 = vadd.f32 %v5218_v31, %v759_v24 }
 0x160   :  { %2418 = vmatpush.bf16.msra.mxu2 %v3507_v45  ;;  %v3795_v45 = vor.u32 %v4686_v26, %v3792_v27  ;;  %v3904_v56 = vld [vmem:[#allocation9 + $0x538] sm:$0xf0] }
 0x161   :  { %2432 = vmatpush.bf16.msra.mxu3 %v3635_v49  ;;  %v3923_v49 = vor.u32 %v4718_v33, %v3920_v36  ;;  %v4310_v36 = vld [vmem:[#allocation11 + $0x60] sm:$0xf] }
 0x162   :  { %2440 = vmatpush.bf16.msrb.mxu0 %v3859_v39  ;;  %2454 = vmatpush.bf16.msrb.mxu1 %v3987_v43  ;;  %v5251_v39 = vpop.f32.mrf.mxu3  ;;  %v4064_v43 = vld [vmem:[#allocation9 + $0x678] sm:$0xf0] }
 0x163   :  { %2419 = vmatmul.bf16.vlgmr.msra.gmra.mxu2 %v5167_v42  ;;  %v4080_v42 = vld [vmem:[#allocation9 + $0x698] sm:$0xf0] }
 0x164   :  { %2467 = vmatpush.bf16.msrb.mxu2 %v4131_v50  ;;  %2433 = vmatmul.bf16.vlgmr.msra.gmra.mxu3 %v5170_v47  ;;  %v3939_v47 = vor.u32 %v4722_v11, %v3936_v19  ;;  %v4083_v32 = vor.u32 %v4758_v21, %v4080_v42  ;;  %v4682_v50 = vld [vmem:[#allocation9 + $0x42c] sm:$0xf]  ;;  %v4032_v19 = vld [vmem:[#allocation9 + $0x638] sm:$0xf0]  ;;  %v2168_v21 = vpop.f32.mrf.mxu0  ;;  %v5259_v42 = vpop.f32.mrf.mxu2 }
 0x165   :  { %2481 = vmatpush.bf16.msrb.mxu3 %v4259_v53  ;;  %v4067_v53 = vor.u32 %v4754_v41, %v4064_v43  ;;  %v3779_v63 = vor.u32 %v4682_v50, %v3776_v52  ;;  %v4746_v11 = vld [vmem:[#allocation9 + $0x62c] sm:$0xf]  ;;  %v2071_v41 = vadd.f32 %v5220_v55, %v2057_v16  ;;  %v4163_v43 = vor.u32 %v4778_v23, %v4160_v25  ;;  %v4144_v50 = vld [vmem:[#allocation9 + $0x718] sm:$0xf0]  ;;  %v4812_v16 = vld [vmem:[#allocation11 + $0x34] sm:$0xf0] }
 0x166   :  { %2441 = vmatpush.bf16.msrb.mxu0 %v3843_v57  ;;  %2455 = vmatpush.bf16.msrb.mxu1 %v3971_v4  ;;  %v4195_v57 = vor.u32 %v4786_v46, %v4192_v48  ;;  %v2059_v4 = vadd.f32 %v5222_v9, %v759_v24  ;;  %v4035_v33 = vor.u32 %v4746_v11, %v4032_v19  ;;  %v4742_v46 = vld [vmem:[#allocation9 + $0x60c] sm:$0xf]  ;;  %v4016_v48 = vld [vmem:[#allocation9 + $0x618] sm:$0xf0]  ;;  %v4810_v23 = vld [vmem:[#allocation11 + $0x24] sm:$0xf0] }
 0x167   :  { %v2085_v52 = vadd.f32 %v5224_v12, %v2071_v41  ;;  %v4019_v55 = vor.u32 %v4742_v46, %v4016_v48  ;;  %v760_v12 = vperm.slane %v5249_v37, 1  ;;  %v4824_v46 = vld [vmem:[#allocation11 + $0x94] sm:$0xf0] }
 0x168   :  { %2468 = vmatpush.bf16.msrb.mxu2 %v4115_v8  ;;  %v4782_v8 = vld [vmem:[#allocation9 + $0x74c] sm:$0xf] }
 0x169   :  { %2482 = vmatpush.bf16.msrb.mxu3 %v4243_v3  ;;  %v3907_v3 = vor.u32 %v4714_v54, %v3904_v56  ;;  %v4179_v9 = vor.u32 %v4782_v8, %v4176_v0  ;;  %v4302_v56 = vld [vmem:[#allocation11 + $0x50] sm:$0xf] }
 0x16a   :  { %2442 = vmatpush.bf16.msrb.mxu0 %v3827_v7  ;;  %2456 = vmatpush.bf16.msrb.mxu1 %v3955_v10  ;;  %v3888_v7 = vld [vmem:[#allocation9 + $0x518] sm:$0xf0]  ;;  %v4820_v10 = vld [vmem:[#allocation11 + $0x74] sm:$0xf0] }
 0x16b   :  { %v3891_v26 = vor.u32 %v4710_v6, %v3888_v7  ;;  %v4319_v27 = vor.u32 %v4820_v10, %v4318_v14  ;;  %v4358_v7 = vld [vmem:[#allocation11 + $0xc0] sm:$0xf] }
 0x16c   :  { %2469 = vmatpush.bf16.msrb.mxu2 %v4099_v18  ;;  %v4836_v18 = vld [vmem:[#allocation11 + $0xf4] sm:$0xf0]  ;;  %v2170_v0 = vpop.f32.mrf.mxu0 }
 0x16d   :  { %2483 = vmatpush.bf16.msrb.mxu3 %v4227_v20  ;;  %v2073_v20 = vadd.f32 %v5228_v38, %v2059_v4  ;;  %v4374_v38 = vld [vmem:[#allocation11 + $0xe0] sm:$0xf]  ;;  %v4832_v4 = vld [vmem:[#allocation11 + $0xd4] sm:$0xf0] }
 0x16e   :  { %2443 = vmatpush.bf16.msrb.mxu0 %v3811_v22  ;;  %2457 = vmatpush.bf16.msrb.mxu1 %v3939_v47  ;;  %v3763_v22 = vor.u32 %v4678_v2, %v3760_v5  ;;  %v5261_v47 = vpop.f32.mrf.mxu3  ;;  %v2196_v2 = vpop.f32.mrf.mxu2  ;;  %v4294_v5 = vld [vmem:[#allocation11 + $0x40] sm:$0xf] }
 0x16f   :  { %v2087_v31 = vadd.f32 %v5234_v44, %v2073_v20 }
 0x170   :  { %2470 = vmatpush.bf16.msrb.mxu2 %v4083_v32  ;;  %v4383_v32 = vor.u32 %v4836_v18, %v4382_v15  ;;  %v4286_v15 = vld [vmem:[#allocation11 + $0x30] sm:$0xf]  ;;  %v4828_v18 = vld [vmem:[#allocation11 + $0xb4] sm:$0xf0] }
 0x171   :  { %2484 = vmatpush.bf16.msrb.mxu3 %v4211_v40  ;;  %v4818_v40 = vld [vmem:[#allocation11 + $0x64] sm:$0xf0]  ;;  %v2101_v24 = vadd.f32 %v5236_v61, %v2087_v31  ;;  %v2099_v61 = vadd.f32 %v5226_v51, %v2085_v52 }
 0x172   :  { %2444 = vmatpush.bf16.msrb.mxu0 %v3795_v45  ;;  %2458 = vmatpush.bf16.msrb.mxu1 %v3923_v49  ;;  %v4834_v45 = vld [vmem:[#allocation11 + $0xe4] sm:$0xf0]  ;;  %v4774_v49 = vld [vmem:[#allocation9 + $0x70c] sm:$0xf]  ;;  %v4311_v44 = vor.u32 %v4818_v40, %v4310_v36 }
 0x173   :  { %v4375_v54 = vor.u32 %v4834_v45, %v4374_v38  ;;  %v4147_v58 = vor.u32 %v4774_v49, %v4144_v50  ;;  %v2115_v8 = vadd.f32 %v5242_v29, %v2101_v24  ;;  %v2113_v51 = vadd.f32 %v5232_v34, %v2099_v61  ;;  %v4808_v38 = vld [vmem:[#allocation11 + $0x14] sm:$0xf0]  ;;  %v4334_v45 = vld [vmem:[#allocation11 + $0x90] sm:$0xf]  ;;  %v4806_v24 = vld [vmem:[#allocation11 + $0x4] sm:$0xf0] }
 0x174   :  { %2471 = vmatpush.bf16.msrb.mxu2 %v4067_v53  ;;  %v2182_v53 = vpop.f32.mrf.mxu1  ;;  %v4384_v61 = vld [vmem:[#allocation11 + $0xf8] sm:$0xf0] }
 0x175   :  { %2485 = vmatpush.bf16.msrb.mxu3 %v4195_v57  ;;  %v4816_v57 = vld [vmem:[#allocation11 + $0x54] sm:$0xf0]  ;;  %v2129_v29 = vadd.f32 %v5255_v62, %v2115_v8  ;;  %v4278_v62 = vld [vmem:[#allocation11 + $0x20] sm:$0xf] }
 0x176   :  { %2445 = vmatpush.bf16.msrb.mxu0 %v3779_v63  ;;  %2459 = vmatpush.bf16.msrb.mxu1 %v3907_v3  ;;  %v4303_v63 = vor.u32 %v4816_v57, %v4302_v56  ;;  %v4367_v3 = vor.u32 %v4832_v4, %v4366_v60  ;;  %v2210_v6 = vpop.f32.mrf.mxu3  ;;  %v4279_v36 = vor.u32 %v4810_v23, %v4278_v62  ;;  %v4852_v56 = vld [vmem:[#allocation11 + $0x174] sm:$0xf0]  ;;  %v4822_v57 = vld [vmem:[#allocation11 + $0x84] sm:$0xf0]  ;;  %v4320_v60 = vld [vmem:[#allocation11 + $0x78] sm:$0xf0] }
 0x177   :  { %v2143_v11 = vadd.f32 %v5259_v42, %v2129_v29  ;;  %v2198_v42 = vpop.f32.mrf.mxu2 }
 0x178   :  { %2472 = vmatpush.bf16.msrb.mxu2 %v4051_v13  ;;  %v4830_v13 = vld [vmem:[#allocation11 + $0xc4] sm:$0xf0] }
 0x179   :  { %2486 = vmatpush.bf16.msrb.mxu3 %v4179_v9  ;;  %v4359_v10 = vor.u32 %v4830_v13, %v4358_v7  ;;  %v4350_v9 = vld [vmem:[#allocation11 + $0xb0] sm:$0xf]  ;;  %v4438_v13 = vld [vmem:[#allocation11 + $0x160] sm:$0xf] }
 0x17a   :  { %2446 = vmatpush.bf16.msrb.mxu0 %v3763_v22  ;;  %2460 = vmatpush.bf16.msrb.mxu1 %v3891_v26  ;;  %v2224_v22 = vpop.f32.mrf.mxu0  ;;  %v4351_v34 = vor.u32 %v4828_v18, %v4350_v9  ;;  %v4342_v26 = vld [vmem:[#allocation11 + $0xa0] sm:$0xf]  ;;  %v4833_v9 = vld [vmem:[#allocation11 + $0xe4] sm:$0xf]  ;;  %v4376_v18 = vld [vmem:[#allocation11 + $0xe8] sm:$0xf0] }
 0x17b   :  { %v4379_v23 = vor.u32 %v4833_v9, %v4376_v18  ;;  %v4390_v9 = vld [vmem:[#allocation11 + $0x100] sm:$0xf]  ;;  %v4838_v18 = vld [vmem:[#allocation11 + $0x104] sm:$0xf0] }
 0x17c   :  { %2473 = vmatpush.bf16.msrb.mxu2 %v4035_v33  ;;  %v2184_v19 = vpop.f32.mrf.mxu1 }
 0x17d   :  { %2487 = vmatpush.bf16.msrb.mxu3 %v4163_v43  ;;  %2447 = vmatmul.bf16.vlgmr.msrb.gmra.mxu0 %v5184_v28  ;;  %v4814_v28 = vld [vmem:[#allocation11 + $0x44] sm:$0xf0] }
 0x17e   :  { %2913 = vmatpush.bf16.msra.mxu0 %v4319_v27  ;;  %2927 = vmatpush.bf16.msra.mxu1 %v4383_v32  ;;  %v4295_v14 = vor.u32 %v4814_v28, %v4294_v5  ;;  %v4826_v27 = vld [vmem:[#allocation11 + $0xa4] sm:$0xf0]  ;;  %v2157_v32 = vadd.f32 %v5261_v47, %v2143_v11  ;;  %v2212_v33 = vpop.f32.mrf.mxu3 }
 0x17f   :  { %2461 = vmatmul.bf16.vlgmr.msrb.gmra.mxu1 %v5186_v35  ;;  %v2169_v35 = vadd.f32 %v2168_v21, %v760_v12  ;;  %v2127_v21 = vadd.f32 %v5240_v17, %v2113_v51  ;;  %v4343_v40 = vor.u32 %v4826_v27, %v4342_v26  ;;  %v4270_v17 = vld [vmem:[#allocation11 + $0x10] sm:$0xf]  ;;  %v4831_v26 = vld [vmem:[#allocation11 + $0xd4] sm:$0xf] }
 0x180   :  { %2474 = vmatpush.bf16.msrb.mxu2 %v4019_v55  ;;  %vm2499_vm1 = vcmp.gt.f32.partialorder %v2157_v32, 0.0  ;;  %v2507_v50 = vmul.f32 0.2, %v2157_v32  ;;  %v4271_v47 = vor.u32 %v4808_v38, %v4270_v17  ;;  %v4446_v55 = vld [vmem:[#allocation11 + $0x170] sm:$0xf] }
 0x181   :  { %2488 = vmatpush.bf16.msrb.mxu3 %v4147_v58  ;;  %v2183_v20 = vadd.f32 %v2182_v53, %v2169_v35  ;;  %v2141_v31 = vadd.f32 %v5244_v30, %v2127_v21  ;;  %v4335_v53 = vor.u32 %v4824_v46, %v4334_v45  ;;  %v4819_v58 = vld [vmem:[#allocation11 + $0x74] sm:$0xf]  ;;  %v4447_v4 = vor.u32 %v4852_v56, %v4446_v55  ;;  %v4850_v35 = vld [vmem:[#allocation11 + $0x164] sm:$0xf0]  ;;  %v4430_v21 = vld [vmem:[#allocation11 + $0x150] sm:$0xf] }
 0x182   :  { %2914 = vmatpush.bf16.msra.mxu0 %v4311_v44  ;;  %2928 = vmatpush.bf16.msra.mxu1 %v4375_v54  ;;  %v4262_v44 = vld [vmem:[#allocation11] sm:$0xf]  ;;  %v2515_v28 = vsel %vm2499_vm1, %v2157_v32, %v2507_v50  ;;  %v4323_v7 = vor.u32 %v4819_v58, %v4320_v60  ;;  %v4368_v32 = vld [vmem:[#allocation11 + $0xd8] sm:$0xf0]  ;;  %v4813_v46 = vld [vmem:[#allocation11 + $0x44] sm:$0xf] }
 0x183   :  { %2475 = vmatmul.bf16.vlgmr.msrb.gmra.mxu2 %v5196_v59  ;;  %v4287_v59 = vor.u32 %v4812_v16, %v4286_v15  ;;  %v2197_v25 = vadd.f32 %v2196_v2, %v2183_v20  ;;  %v2155_v48 = vadd.f32 %v5251_v39, %v2141_v31  ;;  %v4326_v54 = vld [vmem:[#allocation11 + $0x80] sm:$0xf]  ;;  %v4263_v5 = vor.u32 %v4806_v24, %v4262_v44  ;;  %v4312_v15 = vld [vmem:[#allocation11 + $0x68] sm:$0xf0]  ;;  %v4844_v44 = vld [vmem:[#allocation11 + $0x134] sm:$0xf0] }
 0x184   :  { %2489 = vmatmul.bf16.vlgmr.msrb.gmra.mxu3 %v5198_v1  ;;  %v2171_v1 = vadd.f32 %v2170_v0, %v760_v12  ;;  %v2238_v49 = vpop.f32.mrf.mxu1  ;;  %v2226_v12 = vpop.f32.mrf.mxu0  ;;  %2941 = vmatpush.bf16.msra.mxu2 %v4447_v4  ;;  %v4439_v16 = vor.u32 %v4850_v35, %v4438_v13  ;;  %v4371_v45 = vor.u32 %v4831_v26, %v4368_v32  ;;  %v4360_v50 = vld [vmem:[#allocation11 + $0xc8] sm:$0xf0]  ;;  %v4811_v55 = vld [vmem:[#allocation11 + $0x34] sm:$0xf]  ;;  %v4288_v56 = vld [vmem:[#allocation11 + $0x38] sm:$0xf0] }
 0x185   :  { %v2211_v43 = vadd.f32 %v2210_v6, %v2197_v25  ;;  %v2503_v8 = vmul.f32 0.2, %v2155_v48  ;;  %vm2495_vm2 = vcmp.gt.f32.partialorder %v2155_v48, 0.0  ;;  %v4327_v6 = vor.u32 %v4822_v57, %v4326_v54  ;;  %v4304_v25 = vld [vmem:[#allocation11 + $0x58] sm:$0xf0] }
 0x186   :  { %2915 = vmatpush.bf16.msra.mxu0 %v4303_v63  ;;  %2929 = vmatpush.bf16.msra.mxu1 %v4367_v3  ;;  %v2185_v41 = vadd.f32 %v2184_v19, %v2171_v1  ;;  %v2252_v39 = vpop.f32.mrf.mxu2  ;;  %v4835_v63 = vld [vmem:[#allocation11 + $0xf4] sm:$0xf]  ;;  %v4352_v4 = vld [vmem:[#allocation11 + $0xb8] sm:$0xf0] }
 0x187   :  { %v2225_v52 = vadd.f32 %v2224_v22, %v2211_v43  ;;  %v2266_v3 = vpop.f32.mrf.mxu3  ;;  %v4387_v29 = vor.u32 %v4835_v63, %v4384_v61  ;;  %v2511_v11 = vsel %vm2495_vm2, %v2155_v48, %v2503_v8  ;;  %v4848_v22 = vld [vmem:[#allocation11 + $0x154] sm:$0xf0]  ;;  %v4815_v1 = vld [vmem:[#allocation11 + $0x54] sm:$0xf]  ;;  %v4296_v48 = vld [vmem:[#allocation11 + $0x48] sm:$0xf0]  ;;  %v4291_v63 = vor.u32 %v4811_v55, %v4288_v56 }
 0x188   :  { %v2199_v30 = vadd.f32 %v2198_v42, %v2185_v41  ;;  %2942 = vmatpush.bf16.msra.mxu2 %v4439_v16  ;;  %v5282_v19 = vpack.c.bf16 %v2515_v28, %v2511_v11  ;;  %v4431_v27 = vor.u32 %v4848_v22, %v4430_v21  ;;  %v4422_v42 = vld [vmem:[#allocation11 + $0x140] sm:$0xf]  ;;  %v4307_v38 = vor.u32 %v4815_v1, %v4304_v25  ;;  %v4827_v60 = vld [vmem:[#allocation11 + $0xb4] sm:$0xf]  ;;  %v4805_v16 = vld [vmem:[#allocation11 + $0x4] sm:$0xf] }
 0x189   :  { %v2239_v2 = vadd.f32 %v2238_v49, %v2225_v52  ;;  %v4829_v49 = vld [vmem:[#allocation11 + $0xc4] sm:$0xf]  ;;  %v4299_v52 = vor.u32 %v4813_v46, %v4296_v48  ;;  %v4355_v8 = vor.u32 %v4827_v60, %v4352_v4  ;;  %v4807_v35 = vld [vmem:[#allocation11 + $0x14] sm:$0xf]  ;;  %v4448_v22 = vld [vmem:[#allocation11 + $0x178] sm:$0xf0] }
 0x18a   :  { %2916 = vmatpush.bf16.msra.mxu0 %v4295_v14  ;;  %2930 = vmatpush.bf16.msra.mxu1 %v4359_v10  ;;  %v2213_v0 = vadd.f32 %v2212_v33, %v2199_v30  ;;  %v4817_v10 = vld [vmem:[#allocation11 + $0x64] sm:$0xf]  ;;  %v4846_v33 = vld [vmem:[#allocation11 + $0x144] sm:$0xf0]  ;;  %v4363_v54 = vor.u32 %v4829_v49, %v4360_v50  ;;  %v4851_v21 = vld [vmem:[#allocation11 + $0x174] sm:$0xf] }
 0x18b   :  { %v2253_v51 = vadd.f32 %v2252_v39, %v2239_v2  ;;  %v4842_v39 = vld [vmem:[#allocation11 + $0x124] sm:$0xf0]  ;;  %v4280_v2 = vld [vmem:[#allocation11 + $0x28] sm:$0xf0]  ;;  %v4843_v50 = vld [vmem:[#allocation11 + $0x134] sm:$0xf] }
 0x18c   :  { %v2227_v14 = vadd.f32 %v2226_v12, %v2213_v0  ;;  %v2240_v20 = vpop.f32.mrf.mxu1  ;;  %2943 = vmatpush.bf16.msra.mxu2 %v4431_v27  ;;  %v4406_v12 = vld [vmem:[#allocation11 + $0x120] sm:$0xf]  ;;  %v4809_v0 = vld [vmem:[#allocation11 + $0x24] sm:$0xf]  ;;  %v4839_v60 = vld [vmem:[#allocation11 + $0x114] sm:$0xf] }
 0x18d   :  { %v2267_v62 = vadd.f32 %v2266_v3, %v2253_v51  ;;  %v4407_v61 = vor.u32 %v4842_v39, %v4406_v12  ;;  %v4825_v3 = vld [vmem:[#allocation11 + $0xa4] sm:$0xf]  ;;  %v4283_v28 = vor.u32 %v4809_v0, %v4280_v2  ;;  %v4400_v4 = vld [vmem:[#allocation11 + $0x118] sm:$0xf0] }
 0x18e   :  { %2917 = vmatpush.bf16.msra.mxu0 %v4287_v59  ;;  %2931 = vmatpush.bf16.msra.mxu1 %v4351_v34  ;;  %v4315_v59 = vor.u32 %v4817_v10, %v4312_v15  ;;  %v2241_v34 = vadd.f32 %v2240_v20, %v2227_v14  ;;  %v2254_v31 = vpop.f32.mrf.mxu2  ;;  %v4272_v14 = vld [vmem:[#allocation11 + $0x18] sm:$0xf0]  ;;  %v4264_v20 = vld [vmem:[#allocation11 + $0x8] sm:$0xf0]  ;;  %v4849_v27 = vld [vmem:[#allocation11 + $0x164] sm:$0xf]  ;;  %v4403_v12 = vor.u32 %v4839_v60, %v4400_v4 }
 0x18f   :  { %v2268_v17 = vpop.f32.mrf.mxu3  ;;  %v2504_v41 = vmul.f32 0.2, %v2267_v62  ;;  %vm2496_vm3 = vcmp.gt.f32.partialorder %v2267_v62, 0.0  ;;  %v4336_v10 = vld [vmem:[#allocation11 + $0x98] sm:$0xf0]  ;;  %v4275_v15 = vor.u32 %v4807_v35, %v4272_v14  ;;  %v4267_v25 = vor.u32 %v4805_v16, %v4264_v20 }
 0x190   :  { %v4837_v2 = vld [vmem:[#allocation11 + $0x104] sm:$0xf]  ;;  %v4494_v20 = vld [vmem:[#allocation11 + $0x1d0] sm:$0xf] }
 0x191   :  { %v2512_v24 = vsel %vm2496_vm3, %v2267_v62, %v2504_v41  ;;  %v4328_v62 = vld [vmem:[#allocation11 + $0x88] sm:$0xf0] }
 0x192   :  { %2918 = vmatpush.bf16.msra.mxu0 %v4279_v36  ;;  %2932 = vmatpush.bf16.msra.mxu1 %v4343_v40  ;;  %v2255_v36 = vadd.f32 %v2254_v31, %v2241_v34  ;;  %v4423_v40 = vor.u32 %v4846_v33, %v4422_v42  ;;  %v4821_v34 = vld [vmem:[#allocation11 + $0x84] sm:$0xf]  ;;  %v4440_v31 = vld [vmem:[#allocation11 + $0x168] sm:$0xf0]  ;;  %v4847_v42 = vld [vmem:[#allocation11 + $0x154] sm:$0xf] }
 0x193   :  { %v4331_v26 = vor.u32 %v4821_v34, %v4328_v62  ;;  %v4443_v32 = vor.u32 %v4849_v27, %v4440_v31  ;;  %v4432_v33 = vld [vmem:[#allocation11 + $0x158] sm:$0xf0]  ;;  %v4424_v41 = vld [vmem:[#allocation11 + $0x148] sm:$0xf0] }
 0x194   :  { %v2269_v43 = vadd.f32 %v2268_v17, %v2255_v36  ;;  %2944 = vmatpush.bf16.msra.mxu2 %v4423_v40  ;;  %v4435_v40 = vor.u32 %v4847_v42, %v4432_v33  ;;  %v761_v17 = vperm.slane %v5249_v37, 2  ;;  %v4478_v33 = vld [vmem:[#allocation11 + $0x1b0] sm:$0xf] }
 0x196   :  { %2919 = vmatpush.bf16.msra.mxu0 %v4271_v47  ;;  %2933 = vmatpush.bf16.msra.mxu1 %v4335_v53  ;;  %vm2500_vm4 = vcmp.gt.f32.partialorder %v2269_v43, 0.0  ;;  %v2508_v30 = vmul.f32 0.2, %v2269_v43  ;;  %v4414_v47 = vld [vmem:[#allocation11 + $0x130] sm:$0xf] }
 0x197   :  { %v4415_v57 = vor.u32 %v4844_v44, %v4414_v47  ;;  %v4841_v44 = vld [vmem:[#allocation11 + $0x124] sm:$0xf] }
 0x198   :  { %v2516_v53 = vsel %vm2500_vm4, %v2269_v43, %v2508_v30  ;;  %v4416_v30 = vld [vmem:[#allocation11 + $0x138] sm:$0xf0] }
 0x199   :  { %v2520_v58 = vpack.c.bf16 %v2516_v53, %v2512_v24  ;;  %2945 = vmatpush.bf16.msra.mxu2 %v4415_v57  ;;  %v4408_v24 = vld [vmem:[#allocation11 + $0x128] sm:$0xf0] }
 0x19a   :  { %2920 = vmatpush.bf16.msra.mxu0 %v4263_v5  ;;  %2934 = vmatpush.bf16.msra.mxu1 %v4327_v6  ;;  %v4344_v5 = vld [vmem:[#allocation11 + $0xa8] sm:$0xf0]  ;;  %v4398_v6 = vld [vmem:[#allocation11 + $0x110] sm:$0xf]  ;;  %v2280_v1 = vpop.f32.mrf.mxu0  ;;  %v4411_v53 = vor.u32 %v4841_v44, %v4408_v24  ;;  %v4867_v44 = vld [vmem:[#allocation11 + $0x1f4] sm:$0xf] }
 0x19b   :  { %v4347_v13 = vor.u32 %v4825_v3, %v4344_v5  ;;  %v2281_v49 = vadd.f32 %v2280_v1, %v761_v17  ;;  %v4392_v3 = vld [vmem:[#allocation11 + $0x108] sm:$0xf0]  ;;  %v4862_v1 = vld [vmem:[#allocation11 + $0x1c4] sm:$0xf0]  ;;  %v4512_v24 = vld [vmem:[#allocation11 + $0x1f8] sm:$0xf0] }
 0x19c   :  { %v2294_v36 = vpop.f32.mrf.mxu1  ;;  %v4395_v5 = vor.u32 %v4837_v2, %v4392_v3 }
 0x19d   :  { %2921 = vmatmul.bf16.vlgmr.msra.gmra.mxu0 %v5282_v19  ;;  %2935 = vmatmul.bf16.vlgmr.msra.gmra.mxu1 %v2520_v58 }
 0x19e   :  { %2969 = vmatpush.bf16.msrb.mxu0 %v4323_v7  ;;  %2983 = vmatpush.bf16.msrb.mxu1 %v4387_v29  ;;  %v4840_v7 = vld [vmem:[#allocation11 + $0x114] sm:$0xf0]  ;;  %v4823_v29 = vld [vmem:[#allocation11 + $0x94] sm:$0xf] }
 0x19f   :  { %2946 = vmatpush.bf16.msra.mxu2 %v4407_v61  ;;  %v4399_v51 = vor.u32 %v4840_v7, %v4398_v6  ;;  %v4339_v11 = vor.u32 %v4823_v29, %v4336_v10  ;;  %v4868_v6 = vld [vmem:[#allocation11 + $0x1f4] sm:$0xf0]  ;;  %v4502_v10 = vld [vmem:[#allocation11 + $0x1e0] sm:$0xf] }
 0x1a2   :  { %2970 = vmatpush.bf16.msrb.mxu0 %v4315_v59  ;;  %2984 = vmatpush.bf16.msrb.mxu1 %v4379_v23  ;;  %v4391_v59 = vor.u32 %v4838_v18, %v4390_v9  ;;  %v4451_v23 = vor.u32 %v4851_v21, %v4448_v22  ;;  %v2282_v43 = vpop.f32.mrf.mxu0 }
 0x1a3   :  { %2947 = vmatpush.bf16.msra.mxu2 %v4399_v51  ;;  %v2283_v55 = vadd.f32 %v2282_v43, %v761_v17  ;;  %v4470_v43 = vld [vmem:[#allocation11 + $0x1a0] sm:$0xf] }
 0x1a4   :  { %v2296_v47 = vpop.f32.mrf.mxu1 }
 0x1a5   :  { %v2297_v39 = vadd.f32 %v2296_v47, %v2283_v55  ;;  %v4504_v55 = vld [vmem:[#allocation11 + $0x1e8] sm:$0xf0] }
 0x1a6   :  { %2971 = vmatpush.bf16.msrb.mxu0 %v4307_v38  ;;  %2985 = vmatpush.bf16.msrb.mxu1 %v4371_v45  ;;  %v4845_v38 = vld [vmem:[#allocation11 + $0x144] sm:$0xf]  ;;  %v2308_v45 = vpop.f32.mrf.mxu2 }
 0x1a7   :  { %2948 = vmatpush.bf16.msra.mxu2 %v4391_v59  ;;  %v4427_v46 = vor.u32 %v4845_v38, %v4424_v41  ;;  %v2322_v48 = vpop.f32.mrf.mxu3  ;;  %v4864_v59 = vld [vmem:[#allocation11 + $0x1d4] sm:$0xf0] }
 0x1a8   :  { %v4495_v34 = vor.u32 %v4864_v59, %v4494_v20 }
 0x1aa   :  { %2972 = vmatpush.bf16.msrb.mxu0 %v4299_v52  ;;  %2986 = vmatpush.bf16.msrb.mxu1 %v4363_v54  ;;  %v4419_v52 = vor.u32 %v4843_v50, %v4416_v30  ;;  %v4454_v30 = vld [vmem:[#allocation11 + $0x180] sm:$0xf] }
 0x1ab   :  { %2997 = vmatpush.bf16.msrb.mxu2 %v4451_v23  ;;  %v4486_v23 = vld [vmem:[#allocation11 + $0x1c0] sm:$0xf] }
 0x1ae   :  { %2973 = vmatpush.bf16.msrb.mxu0 %v4291_v63  ;;  %2987 = vmatpush.bf16.msrb.mxu1 %v4355_v8  ;;  %v2310_v57 = vpop.f32.mrf.mxu2 }
 0x1af   :  { %2998 = vmatpush.bf16.msrb.mxu2 %v4443_v32  ;;  %v2311_v8 = vadd.f32 %v2310_v57, %v2297_v39  ;;  %v4863_v57 = vld [vmem:[#allocation11 + $0x1d4] sm:$0xf]  ;;  %v4861_v39 = vld [vmem:[#allocation11 + $0x1c4] sm:$0xf] }
 0x1b2   :  { %2974 = vmatpush.bf16.msrb.mxu0 %v4283_v28  ;;  %2988 = vmatpush.bf16.msrb.mxu1 %v4347_v13  ;;  %v4510_v28 = vld [vmem:[#allocation11 + $0x1f0] sm:$0xf] }
 0x1b3   :  { %2999 = vmatpush.bf16.msrb.mxu2 %v4435_v40  ;;  %v4511_v7 = vor.u32 %v4868_v6, %v4510_v28  ;;  %v4480_v28 = vld [vmem:[#allocation11 + $0x1b8] sm:$0xf0] }
 0x1b5   :  { %2955 = vmatpush.bf16.msra.mxu3 %v4511_v7  ;;  %v4857_v7 = vld [vmem:[#allocation11 + $0x1a4] sm:$0xf] }
 0x1b6   :  { %2975 = vmatpush.bf16.msrb.mxu0 %v4275_v15  ;;  %2989 = vmatpush.bf16.msrb.mxu1 %v4339_v11  ;;  %v4866_v15 = vld [vmem:[#allocation11 + $0x1e4] sm:$0xf0] }
 0x1b7   :  { %3000 = vmatpush.bf16.msrb.mxu2 %v4427_v46  ;;  %v4503_v18 = vor.u32 %v4866_v15, %v4502_v10 }
 0x1b9   :  { %2956 = vmatpush.bf16.msra.mxu3 %v4503_v18  ;;  %v4464_v18 = vld [vmem:[#allocation11 + $0x198] sm:$0xf0] }
 0x1ba   :  { %2976 = vmatpush.bf16.msrb.mxu0 %v4267_v25  ;;  %2990 = vmatpush.bf16.msrb.mxu1 %v4331_v26  ;;  %v2336_v54 = vpop.f32.mrf.mxu0  ;;  %v4487_v26 = vor.u32 %v4862_v1, %v4486_v23 }
 0x1bb   :  { %3001 = vmatpush.bf16.msrb.mxu2 %v4419_v52  ;;  %v4854_v52 = vld [vmem:[#allocation11 + $0x184] sm:$0xf0] }
 0x1bc   :  { %v2350_v61 = vpop.f32.mrf.mxu1  ;;  %v4455_v47 = vor.u32 %v4854_v52, %v4454_v30 }
 0x1bd   :  { %2977 = vmatmul.bf16.vlgmr.msrb.gmra.mxu0 %v5282_v19  ;;  %2991 = vmatmul.bf16.vlgmr.msrb.gmra.mxu1 %v2520_v58  ;;  %v2295_v19 = vadd.f32 %v2294_v36, %v2281_v49  ;;  %v2324_v58 = vpop.f32.mrf.mxu3  ;;  %v4860_v36 = vld [vmem:[#allocation11 + $0x1b4] sm:$0xf0] }
 0x1be   :  { %v2325_v14 = vadd.f32 %v2324_v58, %v2311_v8  ;;  %2957 = vmatpush.bf16.msra.mxu3 %v4495_v34  ;;  %v4479_v38 = vor.u32 %v4860_v36, %v4478_v33  ;;  %v4856_v49 = vld [vmem:[#allocation11 + $0x194] sm:$0xf0]  ;;  %v4496_v58 = vld [vmem:[#allocation11 + $0x1d8] sm:$0xf0]  ;;  %v4456_v34 = vld [vmem:[#allocation11 + $0x188] sm:$0xf0] }
 0x1bf   :  { %v2309_v56 = vadd.f32 %v2308_v45, %v2295_v19  ;;  %3002 = vmatpush.bf16.msrb.mxu2 %v4411_v53  ;;  %v4858_v45 = vld [vmem:[#allocation11 + $0x1a4] sm:$0xf0]  ;;  %v4515_v19 = vor.u32 %v4867_v44, %v4512_v24  ;;  %v4499_v4 = vor.u32 %v4863_v57, %v4496_v58 }
 0x1c0   :  { %v4471_v46 = vor.u32 %v4858_v45, %v4470_v43 }
 0x1c1   :  { %v2323_v63 = vadd.f32 %v2322_v48, %v2309_v56  ;;  %v4462_v48 = vld [vmem:[#allocation11 + $0x190] sm:$0xf] }
 0x1c2   :  { %v2338_v13 = vpop.f32.mrf.mxu0  ;;  %2958 = vmatpush.bf16.msra.mxu3 %v4487_v26  ;;  %v4463_v50 = vor.u32 %v4856_v49, %v4462_v48 }
 0x1c3   :  { %3003 = vmatpush.bf16.msrb.mxu2 %v4403_v12  ;;  %v2337_v0 = vadd.f32 %v2336_v54, %v2323_v63  ;;  %v2339_v16 = vadd.f32 %v2338_v13, %v2325_v14  ;;  %v4865_v54 = vld [vmem:[#allocation11 + $0x1e4] sm:$0xf]  ;;  %v762_v12 = vperm.slane %v5249_v37, 3  ;;  %v4488_v63 = vld [vmem:[#allocation11 + $0x1c8] sm:$0xf0] }
 0x1c4   :  { %v2352_v11 = vpop.f32.mrf.mxu1  ;;  %v4507_v56 = vor.u32 %v4865_v54, %v4504_v55  ;;  %v4472_v13 = vld [vmem:[#allocation11 + $0x1a8] sm:$0xf0] }
 0x1c5   :  { %v2351_v51 = vadd.f32 %v2350_v61, %v2337_v0  ;;  %v2353_v21 = vadd.f32 %v2352_v11, %v2339_v16  ;;  %v4491_v0 = vor.u32 %v4861_v39, %v4488_v63  ;;  %v4475_v14 = vor.u32 %v4857_v7, %v4472_v13  ;;  %v3037_v13 = vld [vmem:[%s5304_s7] sm:$0x3]  ;;  %s5053_s7 = smov [#allocation12]  }
 0x1c6   :  { %v2364_v35 = vpop.f32.mrf.mxu2  ;;  %2959 = vmatpush.bf16.msra.mxu3 %v4479_v38  ;;  %s3082_s8 = sshll.u32 %s5053_s7, 4  ;;  %s3083_s8 = int_to_ptr.vmem [resolvable:$true] %s3082_s8 }
 0x1c7   :  { %3004 = vmatpush.bf16.msrb.mxu2 %v4395_v5  ;;  %v2378_v29 = vpop.f32.mrf.mxu3  ;;  %v2365_v9 = vadd.f32 %v2364_v35, %v2351_v51  ;;  %v4859_v5 = vld [vmem:[#allocation11 + $0x1b4] sm:$0xf] }
 0x1c8   :  { %v4483_v6 = vor.u32 %v4859_v5, %v4480_v28 }
 0x1c9   :  { %v2379_v22 = vadd.f32 %v2378_v29, %v2365_v9  ;;  %v4855_v9 = vld [vmem:[#allocation11 + $0x194] sm:$0xf] }
 0x1ca   :  { %2960 = vmatpush.bf16.msra.mxu3 %v4471_v46  ;;  %v4467_v11 = vor.u32 %v4855_v9, %v4464_v18 }
 0x1cb   :  { %v2505_v31 = vmul.f32 0.2, %v2379_v22  ;;  %vm2497_vm5 = vcmp.gt.f32.partialorder %v2379_v22, 0.0 }
 0x1cd   :  { %v2513_v40 = vsel %vm2497_vm5, %v2379_v22, %v2505_v31  ;;  %v4853_v22 = vld [vmem:[#allocation11 + $0x184] sm:$0xf] }
 0x1ce   :  { %v2366_v62 = vpop.f32.mrf.mxu2  ;;  %2961 = vmatpush.bf16.msra.mxu3 %v4463_v50  ;;  %v4459_v1 = vor.u32 %v4853_v22, %v4456_v34 }
 0x1cf   :  { %v2367_v25 = vadd.f32 %v2366_v62, %v2353_v21  ;;  %v2380_v27 = vpop.f32.mrf.mxu3 }
 0x1d1   :  { %v2381_v32 = vadd.f32 %v2380_v27, %v2367_v25 }
 0x1d2   :  { %2962 = vmatpush.bf16.msra.mxu3 %v4455_v47 }
 0x1d3   :  { %vm2501_vm6 = vcmp.gt.f32.partialorder %v2381_v32, 0.0  ;;  %v2509_v42 = vmul.f32 0.2, %v2381_v32 }
 0x1d5   :  { %v2517_v17 = vsel %vm2501_vm6, %v2381_v32, %v2509_v42 }
 0x1d6   :  { %v2521_v41 = vpack.c.bf16 %v2517_v17, %v2513_v40  ;;  %3011 = vmatpush.bf16.msrb.mxu3 %v4515_v19  ;;  %v2587_v19 = vld [vmem:[%s5303_s6] sm:$0x3] }
 0x1d7   :  { %v2589_v55 = vperm.slane %v2587_v19, 0 }
 0x1d8   :  { %2949 = vmatmul.bf16.vlgmr.msra.gmra.mxu2 %v2521_v41 }
 0x1da   :  { %v2392_v53 = vpop.f32.mrf.mxu0  ;;  %3012 = vmatpush.bf16.msrb.mxu3 %v4507_v56 }
 0x1db   :  { %v2393_v3 = vadd.f32 %v2392_v53, %v762_v12 }
 0x1dc   :  { %v2406_v60 = vpop.f32.mrf.mxu1 }
 0x1dd   :  { %v2407_v51 = vadd.f32 %v2406_v60, %v2393_v3  ;;  %v2590_v60 = vperm.slane %v2587_v19, 1 }
 0x1de   :  { %3013 = vmatpush.bf16.msrb.mxu3 %v4499_v4 }
 0x1e2   :  { %v2394_v61 = vpop.f32.mrf.mxu0  ;;  %3014 = vmatpush.bf16.msrb.mxu3 %v4491_v0 }
 0x1e3   :  { %v2395_v10 = vadd.f32 %v2394_v61, %v762_v12 }
 0x1e4   :  { %v2408_v35 = vpop.f32.mrf.mxu1 }
 0x1e5   :  { %v2409_v20 = vadd.f32 %v2408_v35, %v2395_v10  ;;  %v3039_v10 = vperm.slane %v3037_v13, 0 }
 0x1e6   :  { %v2420_v8 = vpop.f32.mrf.mxu2  ;;  %3015 = vmatpush.bf16.msrb.mxu3 %v4483_v6 }
 0x1e7   :  { %v2434_v2 = vpop.f32.mrf.mxu3  ;;  %v2421_v37 = vadd.f32 %v2420_v8, %v2407_v51 }
 0x1e8   :  { %3005 = vmatmul.bf16.vlgmr.msrb.gmra.mxu2 %v2521_v41 }
 0x1e9   :  { %v2435_v59 = vadd.f32 %v2434_v2, %v2421_v37  ;;  %v3040_v37 = vperm.slane %v3037_v13, 1 }
 0x1ea   :  { %3016 = vmatpush.bf16.msrb.mxu3 %v4475_v14 }
 0x1ee   :  { %v2422_v15 = vpop.f32.mrf.mxu2  ;;  %3017 = vmatpush.bf16.msrb.mxu3 %v4467_v11 }
 0x1ef   :  { %v2436_v16 = vpop.f32.mrf.mxu3  ;;  %v2423_v62 = vadd.f32 %v2422_v15, %v2409_v20 }
 0x1f1   :  { %v2437_v27 = vadd.f32 %v2436_v16, %v2423_v62 }
 0x1f2   :  { %3018 = vmatpush.bf16.msrb.mxu3 %v4459_v1 }
 0x1fa   :  { %v2448_v29 = vpop.f32.mrf.mxu0 }
 0x1fb   :  { %v2449_v23 = vadd.f32 %v2448_v29, %v2435_v59 }
 0x1fc   :  { %v2462_v21 = vpop.f32.mrf.mxu1 }
 0x1fd   :  { %v2463_v31 = vadd.f32 %v2462_v21, %v2449_v23 }
 0x202   :  { %v2450_v25 = vpop.f32.mrf.mxu0 }
 0x203   :  { %v2451_v42 = vadd.f32 %v2450_v25, %v2437_v27 }
 0x204   :  { %v2464_v36 = vpop.f32.mrf.mxu1 }
 0x205   :  { %v2465_v40 = vadd.f32 %v2464_v36, %v2451_v42  ;;  %v5052_v36 = vmov 0  }
 0x206   :  { %v2476_v26 = vpop.f32.mrf.mxu2  ;;  %4884 = vset.pattern.permute.xlu1 %v5052_v36  ;;  %4885 = vset.pattern.permute.xlu0 %v5052_v36 }
 0x207   :  { %v2490_v32 = vpop.f32.mrf.mxu3  ;;  %v2477_v33 = vadd.f32 %v2476_v26, %v2463_v31 }
 0x209   :  { %v2491_v17 = vadd.f32 %v2490_v32, %v2477_v33 }
 0x20b   :  { %v2506_v45 = vmul.f32 0.2, %v2491_v17  ;;  %vm2498_vm7 = vcmp.gt.f32.partialorder %v2491_v17, 0.0 }
 0x20d   :  { %v2514_v49 = vsel %vm2498_vm7, %v2491_v17, %v2506_v45  ;;  %v3067_v45 = vlaneseq }
 0x20e   :  { %v2478_v38 = vpop.f32.mrf.mxu2 }
 0x20f   :  { %v2479_v41 = vadd.f32 %v2478_v38, %v2465_v40  ;;  %v2492_v43 = vpop.f32.mrf.mxu3  ;;  %v4886_v40 = vld [vmem:[#allocation2] ss:$0 sm:$0xff] }
 0x211   :  { %v2493_v46 = vadd.f32 %v2492_v43, %v2479_v41 }
 0x213   :  { %vm2502_vm8 = vcmp.gt.f32.partialorder %v2493_v46, 0.0  ;;  %v2510_v48 = vmul.f32 0.2, %v2493_v46 }
 0x215   :  { %v2518_v50 = vsel %vm2502_vm8, %v2493_v46, %v2510_v48  ;;  %v3068_v48 = vand.u32 127, %v3067_v45 }
 0x216   :  { %v2522_v30 = vpack.c.bf16 %v2518_v50, %v2514_v49 }
 0x217   :  { %v3070_v49 = vadd.s32 4294967288, %v3068_v48 }
 0x218   :  { %2963 = vmatmul.bf16.vlgmr.msra.gmra.mxu3 %v2522_v30 }
 0x21a   :  { %v2922_v52 = vpop.f32.mrf.mxu0  ;;  %v2936_v44 = vpop.f32.mrf.mxu1 }
 0x21b   :  { %v2923_v58 = vadd.f32 %v2922_v52, %v2589_v55 }
 0x21d   :  { %v2937_v4 = vadd.f32 %v2936_v44, %v2923_v58 }
 0x222   :  { %v2924_v24 = vpop.f32.mrf.mxu0  ;;  %v2938_v56 = vpop.f32.mrf.mxu1 }
 0x223   :  { %v2925_v2 = vadd.f32 %v2924_v24, %v2589_v55 }
 0x225   :  { %v2939_v28 = vadd.f32 %v2938_v56, %v2925_v2 }
 0x228   :  { %3019 = vmatmul.bf16.vlgmr.msrb.gmra.mxu3 %v2522_v30 }
 0x23a   :  { %v2978_v57 = vpop.f32.mrf.mxu0  ;;  %v2992_v61 = vpop.f32.mrf.mxu1 }
 0x23b   :  { %v2979_v39 = vadd.f32 %v2978_v57, %v2590_v60 }
 0x23d   :  { %v2993_v3 = vadd.f32 %v2992_v61, %v2979_v39 }
 0x242   :  { %v2980_v5 = vpop.f32.mrf.mxu0  ;;  %v2994_v18 = vpop.f32.mrf.mxu1 }
 0x243   :  { %v2981_v14 = vadd.f32 %v2980_v5, %v2590_v60 }
 0x245   :  { %v2995_v20 = vadd.f32 %v2994_v18, %v2981_v14 }
 0x25b   :  { %v2950_v47 = vpop.f32.mrf.mxu2 }
 0x25c   :  { %v2951_v63 = vadd.f32 %v2950_v47, %v2937_v4 }
 0x263   :  { %v2952_v53 = vpop.f32.mrf.mxu2 }
 0x264   :  { %v2953_v51 = vadd.f32 %v2952_v53, %v2939_v28 }
 0x26b   :  { %v3006_v8 = vpop.f32.mrf.mxu2 }
 0x26c   :  { %v3007_v6 = vadd.f32 %v3006_v8, %v2993_v3 }
 0x273   :  { %v3008_v11 = vpop.f32.mrf.mxu2 }
 0x274   :  { %v3009_v34 = vadd.f32 %v3008_v11, %v2995_v20 }
 0x29b   :  { %v2964_v54 = vpop.f32.mrf.mxu3 }
 0x29c   :  { %v2965_v0 = vadd.f32 %v2964_v54, %v2951_v63 }
 0x29e   :  { %v3029_v7 = vmul.f32 0.2, %v2965_v0  ;;  %vm3025_vm9 = vcmp.gt.f32.partialorder %v2965_v0, 0.0 }
 0x2a0   :  { %v3033_v9 = vsel %vm3025_vm9, %v2965_v0, %v3029_v7 }
 0x2a1   :  { %v3043_v21 = vmul.f32 %v3039_v10, %v3033_v9 }
 0x2a3   :  { %v2966_v12 = vpop.f32.mrf.mxu3 }
 0x2a4   :  { %v2967_v15 = vadd.f32 %v2966_v12, %v2953_v51 }
 0x2a6   :  { %v3031_v62 = vmul.f32 0.2, %v2967_v15  ;;  %vm3027_vm11 = vcmp.gt.f32.partialorder %v2967_v15, 0.0 }
 0x2a8   :  { %v3035_v27 = vsel %vm3027_vm11, %v2967_v15, %v3031_v62 }
 0x2a9   :  { %v3045_v32 = vmul.f32 %v3039_v10, %v3035_v27 }
 0x2ab   :  { %v3020_v35 = vpop.f32.mrf.mxu3 }
 0x2ac   :  { %v3021_v29 = vadd.f32 %v3020_v35, %v3007_v6 }
 0x2ae   :  { %vm3026_vm10 = vcmp.gt.f32.partialorder %v3021_v29, 0.0  ;;  %v3030_v16 = vmul.f32 0.2, %v3021_v29 }
 0x2b0   :  { %v3034_v59 = vsel %vm3026_vm10, %v3021_v29, %v3030_v16 }
 0x2b1   :  { %v3044_v22 = vmul.f32 %v3040_v37, %v3034_v59 }
 0x2b3   :  { %v3022_v23 = vpop.f32.mrf.mxu3  ;;  %v3047_v1 = vadd.f32 %v3044_v22, %v3043_v21 }
 0x2b4   :  { %v3023_v25 = vadd.f32 %v3022_v23, %v3009_v34 }
 0x2b5   :  { %3048 = vadd.xlane.f32.xlu0 %v3047_v1 }
 0x2b6   :  { %vm3028_vm12 = vcmp.gt.f32.partialorder %v3023_v25, 0.0  ;;  %v3032_v26 = vmul.f32 0.2, %v3023_v25 }
 0x2b8   :  { %v3036_v31 = vsel %vm3028_vm12, %v3023_v25, %v3032_v26 }
 0x2b9   :  { %v3046_v42 = vmul.f32 %v3040_v37, %v3036_v31 }
 0x2bb   :  { %v3050_v33 = vadd.f32 %v3046_v42, %v3045_v32 }
 0x2bd   :  { %3051 = vadd.xlane.f32.xlu0 %v3050_v33 }
 0x328   :  { %v3049_v17 = vpop.xlane.xlu0 %3048 }
 0x329   :  { %v3057_v38 = vadd.f32 %v4886_v40, %v3049_v17 }
 0x32b   :  { %3062 = vperm.xlu1 %4884, %v3057_v38  }
 0x330   :  { %v3052_v41 = vpop.xlane.xlu0 %3051 }
 0x331   :  { %v3058_v43 = vadd.f32 %v4886_v40, %v3052_v41 }
 0x333   :  { %3065 = vperm.xlu1 %4884, %v3058_v43  }
 0x39d   :  { %v3063_v46 = vpop.permute.xlu1 %3062 }
 0x39e   :  { %v3069_v30 = vperm.slane %v3063_v46, %v3068_v48 }
 0x3a5   :  { %v3066_v50 = vpop.permute.xlu1 %3065 }
 0x3a6   :  { %v3071_v52 = vperm.slane %v3066_v50, %v3070_v49 }
 0x3a8   :  { %v3073_v47 = vsel %vm3072_vm13, %v3071_v52, %v3069_v30 }
 0x3a9   :  { %3076 = vst.msk [vmem:[#allocation12] sm:$0x1] %vm3075_vm14, %v3073_v47 }
 0x3aa   :  { %3087 = dma.vmem_to_hbm [thread:$0]  %s3083_s8, 16, %s3085_s23, [#allocation5]  }
 0x3ab   :  { %5037 = dma.done.wait [#allocation5], 16  }
 0x3ac   :  { %5038 = vsyncadd [#allocation5], 4294967280 }
 0x3ad   :  { %3092 = vsyncpa [#allocation4], 1 }
 0x3ae   :  { %3093 = vsyncpa [#allocation7], 1 }
 0x3af   :  { %3094 = vsyncpa [#allocation10], 1 }
 0x3b0   :  { %3095 = vsyncpa [#allocation5], 1 }

</bundles_post_ra>
